<compile_context>
chip_gen: v6e
topology: v6e:2x2x1
jax: 0.10.0
libtpu: 0.0.40
codegen_flags: <defaults>
</compile_context>

<pallas_src>
import functools

import jax
import jax.numpy as jnp
from jax import lax
from jax.experimental import pallas as pl
from jax.experimental.pallas import tpu as pltpu


# Above the 16 MiB (v5e) / 32 MiB (v6e, v7x) scoped-VMEM defaults, below the
# v7x 64 MiB physical capacity; actual per-step usage is only a few MiB.
_VMEM_LIMIT_BYTES = 48 * 1024 * 1024


# ---------------------------------------------------------------------------
# Pass 1: fused, lane-dense feature slab  F = [cn_0 | ... | cn_{P-1} | pe_fc]
# ---------------------------------------------------------------------------
def _feature_kernel(*refs, n_pers, input_size, position_flag,
                    cos_scale, pe_scale, group):
    if position_flag == 1:
        ctx_ref, pe_ref, w_ref, wpe_ref, f_ref = refs
    else:
        ctx_ref, w_ref, f_ref = refs
        pe_ref = wpe_ref = None

    ctx = ctx_ref[...]                                    # (TM, D) f32
    w = w_ref[...]                                        # (P,  D) f32

    # Per-perspective sum-of-squares in ONE MXU matmul instead of P narrow
    # 32-lane XLU reductions: contract dim 1 of both operands -> (TM, P).
    sumsq = lax.dot_general(ctx * ctx, w * w,
                            dimension_numbers=(((1,), (1,)), ((), ())),
                            preferred_element_type=jnp.float32)
    # 1/max(||cf||, 1e-12) == rsqrt(max(sumsq, 1e-24))  (EUP slot), with the
    # 0.5/0.5 blend and 1/P mean folded in as a scale.
    inv = lax.rsqrt(jnp.maximum(sumsq, 1e-24)) * cos_scale    # (TM, P)

    d = input_size
    # Store `group` perspectives per write so each write is (TM, group*D)
    # = 128 lanes, 128-lane aligned (unmasked vst), and only ~group blocks
    # stay live in vregs.
    for p0 in range(0, n_pers, group):
        p1 = min(p0 + group, n_pers)
        blocks = [ctx * w[p:p + 1, :] * inv[:, p:p + 1] for p in range(p0, p1)]
        blk = blocks[0] if len(blocks) == 1 else jnp.concatenate(blocks, axis=-1)
        f_ref[:, p0 * d:p1 * d] = blk.astype(f_ref.dtype)

    if position_flag == 1:
        pe_fc = jnp.dot(pe_ref[...], wpe_ref[...],
                        preferred_element_type=jnp.float32)   # (TM, H)
        f_ref[:, n_pers * d:] = (pe_fc * pe_scale).astype(f_ref.dtype)


# ---------------------------------------------------------------------------
# Pass 2: one fused wide bf16 contraction per (row, col) tile + gpr + epsilon
# ---------------------------------------------------------------------------
def _attention_kernel(frow_ref, fcol_ref, gpr_ref, out_ref, *, epsilon):
    # Contract the last dim of both operands: bf16 MXU matmul, f32 accumulate.
    att = lax.dot_general(frow_ref[...], fcol_ref[...],
                          dimension_numbers=(((1,), (1,)), ((), ())),
                          preferred_element_type=jnp.float32)  # (TM, TN)
    att = att * gpr_ref[...]
    if epsilon is not None and epsilon != 0:
        att = jnp.where(att > epsilon, att, jnp.zeros_like(att))
    out_ref[...] = att
    # TODO(synk): topk neighbourhood (torch.topk + scatter_) and ctx_mask
    #             masked_fill_ paths are not implemented (module defaults:
    #             topk=None, ctx_mask=None).


def graph_learner_forward(context, position_encoding, gpr_rank,
                          weight_tensor, weight_tensor_for_pe,
                          *, position_flag=1, epsilon=0.1,
                          tm=256, tn=512, feat_dtype=jnp.bfloat16):
    context = context.astype(jnp.float32)
    gpr_rank = gpr_rank.astype(jnp.float32)
    weight_tensor = weight_tensor.astype(jnp.float32)

    n_nodes, input_size = context.shape
    n_pers = weight_tensor.shape[0]

    tm = min(tm, n_nodes)
    tn = min(tn, n_nodes)
    # TODO(synk): pad n_nodes to a tile multiple for arbitrary graph sizes.
    assert n_nodes % tm == 0 and n_nodes % tn == 0, \
        "n_nodes must be divisible by the row/col tiles"

    # Fold the 0.5/0.5 blend (and the 1/P mean) into the features so the whole
    # attention is one contraction:  F @ F^T == 0.5*mean_p(cos_p) + 0.5*pe_att.
    if position_flag == 1:
        position_encoding = position_encoding.astype(jnp.float32)
        weight_tensor_for_pe = weight_tensor_for_pe.astype(jnp.float32)
        n_anchors, hidden_size = weight_tensor_for_pe.shape
        cos_scale = (0.5 / n_pers) ** 0.5
        pe_scale = 0.5 ** 0.5
        k_feat = n_pers * input_size + hidden_size
    else:
        cos_scale = (1.0 / n_pers) ** 0.5
        pe_scale = 0.0
        k_feat = n_pers * input_size

    # Group size so each pass-1 store is exactly 128 lanes wide when possible.
    if input_size <= 128 and 128 % input_size == 0:
        group = 128 // input_size
    else:
        group = 1   # falls back to per-perspective (masked) stores

    feat_kernel = functools.partial(
        _feature_kernel, n_pers=n_pers, input_size=input_size,
        position_flag=position_flag, cos_scale=cos_scale, pe_scale=pe_scale,
        group=group)

    grid1 = (n_nodes // tm,)
    ctx_spec = pl.BlockSpec((tm, input_size), lambda i: (i, 0))
    w_spec = pl.BlockSpec((n_pers, input_size), lambda i: (0, 0))
    if position_flag == 1:
        in_specs1 = [
            ctx_spec,
            pl.BlockSpec((tm, n_anchors), lambda i: (i, 0)),
            w_spec,
            pl.BlockSpec((n_anchors, hidden_size), lambda i: (0, 0)),
        ]
        inputs1 = (context, position_encoding, weight_tensor,
                   weight_tensor_for_pe)
    else:
        in_specs1 = [ctx_spec, w_spec]
        inputs1 = (context, weight_tensor)

    features = pl.pallas_call(
        feat_kernel,
        out_shape=jax.ShapeDtypeStruct((n_nodes, k_feat), feat_dtype),
        grid_spec=pltpu.PrefetchScalarGridSpec(
            num_scalar_prefetch=0,
            grid=grid1,
            in_specs=in_specs1,
            out_specs=pl.BlockSpec((tm, k_feat), lambda i: (i, 0)),
        ),
        compiler_params=pltpu.CompilerParams(
            dimension_semantics=("parallel",),
            vmem_limit_bytes=_VMEM_LIMIT_BYTES),
    )(*inputs1)

    att_kernel = functools.partial(_attention_kernel, epsilon=epsilon)
    feat_bytes = jnp.dtype(feat_dtype).itemsize
    cost = pl.CostEstimate(
        flops=2 * n_nodes * n_nodes * k_feat,
        transcendentals=0,
        bytes_accessed=(2 * n_nodes * n_nodes * 4            # gpr read + out write
                        + 2 * n_nodes * k_feat * feat_bytes))  # F read (row + col)

    return pl.pallas_call(
        att_kernel,
        out_shape=jax.ShapeDtypeStruct((n_nodes, n_nodes), jnp.float32),
        grid_spec=pltpu.PrefetchScalarGridSpec(
            num_scalar_prefetch=0,
            grid=(n_nodes // tm, n_nodes // tn),
            in_specs=[
                pl.BlockSpec((tm, k_feat), lambda i, j: (i, 0)),   # row features
                pl.BlockSpec((tn, k_feat), lambda i, j: (j, 0)),   # col features
                pl.BlockSpec((tm, tn), lambda i, j: (i, j)),       # gpr_rank tile
            ],
            out_specs=pl.BlockSpec((tm, tn), lambda i, j: (i, j)),
        ),
        compiler_params=pltpu.CompilerParams(
            dimension_semantics=("parallel", "parallel"),
            vmem_limit_bytes=_VMEM_LIMIT_BYTES),
        cost_estimate=cost,
    )(features, features, gpr_rank)


# ---------------------------------------------------------------------------
# Pure-JAX reference mirroring the PyTorch module (for the self-test).
# ---------------------------------------------------------------------------
def _reference_forward(context, position_encoding, gpr_rank,
                       weight_tensor, weight_tensor_for_pe,
                       position_flag=1, epsilon=0.1):
    cf = context[None, :, :] * weight_tensor[:, None, :]          # (P, N, D)
    denom = jnp.maximum(jnp.linalg.norm(cf, axis=-1, keepdims=True), 1e-12)
    cn = cf / denom
    att = jnp.einsum('pid,pjd->ij', cn, cn) / weight_tensor.shape[0]
    if position_flag == 1:
        pe_fc = position_encoding @ weight_tensor_for_pe
        pe_att = pe_fc @ pe_fc.T
        att = (att * 0.5 + pe_att * 0.5) * gpr_rank
    else:
        att = att * gpr_rank
    pre_mask = att
    if epsilon is not None and epsilon != 0:
        att = jnp.where(att > epsilon, att, 0.0)
    return pre_mask, att


def _xavier_uniform(key, shape):
    # torch.nn.init.xavier_uniform_ for a 2D tensor (fan_out, fan_in) = shape
    fan_out, fan_in = shape
    bound = (6.0 / (fan_in + fan_out)) ** 0.5
    return jax.random.uniform(key, shape, jnp.float32, -bound, bound)


if __name__ == "__main__":
    # Small, TPU-friendly sizes; tm=tn=128 gives a 2x2 parallel grid so both
    # v7x TensorCores get work even at this tiny test size.
    n_nodes, input_size, hidden_size = 256, 32, 32
    n_anchors, n_pers = 8, 16
    epsilon = 0.1
    tm, tn = 128, 128

    key = jax.random.PRNGKey(0)
    k_ctx, k_pe, k_gpr, k_w, k_wpe = jax.random.split(key, 5)

    context = jax.random.normal(k_ctx, (n_nodes, input_size), jnp.float32)
    position_encoding = jax.random.normal(
        k_pe, (n_nodes, n_anchors), jnp.float32)
    gpr_rank = jax.random.uniform(
        k_gpr, (n_nodes, n_nodes), jnp.float32, 0.5, 1.5)

    weight_tensor = _xavier_uniform(k_w, (n_pers, input_size))
    weight_tensor_for_pe = _xavier_uniform(k_wpe, (n_anchors, hidden_size))

    for position_flag in (1, 0):
        out = graph_learner_forward(
            context, position_encoding, gpr_rank,
            weight_tensor, weight_tensor_for_pe,
            position_flag=position_flag, epsilon=epsilon, tm=tm, tn=tn)
        out = jax.block_until_ready(out)

        pre_mask, ref = _reference_forward(
            context, position_encoding, gpr_rank,
            weight_tensor, weight_tensor_for_pe,
            position_flag=position_flag, epsilon=epsilon)

        assert out.shape == (n_nodes, n_nodes)
        assert bool(jnp.all(jnp.isfinite(out)))
        # Features are stored in bf16, so (a) exclude entries whose pre-mask
        # value sits near the epsilon threshold (a mask flip there is
        # threshold sensitivity, not a numerical bug) and (b) compare the rest
        # with a bf16-appropriate tolerance.
        safe = jnp.abs(pre_mask - epsilon) > 7.5e-2
        ok = jnp.allclose(jnp.where(safe, out, 0.0),
                          jnp.where(safe, ref, 0.0),
                          atol=5e-2, rtol=5e-2)
        assert bool(ok), f"mismatch for position_flag={position_flag}"

    print("KERNEL_OK")
</pallas_src>

<mosaic_0001>
module attributes {stable_mosaic.version = 11 : i64} {
  func.func @_feature_kernel(%arg0: i32, %arg1: memref<128x32xf32, #tpu.memory_space<vmem>>, %arg2: memref<128x8xf32, #tpu.memory_space<vmem>>, %arg3: memref<16x32xf32, #tpu.memory_space<vmem>>, %arg4: memref<8x32xf32, #tpu.memory_space<vmem>>, %arg5: memref<128x544xbf16, #tpu.memory_space<vmem>>) attributes {dimension_semantics = [#tpu.dimension_semantics<parallel>], iteration_bounds = array<i64: 2>, scalar_prefetch = 0 : i64, scratch_operands = 0 : i64, tpu.core_type = #tpu.core_type<tc>, window_params = [{transform_indices = @transform_0, window_bounds = array<i64: 128, 32>}, {transform_indices = @transform_1, window_bounds = array<i64: 128, 8>}, {pipeline_mode = #tpu.pipeline_mode<synchronous>, transform_indices = @transform_2, window_bounds = array<i64: 16, 32>}, {pipeline_mode = #tpu.pipeline_mode<synchronous>, transform_indices = @transform_3, window_bounds = array<i64: 8, 32>}, {transform_indices = @transform_4, window_bounds = array<i64: 128, 544>}]} {
    %c0 = arith.constant 0 : index
    %c0_0 = arith.constant 0 : index
    %0 = vector.load %arg1[%c0, %c0_0] : memref<128x32xf32, #tpu.memory_space<vmem>>, vector<128x32xf32>
    %c0_1 = arith.constant 0 : index
    %c0_2 = arith.constant 0 : index
    %1 = vector.load %arg3[%c0_1, %c0_2] : memref<16x32xf32, #tpu.memory_space<vmem>>, vector<16x32xf32>
    %2 = arith.mulf %0, %0 : vector<128x32xf32>
    %3 = arith.mulf %1, %1 : vector<16x32xf32>
    %cst = arith.constant dense<0.000000e+00> : vector<128x16xf32>
    %4 = tpu.matmul %2, %3, %cst {dimension_numbers = #tpu.dot_dimension_numbers<[1], [1], [0], [0], [0, 0, 1, 0], [], []>} : vector<128x32xf32>, vector<16x32xf32>, vector<128x16xf32> -> vector<128x16xf32>
    %cst_3 = arith.constant 1.000000e-24 : f32
    %5 = vector.broadcast %cst_3 : f32 to vector<128x16xf32>
    %6 = arith.maximumf %4, %5 : vector<128x16xf32>
    %7 = math.rsqrt %6 : vector<128x16xf32>
    %cst_4 = arith.constant 0.176776692 : f32
    %8 = vector.broadcast %cst_4 : f32 to vector<128x16xf32>
    %9 = arith.mulf %7, %8 : vector<128x16xf32>
    %10 = vector.extract_strided_slice %1 {offsets = [0, 0], sizes = [1, 32], strides = [1, 1]} : vector<16x32xf32> to vector<1x32xf32>
    %11 = vector.broadcast %10 : vector<1x32xf32> to vector<128x32xf32>
    %12 = arith.mulf %0, %11 : vector<128x32xf32>
    %13 = vector.extract_strided_slice %9 {offsets = [0, 0], sizes = [128, 1], strides = [1, 1]} : vector<128x16xf32> to vector<128x1xf32>
    %14 = vector.broadcast %13 : vector<128x1xf32> to vector<128x32xf32>
    %15 = arith.mulf %12, %14 : vector<128x32xf32>
    %16 = vector.extract_strided_slice %1 {offsets = [1, 0], sizes = [1, 32], strides = [1, 1]} : vector<16x32xf32> to vector<1x32xf32>
    %17 = vector.broadcast %16 : vector<1x32xf32> to vector<128x32xf32>
    %18 = arith.mulf %0, %17 : vector<128x32xf32>
    %19 = vector.extract_strided_slice %9 {offsets = [0, 1], sizes = [128, 1], strides = [1, 1]} : vector<128x16xf32> to vector<128x1xf32>
    %20 = vector.broadcast %19 : vector<128x1xf32> to vector<128x32xf32>
    %21 = arith.mulf %18, %20 : vector<128x32xf32>
    %22 = vector.extract_strided_slice %1 {offsets = [2, 0], sizes = [1, 32], strides = [1, 1]} : vector<16x32xf32> to vector<1x32xf32>
    %23 = vector.broadcast %22 : vector<1x32xf32> to vector<128x32xf32>
    %24 = arith.mulf %0, %23 : vector<128x32xf32>
    %25 = vector.extract_strided_slice %9 {offsets = [0, 2], sizes = [128, 1], strides = [1, 1]} : vector<128x16xf32> to vector<128x1xf32>
    %26 = vector.broadcast %25 : vector<128x1xf32> to vector<128x32xf32>
    %27 = arith.mulf %24, %26 : vector<128x32xf32>
    %28 = vector.extract_strided_slice %1 {offsets = [3, 0], sizes = [1, 32], strides = [1, 1]} : vector<16x32xf32> to vector<1x32xf32>
    %29 = vector.broadcast %28 : vector<1x32xf32> to vector<128x32xf32>
    %30 = arith.mulf %0, %29 : vector<128x32xf32>
    %31 = vector.extract_strided_slice %9 {offsets = [0, 3], sizes = [128, 1], strides = [1, 1]} : vector<128x16xf32> to vector<128x1xf32>
    %32 = vector.broadcast %31 : vector<128x1xf32> to vector<128x32xf32>
    %33 = arith.mulf %30, %32 : vector<128x32xf32>
    %34 = tpu.concatenate %15, %21, %27, %33 in 1 : vector<128x32xf32>, vector<128x32xf32>, vector<128x32xf32>, vector<128x32xf32> -> vector<128x128xf32>
    %35 = arith.truncf %34 : vector<128x128xf32> to vector<128x128xbf16>
    %c0_5 = arith.constant 0 : index
    %c0_6 = arith.constant 0 : index
    %36 = vector.load %arg5[%c0_5, %c0_6] : memref<128x544xbf16, #tpu.memory_space<vmem>>, vector<128x128xbf16>
    tpu.vector_store %arg5[%c0_5, %c0_6], %35 {strides = array<i32>} : memref<128x544xbf16, #tpu.memory_space<vmem>>, vector<128x128xbf16>,
    %37 = vector.extract_strided_slice %1 {offsets = [4, 0], sizes = [1, 32], strides = [1, 1]} : vector<16x32xf32> to vector<1x32xf32>
    %38 = vector.broadcast %37 : vector<1x32xf32> to vector<128x32xf32>
    %39 = arith.mulf %0, %38 : vector<128x32xf32>
    %40 = vector.extract_strided_slice %9 {offsets = [0, 4], sizes = [128, 1], strides = [1, 1]} : vector<128x16xf32> to vector<128x1xf32>
    %41 = vector.broadcast %40 : vector<128x1xf32> to vector<128x32xf32>
    %42 = arith.mulf %39, %41 : vector<128x32xf32>
    %43 = vector.extract_strided_slice %1 {offsets = [5, 0], sizes = [1, 32], strides = [1, 1]} : vector<16x32xf32> to vector<1x32xf32>
    %44 = vector.broadcast %43 : vector<1x32xf32> to vector<128x32xf32>
    %45 = arith.mulf %0, %44 : vector<128x32xf32>
    %46 = vector.extract_strided_slice %9 {offsets = [0, 5], sizes = [128, 1], strides = [1, 1]} : vector<128x16xf32> to vector<128x1xf32>
    %47 = vector.broadcast %46 : vector<128x1xf32> to vector<128x32xf32>
    %48 = arith.mulf %45, %47 : vector<128x32xf32>
    %49 = vector.extract_strided_slice %1 {offsets = [6, 0], sizes = [1, 32], strides = [1, 1]} : vector<16x32xf32> to vector<1x32xf32>
    %50 = vector.broadcast %49 : vector<1x32xf32> to vector<128x32xf32>
    %51 = arith.mulf %0, %50 : vector<128x32xf32>
    %52 = vector.extract_strided_slice %9 {offsets = [0, 6], sizes = [128, 1], strides = [1, 1]} : vector<128x16xf32> to vector<128x1xf32>
    %53 = vector.broadcast %52 : vector<128x1xf32> to vector<128x32xf32>
    %54 = arith.mulf %51, %53 : vector<128x32xf32>
    %55 = vector.extract_strided_slice %1 {offsets = [7, 0], sizes = [1, 32], strides = [1, 1]} : vector<16x32xf32> to vector<1x32xf32>
    %56 = vector.broadcast %55 : vector<1x32xf32> to vector<128x32xf32>
    %57 = arith.mulf %0, %56 : vector<128x32xf32>
    %58 = vector.extract_strided_slice %9 {offsets = [0, 7], sizes = [128, 1], strides = [1, 1]} : vector<128x16xf32> to vector<128x1xf32>
    %59 = vector.broadcast %58 : vector<128x1xf32> to vector<128x32xf32>
    %60 = arith.mulf %57, %59 : vector<128x32xf32>
    %61 = tpu.concatenate %42, %48, %54, %60 in 1 : vector<128x32xf32>, vector<128x32xf32>, vector<128x32xf32>, vector<128x32xf32> -> vector<128x128xf32>
    %62 = arith.truncf %61 : vector<128x128xf32> to vector<128x128xbf16>
    %c0_7 = arith.constant 0 : index
    %c128 = arith.constant 128 : index
    %63 = vector.load %arg5[%c0_7, %c128] : memref<128x544xbf16, #tpu.memory_space<vmem>>, vector<128x128xbf16>
    tpu.vector_store %arg5[%c0_7, %c128], %62 {strides = array<i32>} : memref<128x544xbf16, #tpu.memory_space<vmem>>, vector<128x128xbf16>,
    %64 = vector.extract_strided_slice %1 {offsets = [8, 0], sizes = [1, 32], strides = [1, 1]} : vector<16x32xf32> to vector<1x32xf32>
    %65 = vector.broadcast %64 : vector<1x32xf32> to vector<128x32xf32>
    %66 = arith.mulf %0, %65 : vector<128x32xf32>
    %67 = vector.extract_strided_slice %9 {offsets = [0, 8], sizes = [128, 1], strides = [1, 1]} : vector<128x16xf32> to vector<128x1xf32>
    %68 = vector.broadcast %67 : vector<128x1xf32> to vector<128x32xf32>
    %69 = arith.mulf %66, %68 : vector<128x32xf32>
    %70 = vector.extract_strided_slice %1 {offsets = [9, 0], sizes = [1, 32], strides = [1, 1]} : vector<16x32xf32> to vector<1x32xf32>
    %71 = vector.broadcast %70 : vector<1x32xf32> to vector<128x32xf32>
    %72 = arith.mulf %0, %71 : vector<128x32xf32>
    %73 = vector.extract_strided_slice %9 {offsets = [0, 9], sizes = [128, 1], strides = [1, 1]} : vector<128x16xf32> to vector<128x1xf32>
    %74 = vector.broadcast %73 : vector<128x1xf32> to vector<128x32xf32>
    %75 = arith.mulf %72, %74 : vector<128x32xf32>
    %76 = vector.extract_strided_slice %1 {offsets = [10, 0], sizes = [1, 32], strides = [1, 1]} : vector<16x32xf32> to vector<1x32xf32>
    %77 = vector.broadcast %76 : vector<1x32xf32> to vector<128x32xf32>
    %78 = arith.mulf %0, %77 : vector<128x32xf32>
    %79 = vector.extract_strided_slice %9 {offsets = [0, 10], sizes = [128, 1], strides = [1, 1]} : vector<128x16xf32> to vector<128x1xf32>
    %80 = vector.broadcast %79 : vector<128x1xf32> to vector<128x32xf32>
    %81 = arith.mulf %78, %80 : vector<128x32xf32>
    %82 = vector.extract_strided_slice %1 {offsets = [11, 0], sizes = [1, 32], strides = [1, 1]} : vector<16x32xf32> to vector<1x32xf32>
    %83 = vector.broadcast %82 : vector<1x32xf32> to vector<128x32xf32>
    %84 = arith.mulf %0, %83 : vector<128x32xf32>
    %85 = vector.extract_strided_slice %9 {offsets = [0, 11], sizes = [128, 1], strides = [1, 1]} : vector<128x16xf32> to vector<128x1xf32>
    %86 = vector.broadcast %85 : vector<128x1xf32> to vector<128x32xf32>
    %87 = arith.mulf %84, %86 : vector<128x32xf32>
    %88 = tpu.concatenate %69, %75, %81, %87 in 1 : vector<128x32xf32>, vector<128x32xf32>, vector<128x32xf32>, vector<128x32xf32> -> vector<128x128xf32>
    %89 = arith.truncf %88 : vector<128x128xf32> to vector<128x128xbf16>
    %c0_8 = arith.constant 0 : index
    %c256 = arith.constant 256 : index
    %90 = vector.load %arg5[%c0_8, %c256] : memref<128x544xbf16, #tpu.memory_space<vmem>>, vector<128x128xbf16>
    tpu.vector_store %arg5[%c0_8, %c256], %89 {strides = array<i32>} : memref<128x544xbf16, #tpu.memory_space<vmem>>, vector<128x128xbf16>,
    %91 = vector.extract_strided_slice %1 {offsets = [12, 0], sizes = [1, 32], strides = [1, 1]} : vector<16x32xf32> to vector<1x32xf32>
    %92 = vector.broadcast %91 : vector<1x32xf32> to vector<128x32xf32>
    %93 = arith.mulf %0, %92 : vector<128x32xf32>
    %94 = vector.extract_strided_slice %9 {offsets = [0, 12], sizes = [128, 1], strides = [1, 1]} : vector<128x16xf32> to vector<128x1xf32>
    %95 = vector.broadcast %94 : vector<128x1xf32> to vector<128x32xf32>
    %96 = arith.mulf %93, %95 : vector<128x32xf32>
    %97 = vector.extract_strided_slice %1 {offsets = [13, 0], sizes = [1, 32], strides = [1, 1]} : vector<16x32xf32> to vector<1x32xf32>
    %98 = vector.broadcast %97 : vector<1x32xf32> to vector<128x32xf32>
    %99 = arith.mulf %0, %98 : vector<128x32xf32>
    %100 = vector.extract_strided_slice %9 {offsets = [0, 13], sizes = [128, 1], strides = [1, 1]} : vector<128x16xf32> to vector<128x1xf32>
    %101 = vector.broadcast %100 : vector<128x1xf32> to vector<128x32xf32>
    %102 = arith.mulf %99, %101 : vector<128x32xf32>
    %103 = vector.extract_strided_slice %1 {offsets = [14, 0], sizes = [1, 32], strides = [1, 1]} : vector<16x32xf32> to vector<1x32xf32>
    %104 = vector.broadcast %103 : vector<1x32xf32> to vector<128x32xf32>
    %105 = arith.mulf %0, %104 : vector<128x32xf32>
    %106 = vector.extract_strided_slice %9 {offsets = [0, 14], sizes = [128, 1], strides = [1, 1]} : vector<128x16xf32> to vector<128x1xf32>
    %107 = vector.broadcast %106 : vector<128x1xf32> to vector<128x32xf32>
    %108 = arith.mulf %105, %107 : vector<128x32xf32>
    %109 = vector.extract_strided_slice %1 {offsets = [15, 0], sizes = [1, 32], strides = [1, 1]} : vector<16x32xf32> to vector<1x32xf32>
    %110 = vector.broadcast %109 : vector<1x32xf32> to vector<128x32xf32>
    %111 = arith.mulf %0, %110 : vector<128x32xf32>
    %112 = vector.extract_strided_slice %9 {offsets = [0, 15], sizes = [128, 1], strides = [1, 1]} : vector<128x16xf32> to vector<128x1xf32>
    %113 = vector.broadcast %112 : vector<128x1xf32> to vector<128x32xf32>
    %114 = arith.mulf %111, %113 : vector<128x32xf32>
    %115 = tpu.concatenate %96, %102, %108, %114 in 1 : vector<128x32xf32>, vector<128x32xf32>, vector<128x32xf32>, vector<128x32xf32> -> vector<128x128xf32>
    %116 = arith.truncf %115 : vector<128x128xf32> to vector<128x128xbf16>
    %c0_9 = arith.constant 0 : index
    %c384 = arith.constant 384 : index
    %117 = vector.load %arg5[%c0_9, %c384] : memref<128x544xbf16, #tpu.memory_space<vmem>>, vector<128x128xbf16>
    tpu.vector_store %arg5[%c0_9, %c384], %116 {strides = array<i32>} : memref<128x544xbf16, #tpu.memory_space<vmem>>, vector<128x128xbf16>,
    %c0_10 = arith.constant 0 : index
    %c0_11 = arith.constant 0 : index
    %118 = vector.load %arg2[%c0_10, %c0_11] : memref<128x8xf32, #tpu.memory_space<vmem>>, vector<128x8xf32>
    %c0_12 = arith.constant 0 : index
    %c0_13 = arith.constant 0 : index
    %119 = vector.load %arg4[%c0_12, %c0_13] : memref<8x32xf32, #tpu.memory_space<vmem>>, vector<8x32xf32>
    %cst_14 = arith.constant dense<0.000000e+00> : vector<128x32xf32>
    %120 = tpu.matmul %118, %119, %cst_14 {dimension_numbers = #tpu.dot_dimension_numbers<[1], [0], [0], [1], [0, 0, 1, 1], [], []>} : vector<128x8xf32>, vector<8x32xf32>, vector<128x32xf32> -> vector<128x32xf32>
    %cst_15 = arith.constant 0.707106769 : f32
    %121 = vector.broadcast %cst_15 : f32 to vector<128x32xf32>
    %122 = arith.mulf %120, %121 : vector<128x32xf32>
    %123 = arith.truncf %122 : vector<128x32xf32> to vector<128x32xbf16>
    %c0_16 = arith.constant 0 : index
    %c512 = arith.constant 512 : index
    %124 = vector.load %arg5[%c0_16, %c512] : memref<128x544xbf16, #tpu.memory_space<vmem>>, vector<128x32xbf16>
    tpu.vector_store %arg5[%c0_16, %c512], %123 {strides = array<i32>} : memref<128x544xbf16, #tpu.memory_space<vmem>>, vector<128x32xbf16>,
    return
  }
  func.func @transform_0(%arg0: i32) -> (i32, i32) {
    %c0_i32 = arith.constant 0 : i32
    %c0_i32_0 = arith.constant 0 : i32
    return %arg0, %c0_i32 : i32, i32
  }
  func.func @transform_1(%arg0: i32) -> (i32, i32) {
    %c0_i32 = arith.constant 0 : i32
    %c0_i32_0 = arith.constant 0 : i32
    return %arg0, %c0_i32 : i32, i32
  }
  func.func @transform_2(%arg0: i32) -> (i32, i32) {
    %c0_i32 = arith.constant 0 : i32
    %c0_i32_0 = arith.constant 0 : i32
    %c0_i32_1 = arith.constant 0 : i32
    return %c0_i32, %c0_i32_0 : i32, i32
  }
  func.func @transform_3(%arg0: i32) -> (i32, i32) {
    %c0_i32 = arith.constant 0 : i32
    %c0_i32_0 = arith.constant 0 : i32
    %c0_i32_1 = arith.constant 0 : i32
    return %c0_i32, %c0_i32_0 : i32, i32
  }
  func.func @transform_4(%arg0: i32) -> (i32, i32) {
    %c0_i32 = arith.constant 0 : i32
    %c0_i32_0 = arith.constant 0 : i32
    return %arg0, %c0_i32 : i32, i32
  }
}

</mosaic_0001>

<bundles_post_ra>
// kernel: tpu_custom_call.1
= control target key start
LH: loop header
LB: loop body
LE: loop exit
PB: predicated region body
PF: predicated region fallthrough
CT: control target
= control target key end

     0   :  { %s4863_s15 = smov 0   ;;  %s7088_s0 = inlined_call_operand.vmem [shape: f32[256,32], index: 0, kind: input, shape index: {}]   ;;  %s7089_s1 = inlined_call_operand.vmem [shape: f32[256,8], index: 1, kind: input, shape index: {}]   ;;  %s7090_s2 = inlined_call_operand.vmem [shape: f32[16,32], index: 2, kind: input, shape index: {}]   ;;  %s7091_s3 = inlined_call_operand.vmem [shape: f32[8,32], index: 3, kind: input, shape index: {}]   ;;  %s7092_s4 = inlined_call_operand.vmem [shape: bf16[256,544], index: 4, kind: output, shape index: {}]  }
   0x1 LB: > { %s3785_s16 = sadd.s32 4294967295, %s4817_s15   ;;  %p3789_p0 = scmp.ge.s32.totalorder %s4817_s15, 1  ;;  %s4817_s15 = sphi %s4863_s15, %s14_s15  }
   0x2   : > { %p174_p1 = scmp.lt.s32.totalorder %s4817_s15, 3 }
   0x4   : > { %p175_p2 = pnand %p3789_p0, %p174_p1 }
   0x6   : > { %178 = sbr.rel (%p175_p2) target bundleno = 1333 (0x535), region = 36 }
   0xb   : > { %v242_v0 = vld [vmem:[%s7090_s2 + $0x8] sm:$0xff]  ;;  %vm261_vm0 = vcmask 261120   ;;  %v4877_v1 = vld [vmem:[%s7090_s2] sm:$0xff]  ;;  %s3790_s21 = sshll.u32 %s3785_s16, 4  ;;  %v7103_v28 = vmov 1   ;;  %v7101_v29 = vmov 0  }
   0xc   : > { %v260_v2 = vmul.f32 %v242_v0, %v242_v0  ;;  %v259_v3 = vmul.f32 %v4877_v1, %v4877_v1  ;;  %p207_p3 = scmp.lt.s32.totalorder %s3790_s21, 31  ;;  %4110 = vset.pattern.permute.xlu1 %v7103_v28  ;;  %4109 = vset.pattern.permute.xlu0 %v7101_v29  ;;  %v7097_v44 = vmov 3   ;;  %v7107_v45 = vmov 2   ;;  %s4828_s26 = smov 32  }
   0xd   : > { %v7093_v46 = vmov 5   ;;  %v7095_v47 = vmov 4   ;;  %v7099_v50 = vmov 7   ;;  %v7105_v51 = vmov 6   ;;  %s4829_s27 = smov 64   ;;  %s4830_s30 = smov 96  }
   0xe   : > { %4027 = vmatprep.subr.msk.mxu0 %vm261_vm0, %v260_v2  ;;  %s7361_s21 = smov (!%p207_p3, %s3790_s21), 31  ;;  %vm1133_vm1 = vcmask 523264   ;;  %vm1150_vm2 = vcmask 785408   ;;  %vm3424_vm3 = vcmask 64512   ;;  %vm3698_vm4 = vcmask 257024  }
   0xf   : > { %4028 = vmatpush3.xpose.msk.msra.mxu0 %vm261_vm0, %v260_v2  ;;  %s3791_s22 = sshll.u32 %s7361_s21, 3  ;;  %s4081_s5 = smul.u32 20, %s7361_s21 }
  0x10   : > { %4029 = vmatprep.subr.msk.mxu0 %vm261_vm0, %v259_v3  ;;  %s4892_s25 = scalar_lea.vmem %s7088_s0, %s3791_s22  ;;  %s6396_s16 = scalar_lea.vmem %s7089_s1, %s3791_s22 }
  0x11   : > { %v225_v4 = vld [vmem:[%s4892_s25] sm:$0xff]  ;;  %v226_v5 = vld [vmem:[%s4892_s25 + $0x8] sm:$0xff]  ;;  %v4897_v6 = vld [vmem:[%s4892_s25 + $0x10] sm:$0xff]  ;;  %s5859_s8 = scalar_lea.vmem %s7092_s4, %s4081_s5 }
  0x12   : > { %v243_v7 = vmul.f32 %v225_v4, %v225_v4  ;;  %v244_v8 = vmul.f32 %v226_v5, %v226_v5  ;;  %v245_v9 = vmul.f32 %v4897_v6, %v4897_v6  ;;  %v4903_v10 = vld [vmem:[%s4892_s25 + $0x18] sm:$0xff]  ;;  %v229_v11 = vld [vmem:[%s4892_s25 + $0x20] sm:$0xff]  ;;  %v230_v14 = vld [vmem:[%s4892_s25 + $0x28] sm:$0xff] }
  0x13   : > { %4030 = vmatpush3.xpose.msk.msra.mxu0 %vm261_vm0, %v259_v3  ;;  %v246_v12 = vmul.f32 %v4903_v10, %v4903_v10  ;;  %v247_v13 = vmul.f32 %v229_v11, %v229_v11  ;;  %v4913_v15 = vld [vmem:[%s4892_s25 + $0x30] sm:$0xff]  ;;  %v248_v16 = vmul.f32 %v230_v14, %v230_v14  ;;  %v4920_v18 = vld [vmem:[%s4892_s25 + $0x38] sm:$0xff]  ;;  %v233_v19 = vld [vmem:[%s4892_s25 + $0x40] sm:$0xff] }
  0x14   : > { %4031 = vmatprep.mubr.msk.f32.mxu0 %vm261_vm0, %v243_v7  ;;  %v249_v17 = vmul.f32 %v4913_v15, %v4913_v15  ;;  %v250_v20 = vmul.f32 %v4920_v18, %v4920_v18  ;;  %v251_v21 = vmul.f32 %v233_v19, %v233_v19  ;;  %v234_v22 = vld [vmem:[%s4892_s25 + $0x48] sm:$0xff]  ;;  %v235_v23 = vld [vmem:[%s4892_s25 + $0x50] sm:$0xff]  ;;  %v236_v26 = vld [vmem:[%s4892_s25 + $0x58] sm:$0xff] }
  0x15   : > { %v252_v24 = vmul.f32 %v234_v22, %v234_v22  ;;  %v253_v25 = vmul.f32 %v235_v23, %v235_v23  ;;  %v254_v27 = vmul.f32 %v236_v26, %v236_v26  ;;  %v237_v30 = vld [vmem:[%s4892_s25 + $0x60] sm:$0xff]  ;;  %v238_v31 = vld [vmem:[%s4892_s25 + $0x68] sm:$0xff]  ;;  %v239_v34 = vld [vmem:[%s4892_s25 + $0x70] sm:$0xff] }
  0x16   : > { %4032 = vmatmul.mubr.msk.f32.vlgmr.msra.gmra.mxu0 %vm261_vm0, %v244_v8  ;;  %v255_v32 = vmul.f32 %v237_v30, %v237_v30  ;;  %v256_v33 = vmul.f32 %v238_v31, %v238_v31  ;;  %v240_v35 = vld [vmem:[%s4892_s25 + $0x78] sm:$0xff]  ;;  %v257_v36 = vmul.f32 %v239_v34, %v239_v34 }
  0x17   : > { %4034 = vmatprep.mubr.msk.f32.mxu0 %vm261_vm0, %v245_v9  ;;  %v258_v37 = vmul.f32 %v240_v35, %v240_v35 }
  0x1a   : > { %4035 = vmatmul.mubr.msk.f32.gmra.mxu0 %vm261_vm0, %v246_v12 }
  0x1b   : > { %4037 = vmatprep.mubr.msk.f32.mxu0 %vm261_vm0, %v247_v13 }
  0x1e   : > { %4038 = vmatmul.mubr.msk.f32.gmra.mxu0 %vm261_vm0, %v248_v16 }
  0x1f   : > { %4040 = vmatprep.mubr.msk.f32.mxu0 %vm261_vm0, %v249_v17 }
  0x22   : > { %4041 = vmatmul.mubr.msk.f32.gmra.mxu0 %vm261_vm0, %v250_v20 }
  0x23   : > { %4043 = vmatprep.mubr.msk.f32.mxu0 %vm261_vm0, %v251_v21 }
  0x26   : > { %4044 = vmatmul.mubr.msk.f32.gmra.mxu0 %vm261_vm0, %v252_v24 }
  0x27   : > { %4046 = vmatprep.mubr.msk.f32.mxu0 %vm261_vm0, %v253_v25 }
  0x2a   : > { %4047 = vmatmul.mubr.msk.f32.gmra.mxu0 %vm261_vm0, %v254_v27 }
  0x2b   : > { %4049 = vmatprep.mubr.msk.f32.mxu0 %vm261_vm0, %v255_v32 }
  0x2e   : > { %4050 = vmatmul.mubr.msk.f32.gmra.mxu0 %vm261_vm0, %v256_v33 }
  0x2f   : > { %4052 = vmatprep.mubr.msk.f32.mxu0 %vm261_vm0, %v257_v36 }
  0x32   : > { %4053 = vmatmul.mubr.msk.f32.gmra.mxu0 %vm261_vm0, %v258_v37 }
  0xd6   : > { %v4033_v38 = vpop.f32.mrf.mxu0 }
  0xd7   : > { %v462_v39 = vmax.f32 %v4033_v38, 1e-24 }
  0xd8   : > { %v382_v40 = vpop.f32.mrf.mxu0 }
  0xd9   : > { %4728 = vrsqrt.f32 %v462_v39  ;;  %v461_v43 = vmax.f32 %v382_v40, 1e-24 }
  0xda   : > { %v4036_v48 = vpop.f32.mrf.mxu0 }
  0xdb   : > { %4730 = vrsqrt.f32 %v461_v43  ;;  %v464_v49 = vmax.f32 %v4036_v48, 1e-24 }
  0xdc   : > { %v392_v55 = vpop.f32.mrf.mxu0 }
  0xdd   : > { %4732 = vrsqrt.f32 %v464_v49  ;;  %v463_v57 = vmax.f32 %v392_v55, 1e-24 }
  0xde   : > { %v4039_v58 = vpop.f32.mrf.mxu0 }
  0xdf   : > { %4734 = vrsqrt.f32 %v463_v57  ;;  %v466_v59 = vmax.f32 %v4039_v58, 1e-24 }
  0xe0   : > { %v402_v63 = vpop.f32.mrf.mxu0 }
  0xe1   : > { %4736 = vrsqrt.f32 %v466_v59  ;;  %v465_v2 = vmax.f32 %v402_v63, 1e-24 }
  0xe2   : > { %v4042_v4 = vpop.f32.mrf.mxu0 }
  0xe3   : > { %4738 = vrsqrt.f32 %v465_v2  ;;  %v468_v7 = vmax.f32 %v4042_v4, 1e-24 }
  0xe4   : > { %v412_v9 = vpop.f32.mrf.mxu0 }
  0xe5   : > { %4740 = vrsqrt.f32 %v468_v7  ;;  %v467_v12 = vmax.f32 %v412_v9, 1e-24 }
  0xe6   : > { %v4729_v41 = vpop.eup %4728  ;;  %v4045_v14 = vpop.f32.mrf.mxu0 }
  0xe7   : > { %v4945_v42 = vmul.f32 0.17677669, %v4729_v41  ;;  %4742 = vrsqrt.f32 %v467_v12  ;;  %v470_v17 = vmax.f32 %v4045_v14, 1e-24 }
  0xe8   : > { %v4731_v52 = vpop.eup %4730  ;;  %v422_v23 = vpop.f32.mrf.mxu0 }
  0xe9   : > { %7162 = vst [vmem:[#allocation2_spill] sm:$0xff] %v4945_v42  ;;  %650 = vperm.xlu1 %4110, %v4945_v42   ;;  %536 = vperm.xlu0 %4109, %v4945_v42   ;;  %v4961_v53 = vmul.f32 0.17677669, %v4731_v52  ;;  %4744 = vrsqrt.f32 %v470_v17  ;;  %v469_v26 = vmax.f32 %v422_v23, 1e-24 }
  0xea   : > { %v4733_v54 = vpop.eup %4732  ;;  %v4048_v37 = vpop.f32.mrf.mxu0 }
  0xeb   : > { %v4975_v56 = vmul.f32 0.17677669, %v4733_v54  ;;  %4746 = vrsqrt.f32 %v469_v26  ;;  %v472_v43 = vmax.f32 %v4048_v37, 1e-24 }
  0xec   : > { %v4735_v60 = vpop.eup %4734  ;;  %v432_v55 = vpop.f32.mrf.mxu0 }
  0xed   : > { %4112 = vset.pattern.permute.xlu1 %v7097_v44  ;;  %4111 = vset.pattern.permute.xlu0 %v7107_v45  ;;  %7163 = vst [vmem:[#allocation3_spill] sm:$0xff] %v4975_v56  ;;  %v4993_v61 = vmul.f32 0.17677669, %v4735_v60  ;;  %4748 = vrsqrt.f32 %v472_v43  ;;  %v471_v59 = vmax.f32 %v432_v55, 1e-24 }
  0xee   : > { %850 = vperm.xlu1 %4112, %v4945_v42   ;;  %750 = vperm.xlu0 %4111, %v4945_v42   ;;  %v4737_v62 = vpop.eup %4736  ;;  %v4051_v9 = vpop.f32.mrf.mxu0 }
  0xef   : > { %v5003_v0 = vmul.f32 0.17677669, %v4737_v62  ;;  %4750 = vrsqrt.f32 %v471_v59  ;;  %v474_v23 = vmax.f32 %v4051_v9, 1e-24 }
  0xf0   : > { %v4739_v3 = vpop.eup %4738  ;;  %v442_v43 = vpop.f32.mrf.mxu0 }
  0xf1   : > { %7164 = vst [vmem:[#allocation4_spill] sm:$0xff] %v5003_v0  ;;  %v5021_v5 = vmul.f32 0.17677669, %v4739_v3  ;;  %4752 = vrsqrt.f32 %v474_v23 }
  0xf2   : > { %4114 = vset.pattern.permute.xlu1 %v7093_v46  ;;  %4113 = vset.pattern.permute.xlu0 %v7095_v47  ;;  %v4741_v8 = vpop.eup %4740 }
  0xf3   : > { %1372 = vperm.xlu1 %4114, %v4945_v42   ;;  %1272 = vperm.xlu0 %4113, %v4945_v42   ;;  %v5039_v11 = vmul.f32 0.17677669, %v4741_v8 }
  0xf4   : > { %v4743_v13 = vpop.eup %4742 }
  0xf5   : > { %7165 = vst [vmem:[#allocation5_spill] sm:$0xff] %v5039_v11  ;;  %v5057_v16 = vmul.f32 0.17677669, %v4743_v13 }
  0xf6   : > { %v4745_v27 = vpop.eup %4744 }
  0xf7   : > { %4116 = vset.pattern.permute.xlu1 %v7099_v50  ;;  %4115 = vset.pattern.permute.xlu0 %v7105_v51  ;;  %7166 = vst [vmem:[#allocation6_spill] sm:$0xff] %v5057_v16  ;;  %v5091_v32 = vmul.f32 0.17677669, %v4745_v27 }
  0xf8   : > { %1572 = vperm.xlu1 %4116, %v4945_v42   ;;  %1472 = vperm.xlu0 %4115, %v4945_v42   ;;  %v4747_v38 = vpop.eup %4746 }
  0xf9   : > { %7170 = vst [vmem:[#allocation10_spill] sm:$0xff] %v5091_v32  ;;  %v5117_v41 = vmul.f32 0.17677669, %v4747_v38 }
  0xfa   : > { %v4749_v60 = vpop.eup %4748 }
  0xfb   : > { %7173 = vst [vmem:[#allocation13_spill] sm:$0xff] %v5117_v41  ;;  %v5151_v2 = vmul.f32 0.17677669, %v4749_v60  ;;  %v473_v60 = vmax.f32 %v442_v43, 1e-24 }
  0xfc   : > { %4119 = vset.pattern.permute.xlu1 %v7107_v45  ;;  %4117 = vset.pattern.permute.xlu0 %v7101_v29  ;;  %v4751_v12 = vpop.eup %4750 }
  0xfd   : > { %746 = vperm.xlu1 %4119, %v4961_v53   ;;  %531 = vperm.xlu0 %4117, %v4961_v53   ;;  %7177 = vst [vmem:[#allocation17_spill] sm:$0xff] %v5151_v2  ;;  %v5177_v17 = vmul.f32 0.17677669, %v4751_v12  ;;  %4754 = vrsqrt.f32 %v473_v60  ;;  %v7190_v60 = vmov 3  }
  0xfe   : > { %v4753_v9 = vpop.eup %4752 }
  0xff   : > { %7180 = vst [vmem:[#allocation20_spill] sm:$0xff] %v5177_v17 }
 0x101   : > { %4121 = vset.pattern.permute.xlu1 %v7095_v47  ;;  %4118 = vset.pattern.permute.xlu0 %v7103_v28 }
 0x102   : > { %1268 = vperm.xlu1 %4121, %v4961_v53   ;;  %646 = vperm.xlu0 %4118, %v4961_v53  }
 0x106   : > { %4123 = vset.pattern.permute.xlu1 %v7105_v51  ;;  %4120 = vset.pattern.permute.xlu0 %v7097_v44 }
 0x107   : > { %1468 = vperm.xlu1 %4123, %v4961_v53   ;;  %846 = vperm.xlu0 %4120, %v4961_v53  }
 0x10b   : > { %4125 = vset.pattern.permute.xlu1 %v7101_v29  ;;  %4122 = vset.pattern.permute.xlu0 %v7093_v46 }
 0x10c   : > { %1368 = vperm.xlu0 %4122, %v4961_v53   ;;  %546 = vperm.xlu1 %4125, %v4975_v56  }
 0x110   : > { %4124 = vset.pattern.permute.xlu0 %v7099_v50  ;;  %4127 = vset.pattern.permute.xlu1 %v7107_v45 }
 0x111   : > { %1568 = vperm.xlu0 %4124, %v4961_v53   ;;  %758 = vperm.xlu1 %4127, %v4975_v56  }
 0x115   : > { %4126 = vset.pattern.permute.xlu0 %v7103_v28  ;;  %4129 = vset.pattern.permute.xlu1 %v7095_v47 }
 0x116   : > { %658 = vperm.xlu0 %4126, %v4975_v56   ;;  %1280 = vperm.xlu1 %4129, %v4975_v56  }
 0x11a   : > { %4128 = vset.pattern.permute.xlu0 %v7097_v44  ;;  %4131 = vset.pattern.permute.xlu1 %v7105_v51 }
 0x11b   : > { %858 = vperm.xlu0 %4128, %v4975_v56   ;;  %1480 = vperm.xlu1 %4131, %v4975_v56  }
 0x11f   : > { %4130 = vset.pattern.permute.xlu0 %v7093_v46  ;;  %4133 = vset.pattern.permute.xlu1 %v7101_v29 }
 0x120   : > { %1380 = vperm.xlu0 %4130, %v4975_v56   ;;  %541 = vperm.xlu1 %4133, %v4993_v61  }
 0x124   : > { %4132 = vset.pattern.permute.xlu0 %v7099_v50  ;;  %4134 = vset.pattern.permute.xlu1 %v7103_v28 }
 0x125   : > { %1580 = vperm.xlu0 %4132, %v4975_v56   ;;  %654 = vperm.xlu1 %4134, %v4993_v61  }
 0x129   : > { %4142 = vset.pattern.permute.xlu0 %v7103_v28  ;;  %4135 = vset.pattern.permute.xlu1 %v7107_v45 }
 0x12a   : > { %754 = vperm.xlu1 %4135, %v4993_v61   ;;  %666 = vperm.xlu0 %4142, %v5003_v0  }
 0x12e   : > { %4136 = vset.pattern.permute.xlu1 %v7097_v44  ;;  %4144 = vset.pattern.permute.xlu0 %v7097_v44 }
 0x12f   : > { %854 = vperm.xlu1 %4136, %v4993_v61   ;;  %866 = vperm.xlu0 %4144, %v5003_v0  }
 0x133   : > { %4137 = vset.pattern.permute.xlu1 %v7095_v47  ;;  %4146 = vset.pattern.permute.xlu0 %v7093_v46 }
 0x134   : > { %1276 = vperm.xlu1 %4137, %v4993_v61   ;;  %1388 = vperm.xlu0 %4146, %v5003_v0  }
 0x138   : > { %4138 = vset.pattern.permute.xlu1 %v7093_v46  ;;  %4148 = vset.pattern.permute.xlu0 %v7099_v50 }
 0x139   : > { %1376 = vperm.xlu1 %4138, %v4993_v61   ;;  %1588 = vperm.xlu0 %4148, %v5003_v0  }
 0x13d   : > { %4139 = vset.pattern.permute.xlu1 %v7105_v51  ;;  %4149 = vset.pattern.permute.xlu0 %v7101_v29 }
 0x13e   : > { %1476 = vperm.xlu1 %4139, %v4993_v61   ;;  %551 = vperm.xlu0 %4149, %v5021_v5  }
 0x142   : > { %4140 = vset.pattern.permute.xlu1 %v7099_v50  ;;  %4151 = vset.pattern.permute.xlu0 %v7107_v45 }
 0x143   : > { %1576 = vperm.xlu1 %4140, %v4993_v61   ;;  %762 = vperm.xlu0 %4151, %v5021_v5  }
 0x147   : > { %4141 = vset.pattern.permute.xlu1 %v7101_v29  ;;  %4153 = vset.pattern.permute.xlu0 %v7095_v47 }
 0x148   : > { %556 = vperm.xlu1 %4141, %v5003_v0   ;;  %1284 = vperm.xlu0 %4153, %v5021_v5  }
 0x14c   : > { %4143 = vset.pattern.permute.xlu1 %v7107_v45  ;;  %4155 = vset.pattern.permute.xlu0 %v7105_v51 }
 0x14d   : > { %766 = vperm.xlu1 %4143, %v5003_v0   ;;  %1484 = vperm.xlu0 %4155, %v5021_v5  }
 0x151   : > { %4145 = vset.pattern.permute.xlu1 %v7095_v47  ;;  %4158 = vset.pattern.permute.xlu0 %v7103_v28 }
 0x152   : > { %1288 = vperm.xlu1 %4145, %v5003_v0   ;;  %674 = vperm.xlu0 %4158, %v5039_v11  }
 0x156   : > { %4147 = vset.pattern.permute.xlu1 %v7105_v51  ;;  %4160 = vset.pattern.permute.xlu0 %v7097_v44 }
 0x157   : > { %1488 = vperm.xlu1 %4147, %v5003_v0   ;;  %874 = vperm.xlu0 %4160, %v5039_v11  }
 0x15b   : > { %4150 = vset.pattern.permute.xlu1 %v7103_v28  ;;  %4162 = vset.pattern.permute.xlu0 %v7093_v46 }
 0x15c   : > { %662 = vperm.xlu1 %4150, %v5021_v5   ;;  %1396 = vperm.xlu0 %4162, %v5039_v11  }
 0x160   : > { %4152 = vset.pattern.permute.xlu1 %v7097_v44  ;;  %4164 = vset.pattern.permute.xlu0 %v7099_v50 }
 0x161   : > { %862 = vperm.xlu1 %4152, %v5021_v5   ;;  %1596 = vperm.xlu0 %4164, %v5039_v11  }
 0x164   : > { %v5059_v19 = vpop.permute.xlu1 %650  ;;  %v5061_v20 = vpop.permute.xlu0 %536 }
 0x165   : > { %7167 = vst [vmem:[#allocation7_spill] sm:$0xff] %v5061_v20  ;;  %4154 = vset.pattern.permute.xlu1 %v7093_v46  ;;  %4165 = vset.pattern.permute.xlu0 %v7101_v29 }
 0x166   : > { %1384 = vperm.xlu1 %4154, %v5021_v5   ;;  %561 = vperm.xlu0 %4165, %v5057_v16  }
 0x169   : > { %v5067_v21 = vpop.permute.xlu1 %850  ;;  %v5069_v22 = vpop.permute.xlu0 %750 }
 0x16a   : > { %4156 = vset.pattern.permute.xlu1 %v7099_v50  ;;  %4167 = vset.pattern.permute.xlu0 %v7107_v45 }
 0x16b   : > { %1584 = vperm.xlu1 %4156, %v5021_v5   ;;  %770 = vperm.xlu0 %4167, %v5057_v16  }
 0x16e   : > { %v5075_v24 = vpop.permute.xlu1 %1372  ;;  %v5077_v25 = vpop.permute.xlu0 %1272 }
 0x16f   : > { %7168 = vst [vmem:[#allocation8_spill] sm:$0xff] %v5077_v25  ;;  %4157 = vset.pattern.permute.xlu1 %v7101_v29  ;;  %4169 = vset.pattern.permute.xlu0 %v7095_v47 }
 0x170   : > { %566 = vperm.xlu1 %4157, %v5039_v11   ;;  %1292 = vperm.xlu0 %4169, %v5057_v16  }
 0x173   : > { %v5083_v30 = vpop.permute.xlu1 %1572  ;;  %v5085_v31 = vpop.permute.xlu0 %1472 }
 0x174   : > { %7169 = vst [vmem:[#allocation9_spill] sm:$0xff] %v5083_v30  ;;  %4159 = vset.pattern.permute.xlu1 %v7107_v45  ;;  %4171 = vset.pattern.permute.xlu0 %v7105_v51 }
 0x175   : > { %774 = vperm.xlu1 %4159, %v5039_v11   ;;  %1492 = vperm.xlu0 %4171, %v5057_v16  }
 0x178   : > { %v5093_v33 = vpop.permute.xlu1 %746  ;;  %v5095_v34 = vpop.permute.xlu0 %531 }
 0x179   : > { %7171 = vst [vmem:[#allocation11_spill] sm:$0xff] %v5095_v34  ;;  %4161 = vset.pattern.permute.xlu1 %v7095_v47  ;;  %4174 = vset.pattern.permute.xlu0 %v7103_v28 }
 0x17a   : > { %1296 = vperm.xlu1 %4161, %v5039_v11   ;;  %682 = vperm.xlu0 %4174, %v5091_v32  }
 0x17d   : > { %v5101_v35 = vpop.permute.xlu1 %1268  ;;  %v5103_v36 = vpop.permute.xlu0 %646 }
 0x17e   : > { %7172 = vst [vmem:[#allocation12_spill] sm:$0xff] %v5101_v35  ;;  %4163 = vset.pattern.permute.xlu1 %v7105_v51  ;;  %4176 = vset.pattern.permute.xlu0 %v7097_v44  ;;  %v7194_v35 = vmov 5  }
 0x17f   : > { %1496 = vperm.xlu1 %4163, %v5039_v11   ;;  %882 = vperm.xlu0 %4176, %v5091_v32  }
 0x182   : > { %v5109_v39 = vpop.permute.xlu1 %1468  ;;  %v5111_v40 = vpop.permute.xlu0 %846 }
 0x183   : > { %4166 = vset.pattern.permute.xlu1 %v7103_v28  ;;  %4178 = vset.pattern.permute.xlu0 %v7093_v46 }
 0x184   : > { %670 = vperm.xlu1 %4166, %v5057_v16   ;;  %1404 = vperm.xlu0 %4178, %v5091_v32  }
 0x187   : > { %v5119_v48 = vpop.permute.xlu0 %1368  ;;  %v5121_v49 = vpop.permute.xlu1 %546 }
 0x188   : > { %7174 = vst [vmem:[#allocation14_spill] sm:$0xff] %v5121_v49  ;;  %4168 = vset.pattern.permute.xlu1 %v7097_v44  ;;  %4180 = vset.pattern.permute.xlu0 %v7101_v29 }
 0x189   : > { %870 = vperm.xlu1 %4168, %v5057_v16   ;;  %571 = vperm.xlu0 %4180, %v5117_v41  }
 0x18c   : > { %v5127_v52 = vpop.permute.xlu0 %1568  ;;  %v5129_v54 = vpop.permute.xlu1 %758 }
 0x18d   : > { %7175 = vst [vmem:[#allocation15_spill] sm:$0xff] %v5127_v52  ;;  %4170 = vset.pattern.permute.xlu1 %v7093_v46  ;;  %4182 = vset.pattern.permute.xlu0 %v7107_v45 }
 0x18e   : > { %1392 = vperm.xlu1 %4170, %v5057_v16   ;;  %778 = vperm.xlu0 %4182, %v5117_v41  }
 0x191   : > { %v5135_v57 = vpop.permute.xlu0 %658  ;;  %v5137_v58 = vpop.permute.xlu1 %1280 }
 0x192   : > { %7176 = vst [vmem:[#allocation16_spill] sm:$0xff] %v5137_v58  ;;  %4172 = vset.pattern.permute.xlu1 %v7099_v50  ;;  %4184 = vset.pattern.permute.xlu0 %v7095_v47 }
 0x193   : > { %1592 = vperm.xlu1 %4172, %v5057_v16   ;;  %1300 = vperm.xlu0 %4184, %v5117_v41   ;;  %v7198_v16 = vmov 0  }
 0x196   : > { %v5143_v62 = vpop.permute.xlu0 %858  ;;  %v5145_v63 = vpop.permute.xlu1 %1480 }
 0x197   : > { %4173 = vset.pattern.permute.xlu1 %v7101_v29  ;;  %4186 = vset.pattern.permute.xlu0 %v7105_v51 }
 0x198   : > { %576 = vperm.xlu1 %4173, %v5091_v32   ;;  %1500 = vperm.xlu0 %4186, %v5117_v41  }
 0x19b   : > { %v5153_v3 = vpop.permute.xlu0 %1380  ;;  %v5155_v4 = vpop.permute.xlu1 %541 }
 0x19c   : > { %7178 = vst [vmem:[#allocation18_spill] sm:$0xff] %v5155_v4  ;;  %4175 = vset.pattern.permute.xlu1 %v7107_v45  ;;  %4189 = vset.pattern.permute.xlu0 %v7103_v28 }
 0x19d   : > { %782 = vperm.xlu1 %4175, %v5091_v32   ;;  %690 = vperm.xlu0 %4189, %v5151_v2  }
 0x1a0   : > { %v5161_v7 = vpop.permute.xlu1 %654  ;;  %v5163_v8 = vpop.permute.xlu0 %1580 }
 0x1a1   : > { %4177 = vset.pattern.permute.xlu1 %v7095_v47  ;;  %4191 = vset.pattern.permute.xlu0 %v7097_v44 }
 0x1a2   : > { %1304 = vperm.xlu1 %4177, %v5091_v32   ;;  %890 = vperm.xlu0 %4191, %v5151_v2  }
 0x1a5   : > { %v5169_v13 = vpop.permute.xlu1 %754  ;;  %v5171_v14 = vpop.permute.xlu0 %666 }
 0x1a6   : > { %7179 = vst [vmem:[#allocation19_spill] sm:$0xff] %v5171_v14  ;;  %4179 = vset.pattern.permute.xlu1 %v7105_v51  ;;  %4193 = vset.pattern.permute.xlu0 %v7093_v46 }
 0x1a7   : > { %1504 = vperm.xlu1 %4179, %v5091_v32   ;;  %1412 = vperm.xlu0 %4193, %v5151_v2  }
 0x1aa   : > { %v5179_v26 = vpop.permute.xlu1 %854  ;;  %v5181_v27 = vpop.permute.xlu0 %866 }
 0x1ab   : > { %7181 = vst [vmem:[#allocation21_spill] sm:$0xff] %v5181_v27  ;;  %4181 = vset.pattern.permute.xlu1 %v7103_v28  ;;  %4195 = vset.pattern.permute.xlu0 %v7101_v29 }
 0x1ac   : > { %678 = vperm.xlu1 %4181, %v5117_v41   ;;  %581 = vperm.xlu0 %4195, %v5177_v17  }
 0x1af   : > { %v5187_v37 = vpop.permute.xlu1 %1276  ;;  %v5189_v38 = vpop.permute.xlu0 %1388 }
 0x1b0   : > { %7182 = vst [vmem:[#allocation22_spill] sm:$0xff] %v5187_v37  ;;  %7183 = vst [vmem:[#allocation23_spill] sm:$0xff] %v5189_v38  ;;  %4183 = vset.pattern.permute.xlu1 %v7097_v44  ;;  %4197 = vset.pattern.permute.xlu0 %v7107_v45 }
 0x1b1   : > { %878 = vperm.xlu1 %4183, %v5117_v41   ;;  %786 = vperm.xlu0 %4197, %v5177_v17  }
 0x1b4   : > { %v5195_v55 = vpop.permute.xlu1 %1376  ;;  %v5197_v59 = vpop.permute.xlu0 %1588 }
 0x1b5   : > { %7184 = vst [vmem:[#allocation24_spill] sm:$0xff] %v5197_v59  ;;  %4185 = vset.pattern.permute.xlu1 %v7093_v46  ;;  %4199 = vset.pattern.permute.xlu0 %v7095_v47  ;;  %v5211_v46 = vmul.f32 0.17677669, %v4753_v9  ;;  %v4755_v9 = vpop.eup %4754 }
 0x1b6   : > { %1400 = vperm.xlu1 %4185, %v5117_v41   ;;  %1308 = vperm.xlu0 %4199, %v5177_v17  }
 0x1b7   : > { %7186 = vst [vmem:[#allocation26_spill] sm:$0xff] %v5211_v46 }
 0x1b9   : > { %v5203_v12 = vpop.permute.xlu1 %1476  ;;  %v5205_v23 = vpop.permute.xlu0 %551 }
 0x1ba   : > { %7185 = vst [vmem:[#allocation25_spill] sm:$0xff] %v5205_v23  ;;  %4187 = vset.pattern.permute.xlu1 %v7099_v50  ;;  %4201 = vset.pattern.permute.xlu0 %v7105_v51  ;;  %v7193_v23 = vmov 4  }
 0x1bb   : > { %1600 = vperm.xlu1 %4187, %v5117_v41   ;;  %1508 = vperm.xlu0 %4201, %v5177_v17   ;;  %v7197_v41 = vmov 6  }
 0x1be   : > { %v5213_v47 = vpop.permute.xlu1 %1576  ;;  %v5215_v44 = vpop.permute.xlu0 %762 }
 0x1bf   : > { %7187 = vst [vmem:[#allocation27_spill] sm:$0xff] %v5215_v44  ;;  %4188 = vset.pattern.permute.xlu1 %v7101_v29  ;;  %4203 = vset.pattern.permute.xlu0 %v7103_v28  ;;  %v4054_v28 = vpop.f32.mrf.mxu0  ;;  %v7215_v44 = vmov 7  }
 0x1c0   : > { %586 = vperm.xlu1 %4188, %v5151_v2   ;;  %698 = vperm.xlu0 %4203, %v5211_v46  }
 0x1c3   : > { %v5221_v43 = vpop.permute.xlu1 %556  ;;  %v5223_v50 = vpop.permute.xlu0 %1284 }
 0x1c4   : > { %7188 = vst [vmem:[#allocation28_spill] sm:$0xff] %v5221_v43  ;;  %7189 = vst [vmem:[#allocation29_spill] sm:$0xff] %v5223_v50  ;;  %4190 = vset.pattern.permute.xlu1 %v7107_v45  ;;  %4205 = vset.pattern.permute.xlu0 %v7190_v60  ;;  %v5237_v45 = vmul.f32 0.17677669, %v4755_v9  ;;  %v476_v50 = vmax.f32 %v4054_v28, 1e-24 }
 0x1c5   : > { %790 = vperm.xlu1 %4190, %v5151_v2   ;;  %898 = vperm.xlu0 %4205, %v5211_v46   ;;  %v7200_v9 = vmov 1   ;;  %v7201_v28 = vmov 2  }
 0x1c6   : > { %7195 = vst [vmem:[#allocation32_spill] sm:$0xff] %v5237_v45  ;;  %4756 = vrsqrt.f32 %v476_v50 }
 0x1c8   : > { %v5229_v29 = vpop.permute.xlu1 %766  ;;  %v5231_v51 = vpop.permute.xlu0 %1484 }
 0x1c9   : > { %7191 = vst [vmem:[#allocation30_spill] sm:$0xff] %v5229_v29  ;;  %7192 = vst [vmem:[#allocation31_spill] sm:$0xff] %v5231_v51  ;;  %4192 = vset.pattern.permute.xlu1 %v7193_v23  ;;  %4207 = vset.pattern.permute.xlu0 %v7194_v35 }
 0x1ca   : > { %1312 = vperm.xlu1 %4192, %v5151_v2   ;;  %1420 = vperm.xlu0 %4207, %v5211_v46  }
 0x1cd   : > { %v5239_v43 = vpop.permute.xlu1 %1288  ;;  %v5241_v25 = vpop.permute.xlu0 %674 }
 0x1ce   : > { %7196 = vst [vmem:[#allocation33_spill] sm:$0xff] %v5239_v43  ;;  %4194 = vset.pattern.permute.xlu1 %v7197_v41  ;;  %4209 = vset.pattern.permute.xlu0 %v7198_v16  ;;  %v452_v43 = vpop.f32.mrf.mxu0 }
 0x1cf   : > { %1512 = vperm.xlu1 %4194, %v5151_v2   ;;  %591 = vperm.xlu0 %4209, %v5237_v45   ;;  %v475_v50 = vmax.f32 %v452_v43, 1e-24 }
 0x1d1   : > { %4758 = vrsqrt.f32 %v475_v50 }
 0x1d2   : > { %v5247_v34 = vpop.permute.xlu1 %1488  ;;  %v5249_v20 = vpop.permute.xlu0 %874 }
 0x1d3   : > { %7199 = vst [vmem:[#allocation34_spill] sm:$0xff] %v5247_v34  ;;  %4196 = vset.pattern.permute.xlu1 %v7200_v9  ;;  %4211 = vset.pattern.permute.xlu0 %v7201_v28  ;;  %v4757_v37 = vpop.eup %4756 }
 0x1d4   : > { %686 = vperm.xlu1 %4196, %v5177_v17   ;;  %794 = vperm.xlu0 %4211, %v5237_v45   ;;  %v5271_v49 = vmul.f32 0.17677669, %v4757_v37 }
 0x1d6   : > { %7204 = vst [vmem:[#allocation37_spill] sm:$0xff] %v5271_v49 }
 0x1d7   : > { %v5255_v11 = vpop.permute.xlu1 %662  ;;  %v5257_v0 = vpop.permute.xlu0 %1396 }
 0x1d8   : > { %7202 = vst [vmem:[#allocation35_spill] sm:$0xff] %v5255_v11  ;;  %4198 = vset.pattern.permute.xlu1 %v7190_v60  ;;  %4213 = vset.pattern.permute.xlu0 %v7193_v23 }
 0x1d9   : > { %886 = vperm.xlu1 %4198, %v5177_v17   ;;  %1316 = vperm.xlu0 %4213, %v5237_v45  }
 0x1dc   : > { %v5263_v58 = vpop.permute.xlu1 %862  ;;  %v5265_v4 = vpop.permute.xlu0 %1596 }
 0x1dd   : > { %7203 = vst [vmem:[#allocation36_spill] sm:$0xff] %v5263_v58  ;;  %4200 = vset.pattern.permute.xlu1 %v7194_v35  ;;  %4215 = vset.pattern.permute.xlu0 %v7197_v41 }
 0x1de   : > { %1408 = vperm.xlu1 %4200, %v5177_v17   ;;  %1516 = vperm.xlu0 %4215, %v5237_v45   ;;  %v4759_v37 = vpop.eup %4758 }
 0x1e1   : > { %v5273_v59 = vpop.permute.xlu1 %1384  ;;  %v5275_v51 = vpop.permute.xlu0 %561 }
 0x1e2   : > { %7205 = vst [vmem:[#allocation38_spill] sm:$0xff] %v5273_v59  ;;  %7206 = vst [vmem:[#allocation39_spill] sm:$0xff] %v5275_v51  ;;  %4202 = vset.pattern.permute.xlu1 %v7198_v16  ;;  %4217 = vset.pattern.permute.xlu0 %v7200_v9 }
 0x1e3   : > { %596 = vperm.xlu1 %4202, %v5211_v46   ;;  %706 = vperm.xlu0 %4217, %v5271_v49  }
 0x1e6   : > { %v5281_v43 = vpop.permute.xlu1 %1584  ;;  %v5283_v34 = vpop.permute.xlu0 %770 }
 0x1e7   : > { %7207 = vst [vmem:[#allocation40_spill] sm:$0xff] %v5281_v43  ;;  %4204 = vset.pattern.permute.xlu1 %v7201_v28  ;;  %4219 = vset.pattern.permute.xlu0 %v7190_v60  ;;  %v5297_v43 = vmul.f32 0.17677669, %v4759_v37 }
 0x1e8   : > { %798 = vperm.xlu1 %4204, %v5211_v46   ;;  %906 = vperm.xlu0 %4219, %v5271_v49  }
 0x1eb   : > { %v5289_v50 = vpop.permute.xlu1 %566  ;;  %v5291_v51 = vpop.permute.xlu0 %1292 }
 0x1ec   : > { %7208 = vst [vmem:[#allocation41_spill] sm:$0xff] %v5289_v50  ;;  %7209 = vst [vmem:[#allocation42_spill] sm:$0xff] %v5291_v51  ;;  %4206 = vset.pattern.permute.xlu1 %v7193_v23  ;;  %4221 = vset.pattern.permute.xlu0 %v7194_v35 }
 0x1ed   : > { %1320 = vperm.xlu1 %4206, %v5211_v46   ;;  %1428 = vperm.xlu0 %4221, %v5271_v49  }
 0x1f0   : > { %v5299_v38 = vpop.permute.xlu1 %774  ;;  %v5301_v59 = vpop.permute.xlu0 %1492 }
 0x1f1   : > { %4208 = vset.pattern.permute.xlu1 %v7197_v41  ;;  %4223 = vset.pattern.permute.xlu0 %v7198_v16 }
 0x1f2   : > { %1520 = vperm.xlu1 %4208, %v5211_v46   ;;  %601 = vperm.xlu0 %4223, %v5297_v43  }
 0x1f5   : > { %v5307_v51 = vpop.permute.xlu1 %1296  ;;  %v5309_v50 = vpop.permute.xlu0 %682 }
 0x1f6   : > { %7210 = vst [vmem:[#allocation43_spill] sm:$0xff] %v5307_v51  ;;  %7211 = vst [vmem:[#allocation44_spill] sm:$0xff] %v5309_v50  ;;  %4210 = vset.pattern.permute.xlu1 %v7200_v9  ;;  %4225 = vset.pattern.permute.xlu0 %v7201_v28 }
 0x1f7   : > { %694 = vperm.xlu1 %4210, %v5237_v45   ;;  %802 = vperm.xlu0 %4225, %v5297_v43  }
 0x1fa   : > { %v5315_v37 = vpop.permute.xlu1 %1496  ;;  %v5317_v27 = vpop.permute.xlu0 %882 }
 0x1fb   : > { %7212 = vst [vmem:[#allocation45_spill] sm:$0xff] %v5317_v27  ;;  %4212 = vset.pattern.permute.xlu1 %v7190_v60  ;;  %4227 = vset.pattern.permute.xlu0 %v7193_v23 }
 0x1fc   : > { %894 = vperm.xlu1 %4212, %v5237_v45   ;;  %1324 = vperm.xlu0 %4227, %v5297_v43  }
 0x1ff   : > { %v5323_v51 = vpop.permute.xlu1 %670  ;;  %v5325_v50 = vpop.permute.xlu0 %1404 }
 0x200   : > { %7213 = vst [vmem:[#allocation46_spill] sm:$0xff] %v5325_v50  ;;  %4214 = vset.pattern.permute.xlu1 %v7194_v35  ;;  %4229 = vset.pattern.permute.xlu0 %v7197_v41  ;;  %v509_v50 = vlaneseq }
 0x201   : > { %1416 = vperm.xlu1 %4214, %v5237_v45   ;;  %1524 = vperm.xlu0 %4229, %v5297_v43  }
 0x202   : > { %v5345_v11 = vshrl.u32 %v509_v50, 7 }
 0x204   : > { %v5331_v27 = vpop.permute.xlu1 %870  ;;  %v5333_v58 = vpop.permute.xlu0 %571  ;;  %7217 = vst [vmem:[#allocation49_spill] sm:$0xff] %v5345_v11  ;;  %v7127_v50 = vsub.s32 2, %v5345_v11 }
 0x205   : > { %7214 = vst [vmem:[#allocation47_spill] sm:$0xff] %v5333_v58  ;;  %4216 = vset.pattern.permute.xlu1 %v7198_v16  ;;  %4230 = vset.pattern.permute.xlu0 %v7215_v44 }
 0x206   : > { %606 = vperm.xlu1 %4216, %v5271_v49   ;;  %1604 = vperm.xlu0 %4230, %v5091_v32   ;;  %v7123_v32 = vsub.s32 1, %v5345_v11 }
 0x209   : > { %v5339_v29 = vpop.permute.xlu1 %1392  ;;  %v5341_v14 = vpop.permute.xlu0 %778 }
 0x20a   : > { %7216 = vst [vmem:[#allocation48_spill] sm:$0xff] %v5341_v14  ;;  %4218 = vset.pattern.permute.xlu1 %v7201_v28  ;;  %1612 = vperm.xlu0 %4230, %v5151_v2   ;;  %v5360_v28 = vrot.slane %v4877_v1, %v7123_v32  ;;  %v7130_v14 = vsub.s32 3, %v5345_v11  ;;  %v5376_v32 = vrot.slane %v4877_v1, %v7127_v50 }
 0x20b   : > { %806 = vperm.xlu1 %4218, %v5271_v49  }
 0x20c   : > { %v5393_v50 = vrot.slane %v4877_v1, %v7130_v14 }
 0x20e   : > { %v5348_v16 = vpop.permute.xlu1 %1592  ;;  %v5350_v58 = vpop.permute.xlu0 %1300  ;;  %1620 = vperm.xlu0 %4230, %v5211_v46   ;;  %v7126_v46 = vmov 8  }
 0x20f   : > { %7218 = vst [vmem:[#allocation50_spill] sm:$0xff] %v5350_v58  ;;  %4220 = vset.pattern.permute.xlu1 %v7193_v23  ;;  %v631_v23 = vmul.f32 %v5360_v28, %v4897_v6 }
 0x210   : > { %1328 = vperm.xlu1 %4220, %v5271_v49  }
 0x212   : > { %1628 = vperm.xlu0 %4230, %v5271_v49  }
 0x213   : > { %v5363_v2 = vpop.permute.xlu1 %576  ;;  %v5365_v58 = vpop.permute.xlu0 %1500 }
 0x214   : > { %7219 = vst [vmem:[#allocation51_spill] sm:$0xff] %v5363_v2  ;;  %7220 = vst [vmem:[#allocation52_spill] sm:$0xff] %v5365_v58  ;;  %4222 = vset.pattern.permute.xlu1 %v7197_v41  ;;  %v632_v2 = vmul.f32 %v5360_v28, %v4903_v10 }
 0x215   : > { %1528 = vperm.xlu1 %4222, %v5271_v49   ;;  %v711_v49 = vmul.f32 %v5161_v7, %v631_v23 }
 0x216   : > { %4233 = vset.pattern.permute.xlu0 %v7126_v46  ;;  %v731_v46 = vmul.f32 %v5376_v32, %v4897_v6  ;;  %v712_v30 = vmul.f32 %v5135_v57, %v632_v2  ;;  %v7133_v57 = vsub.s32 6, %v5345_v11 }
 0x217   : > { %1992 = vperm.xlu0 %4233, %v4945_v42   ;;  %v7131_v42 = vsub.s32 5, %v5345_v11 }
 0x218   : > { %v5381_v41 = vpop.permute.xlu1 %782  ;;  %v5383_v58 = vpop.permute.xlu0 %690  ;;  %v4264_v7 = vpack.i.bf16 %v712_v30, %v711_v49  ;;  %v811_v23 = vmul.f32 %v5169_v13, %v731_v46  ;;  %v832_v46 = vmul.f32 %v5393_v50, %v4903_v10 }
 0x219   : > { %7221 = vst [vmem:[#allocation53_spill] sm:$0xff] %v5381_v41  ;;  %7222 = vst [vmem:[#allocation54_spill] sm:$0xff] %v5383_v58  ;;  %4224 = vset.pattern.permute.xlu1 %v7200_v9  ;;  %v732_v41 = vmul.f32 %v5376_v32, %v4903_v10  ;;  %v831_v9 = vmul.f32 %v5393_v50, %v4897_v6  ;;  %v5411_v14 = vrot.slane %v4877_v1, %v7131_v42 }
 0x21a   : > { %702 = vperm.xlu1 %4224, %v5297_v43  }
 0x21b   : > { %2004 = vperm.xlu0 %4233, %v5021_v5   ;;  %v812_v30 = vmul.f32 %v5129_v54, %v732_v41  ;;  %v911_v2 = vmul.f32 %v5179_v26, %v831_v9  ;;  %v1353_v13 = vmul.f32 %v5411_v14, %v4897_v6  ;;  %v7132_v54 = vsub.s32 7, %v5345_v11 }
 0x21c   : > { %v5430_v41 = vrot.slane %v4877_v1, %v7133_v57  ;;  %v5444_v1 = vld [vmem:[%s7090_s2] sm:$0xff] }
 0x21d   : > { %v5403_v58 = vpop.permute.xlu1 %1304  ;;  %v5405_v52 = vpop.permute.xlu0 %890  ;;  %v4269_v49 = vpack.i.bf16 %v812_v30, %v811_v23  ;;  %v1433_v23 = vmul.f32 %v5195_v55, %v1353_v13 }
 0x21e   : > { %7223 = vst [vmem:[#allocation55_spill] sm:$0xff] %v5403_v58  ;;  %4226 = vset.pattern.permute.xlu1 %v7190_v60  ;;  %v912_v58 = vmul.f32 %v5143_v62, %v832_v46  ;;  %v1453_v9 = vmul.f32 %v5430_v41, %v4897_v6  ;;  %v1454_v62 = vmul.f32 %v5430_v41, %v4903_v10 }
 0x21f   : > { %902 = vperm.xlu1 %4226, %v5297_v43   ;;  %4265 = vrot.lane.b32.xlu0 %v4264_v7, %s4828_s26  ;;  %v1354_v7 = vmul.f32 %v5411_v14, %v4903_v10 }
 0x220   : > { %v4274_v26 = vpack.i.bf16 %v912_v58, %v911_v2  ;;  %v1534_v13 = vmul.f32 %v5145_v63, %v1454_v62 }
 0x221   : > { %v1434_v58 = vmul.f32 %v5153_v3, %v1354_v7 }
 0x222   : > { %v5422_v60 = vpop.permute.xlu1 %1504  ;;  %v5424_v42 = vpop.permute.xlu0 %1412 }
 0x223   : > { %4228 = vset.pattern.permute.xlu1 %v7194_v35  ;;  %4270 = vrot.lane.b32.xlu0 %v4269_v49, %s4829_s27  ;;  %v5449_v35 = vrot.slane %v5444_v1, %v7132_v54  ;;  %v4279_v46 = vpack.i.bf16 %v1434_v58, %v1433_v23  ;;  %v1533_v49 = vmul.f32 %v5203_v12, %v1453_v9 }
 0x224   : > { %1424 = vperm.xlu1 %4228, %v5297_v43   ;;  %v736_v9 = vmul.f32 %v5376_v32, %v4920_v18 }
 0x225   : > { %v1553_v2 = vmul.f32 %v5449_v35, %v4897_v6  ;;  %v1554_v3 = vmul.f32 %v5449_v35, %v4903_v10  ;;  %v635_v6 = vmul.f32 %v5360_v28, %v4913_v15  ;;  %v636_v10 = vmul.f32 %v5360_v28, %v4920_v18 }
 0x226   : > { %v816_v18 = vmul.f32 %v5299_v38, %v736_v9  ;;  %v5512_v38 = vld [vmem:[%s4892_s25] sm:$0xff]  ;;  %v5520_v9 = vld [vmem:[%s4892_s25 + $0x8] sm:$0xff] }
 0x227   : > { %v5454_v30 = vpop.permute.xlu1 %678  ;;  %4275 = vrot.lane.b32.xlu0 %v4274_v26, %s4830_s30  ;;  %v5457_v55 = vpop.permute.xlu0 %581  ;;  %v1633_v12 = vmul.f32 %v5213_v47, %v1553_v2  ;;  %v1634_v63 = vmul.f32 %v5163_v8, %v1554_v3  ;;  %v715_v62 = vmul.f32 %v5323_v51, %v635_v6  ;;  %v716_v15 = vmul.f32 %v5241_v25, %v636_v10  ;;  %v5490_v8 = vld [vmem:[%s4892_s25 + $0x30] sm:$0xff]  ;;  %v5503_v25 = vld [vmem:[%s4892_s25 + $0x38] sm:$0xff] }
 0x228   : > { %4231 = vset.pattern.permute.xlu1 %v7215_v44  ;;  %v4284_v44 = vpack.i.bf16 %v1534_v13, %v1533_v49  ;;  %v835_v49 = vmul.f32 %v5490_v8, %v5393_v50  ;;  %v7225_v2 = vmov 8   ;;  %v836_v3 = vmul.f32 %v5503_v25, %v5393_v50 }
 0x229   : > { %1608 = vperm.xlu1 %4231, %v5177_v17   ;;  %v4289_v23 = vpack.i.bf16 %v1634_v63, %v1633_v12  ;;  %v4324_v51 = vpack.i.bf16 %v716_v15, %v715_v62  ;;  %v629_v6 = vmul.f32 %v5512_v38, %v5360_v28  ;;  %v1358_v15 = vmul.f32 %v5503_v25, %v5411_v14 }
 0x22a   : > { %v915_v10 = vmul.f32 %v5331_v27, %v835_v49  ;;  %v916_v62 = vmul.f32 %v5249_v20, %v836_v3  ;;  %v1458_v49 = vmul.f32 %v5503_v25, %v5430_v41  ;;  %v1457_v54 = vmul.f32 %v5490_v8, %v5430_v41 }
 0x22b   : > { %4280 = vrot.lane.b32.xlu0 %v4279_v46, %s4828_s26  ;;  %v735_v46 = vmul.f32 %v5490_v8, %v5376_v32 }
 0x22c   : > { %v5468_v7 = vpop.permute.xlu1 %878  ;;  %v5470_v26 = vpop.permute.xlu0 %786 }
 0x22d   : > { %1616 = vperm.xlu1 %4231, %v5237_v45  }
 0x22f   : > { %4285 = vrot.lane.b32.xlu0 %v4284_v44, %s4829_s27  ;;  %v815_v44 = vmul.f32 %v5283_v34, %v735_v46  ;;  %v630_v34 = vmul.f32 %v5520_v9, %v5360_v28 }
 0x231   : > { %v5483_v47 = vpop.permute.xlu1 %1400  ;;  %v5485_v58 = vpop.permute.xlu0 %1308  ;;  %1624 = vperm.xlu1 %4231, %v5297_v43   ;;  %v4329_v63 = vpack.i.bf16 %v816_v18, %v815_v44  ;;  %v729_v18 = vmul.f32 %v5512_v38, %v5376_v32  ;;  %v710_v3 = vmul.f32 %v5059_v19, %v630_v34  ;;  %v730_v44 = vmul.f32 %v5520_v9, %v5376_v32 }
 0x232   : > { %7224 = vst [vmem:[#allocation56_spill] sm:$0xff] %v5485_v58 }
 0x233   : > { %4290 = vrot.lane.b32.xlu0 %v4289_v23, %s4830_s30  ;;  %v1357_v23 = vmul.f32 %v5490_v8, %v5411_v14 }
 0x235   : > { %4232 = vset.pattern.permute.xlu1 %v7225_v2  ;;  %v4334_v2 = vpack.i.bf16 %v916_v62, %v915_v10  ;;  %v1437_v20 = vmul.f32 %v5339_v29, %v1357_v23  ;;  %v829_v29 = vmul.f32 %v5512_v38, %v5393_v50  ;;  %v1538_v23 = vmul.f32 %v5315_v37, %v1458_v49 }
 0x236   : > { %v5499_v13 = vpop.permute.xlu1 %1600  ;;  %1988 = vperm.xlu1 %4232, %v4961_v53   ;;  %v5508_v12 = vpop.permute.xlu0 %1508  ;;  %v830_v62 = vmul.f32 %v5520_v9, %v5393_v50  ;;  %v1351_v49 = vmul.f32 %v5512_v38, %v5411_v14 }
 0x237   : > { %4325 = vrot.lane.b32.xlu0 %v4324_v51, %s4828_s26  ;;  %v709_v51 = vmul.f32 %v5103_v36, %v629_v6  ;;  %v809_v36 = vmul.f32 %v5093_v33, %v729_v18  ;;  %v1558_v33 = vmul.f32 %v5503_v25, %v5449_v35  ;;  %v1537_v18 = vmul.f32 %v5301_v59, %v1457_v54 }
 0x238   : > { %v909_v37 = vmul.f32 %v5111_v40, %v829_v29  ;;  %v1352_v59 = vmul.f32 %v5520_v9, %v5411_v14  ;;  %v1451_v40 = vmul.f32 %v5512_v38, %v5430_v41 }
 0x239   : > { %v4234_v6 = vpack.i.bf16 %v710_v3, %v709_v51  ;;  %v1638_v54 = vmul.f32 %v5265_v4, %v1558_v33 }
 0x23a   : > { %1996 = vperm.xlu1 %4232, %v4993_v61   ;;  %v1531_v4 = vmul.f32 %v5109_v39, %v1451_v40  ;;  %v1552_v39 = vmul.f32 %v5520_v9, %v5449_v35 }
 0x23b   : > { %v5528_v46 = vpop.permute.xlu1 %586  ;;  %4330 = vrot.lane.b32.xlu0 %v4329_v63, %s4829_s27  ;;  %v5531_v27 = vpop.permute.xlu0 %698  ;;  %v1438_v63 = vmul.f32 %v5257_v0, %v1358_v15  ;;  %v1557_v0 = vmul.f32 %v5490_v8, %v5449_v35  ;;  %v810_v15 = vmul.f32 %v5069_v22, %v730_v44  ;;  %v910_v44 = vmul.f32 %v5067_v21, %v830_v62  ;;  %v5598_v62 = vld [vmem:[%s4892_s25 + $0x50] sm:$0xff] }
 0x23c   : > { %v1452_v21 = vmul.f32 %v5520_v9, %v5430_v41 }
 0x23d   : > { %v4339_v34 = vpack.i.bf16 %v1438_v63, %v1437_v20  ;;  %v4239_v51 = vpack.i.bf16 %v810_v15, %v809_v36  ;;  %v1637_v20 = vmul.f32 %v5348_v16, %v1557_v0  ;;  %v4244_v16 = vpack.i.bf16 %v910_v44, %v909_v37  ;;  %v5593_v0 = vld [vmem:[%s4892_s25 + $0x58] sm:$0xff]  ;;  %v5609_v37 = vld [vmem:[%s4892_s25 + $0x20] sm:$0xff]  ;;  %v7228_v44 = vld [vmem:[#allocation15_spill] sm:$0xff] }
 0x23e   : > { %2000 = vperm.xlu1 %4232, %v4975_v56   ;;  %v1431_v63 = vmul.f32 %v5119_v48, %v1351_v49  ;;  %v1551_v48 = vmul.f32 %v5512_v38, %v5449_v35  ;;  %v639_v15 = vmul.f32 %v5598_v62, %v5360_v28  ;;  %v1532_v33 = vmul.f32 %v5085_v31, %v1452_v21  ;;  %v7229_v31 = vld [vmem:[#allocation54_spill] sm:$0xff] }
 0x23f   : > { %4335 = vrot.lane.b32.xlu0 %v4334_v2, %s4830_s30  ;;  %v4344_v2 = vpack.i.bf16 %v1538_v23, %v1537_v18  ;;  %v4349_v36 = vpack.i.bf16 %v1638_v54, %v1637_v20  ;;  %v740_v18 = vmul.f32 %v5593_v0, %v5376_v32  ;;  %v633_v49 = vmul.f32 %v5609_v37, %v5360_v28 }
 0x240   : > { %v791_v10 = vpop.permute.xlu1 %790  ;;  %v5550_v19 = vpop.permute.xlu0 %898  ;;  %v739_v54 = vmul.f32 %v5598_v62, %v5376_v32 }
 0x242   : > { %4235 = vrot.lane.b32.xlu1 %v4234_v6, %s4828_s26  ;;  %v1432_v6 = vmul.f32 %v5075_v24, %v1352_v59  ;;  %v640_v24 = vmul.f32 %v5593_v0, %v5360_v28  ;;  %v1631_v59 = vmul.f32 %v7228_v44, %v1551_v48  ;;  %v839_v48 = vmul.f32 %v5598_v62, %v5393_v50  ;;  %v7231_v44 = vld [vmem:[#allocation35_spill] sm:$0xff] }
 0x243   : > { %4340 = vrot.lane.b32.xlu0 %v4339_v34, %s4828_s26 }
 0x244   : > { %v4249_v34 = vpack.i.bf16 %v1432_v6, %v1431_v63  ;;  %v720_v40 = vmul.f32 %v7229_v31, %v640_v24  ;;  %v5620_v63 = vld [vmem:[%s4892_s25 + $0x28] sm:$0xff]  ;;  %v819_v31 = vmul.f32 %v5470_v26, %v739_v54  ;;  %v833_v26 = vmul.f32 %v5609_v37, %v5393_v50 }
 0x245   : > { %v5567_v3 = vpop.permute.xlu1 %1312  ;;  %v5569_v22 = vpop.permute.xlu0 %1420  ;;  %v634_v21 = vmul.f32 %v5620_v63, %v5360_v28  ;;  %v734_v24 = vmul.f32 %v5620_v63, %v5376_v32 }
 0x246   : > { %7226 = vst [vmem:[#allocation57_spill] sm:$0xff] %v5567_v3  ;;  %4240 = vrot.lane.b32.xlu1 %v4239_v51, %s4829_s27  ;;  %v4254_v51 = vpack.i.bf16 %v1532_v33, %v1531_v4  ;;  %v820_v4 = vmul.f32 %v791_v10, %v740_v18  ;;  %v733_v10 = vmul.f32 %v5609_v37, %v5376_v32  ;;  %v7233_v18 = vld [vmem:[#allocation19_spill] sm:$0xff]  ;;  %v5839_v3 = vld [vmem:[%s4892_s25 + $0x78] sm:$0xff] }
 0x247   : > { %4345 = vrot.lane.b32.xlu0 %v4344_v2, %s4829_s27 }
 0x24a   : > { %v5583_v29 = vpop.permute.xlu1 %1512  ;;  %4245 = vrot.lane.b32.xlu1 %v4244_v16, %s4830_s30  ;;  %v5586_v23 = vpop.permute.xlu0 %591 }
 0x24b   : > { %7227 = vst [vmem:[#allocation58_spill] sm:$0xff] %v5586_v23  ;;  %4350 = vrot.lane.b32.xlu0 %v4349_v36, %s4830_s30  ;;  %v7230_v36 = vld [vmem:[#allocation9_spill] sm:$0xff] }
 0x24c   : > { %v1632_v6 = vmul.f32 %v7230_v36, %v1552_v39 }
 0x24e   : > { %4250 = vrot.lane.b32.xlu1 %v4249_v34, %s4828_s26  ;;  %v4259_v33 = vpack.i.bf16 %v1632_v6, %v1631_v59  ;;  %v7234_v59 = vld [vmem:[#allocation30_spill] sm:$0xff] }
 0x24f   : > { %v687_v2 = vpop.permute.xlu1 %686  ;;  %v5613_v20 = vpop.permute.xlu0 %794  ;;  %v814_v54 = vmul.f32 %v7234_v59, %v734_v24 }
 0x250   : > { %v719_v16 = vmul.f32 %v687_v2, %v639_v15  ;;  %v713_v15 = vmul.f32 %v7231_v44, %v633_v49  ;;  %v840_v2 = vmul.f32 %v5593_v0, %v5393_v50  ;;  %v1361_v49 = vmul.f32 %v5598_v62, %v5411_v14 }
 0x252   : > { %v4384_v34 = vpack.i.bf16 %v720_v40, %v719_v16  ;;  %4255 = vrot.lane.b32.xlu1 %v4254_v51, %s4829_s27  ;;  %v714_v51 = vmul.f32 %v7233_v18, %v634_v21  ;;  %v4389_v40 = vpack.i.bf16 %v820_v4, %v819_v31  ;;  %v920_v6 = vmul.f32 %v5405_v52, %v840_v2  ;;  %v7235_v4 = vld [vmem:[#allocation27_spill] sm:$0xff]  ;;  %v7236_v2 = vld [vmem:[#allocation36_spill] sm:$0xff] }
 0x253   : > { %v1355_v52 = vmul.f32 %v5609_v37, %v5411_v14  ;;  %v913_v18 = vmul.f32 %v7236_v2, %v833_v26 }
 0x254   : > { %v887_v57 = vpop.permute.xlu1 %886  ;;  %v5634_v39 = vpop.permute.xlu0 %1316  ;;  %4385 = vrot.lane.b32.xlu0 %v4384_v34, %s4828_s26  ;;  %v4294_v36 = vpack.i.bf16 %v714_v51, %v713_v15  ;;  %v1362_v34 = vmul.f32 %v5593_v0, %v5411_v14 }
 0x255   : > { %7232 = vst [vmem:[#allocation15_spill] sm:$0xff] %v5634_v39  ;;  %v919_v16 = vmul.f32 %v887_v57, %v839_v48  ;;  %v834_v57 = vmul.f32 %v5620_v63, %v5393_v50  ;;  %v813_v48 = vmul.f32 %v7235_v4, %v733_v10  ;;  %v1461_v10 = vmul.f32 %v5598_v62, %v5430_v41  ;;  %v7240_v4 = vld [vmem:[#allocation23_spill] sm:$0xff] }
 0x256   : > { %4260 = vrot.lane.b32.xlu1 %v4259_v33, %s4830_s30  ;;  %v1462_v33 = vmul.f32 %v5593_v0, %v5430_v41  ;;  %v1442_v51 = vmul.f32 %v5424_v42, %v1362_v34  ;;  %v1456_v42 = vmul.f32 %v5620_v63, %v5430_v41  ;;  %v7239_v34 = vld [vmem:[#allocation38_spill] sm:$0xff] }
 0x257   : > { %v4394_v44 = vpack.i.bf16 %v920_v6, %v919_v16  ;;  %v4299_v15 = vpack.i.bf16 %v814_v54, %v813_v48  ;;  %v1455_v48 = vmul.f32 %v5609_v37, %v5430_v41 }
 0x258   : > { %4390 = vrot.lane.b32.xlu0 %v4389_v40, %s4829_s27  ;;  %v7237_v40 = vld [vmem:[#allocation21_spill] sm:$0xff]  ;;  %v1542_v59 = vmul.f32 %v5583_v29, %v1462_v33 }
 0x259   : > { %v1409_v21 = vpop.permute.xlu1 %1408  ;;  %v5655_v24 = vpop.permute.xlu0 %1516  ;;  %v914_v16 = vmul.f32 %v7237_v40, %v834_v57  ;;  %v1541_v57 = vmul.f32 %v5508_v12, %v1461_v10  ;;  %v1555_v12 = vmul.f32 %v5609_v37, %v5449_v35 }
 0x25a   : > { %v1441_v31 = vmul.f32 %v1409_v21, %v1361_v49  ;;  %4295 = vrot.lane.b32.xlu1 %v4294_v36, %s4828_s26  ;;  %v1356_v49 = vmul.f32 %v5620_v63, %v5411_v14  ;;  %v1435_v21 = vmul.f32 %v7239_v34, %v1355_v52  ;;  %v7246_v34 = vld [vmem:[#allocation24_spill] sm:$0xff] }
 0x25b   : > { %v4304_v54 = vpack.i.bf16 %v914_v16, %v913_v18  ;;  %v4404_v33 = vpack.i.bf16 %v1542_v59, %v1541_v57  ;;  %v1556_v18 = vmul.f32 %v5620_v63, %v5449_v35  ;;  %v7243_v16 = vld [vmem:[#allocation40_spill] sm:$0xff]  ;;  %v5697_v59 = vld [vmem:[%s4892_s25 + $0x40] sm:$0xff]  ;;  %v5707_v57 = vld [vmem:[%s4892_s25 + $0x48] sm:$0xff] }
 0x25c   : > { %4395 = vrot.lane.b32.xlu0 %v4394_v44, %s4830_s30  ;;  %v4399_v36 = vpack.i.bf16 %v1442_v51, %v1441_v31  ;;  %v1436_v29 = vmul.f32 %v7240_v4, %v1356_v49  ;;  %v7242_v51 = vld [vmem:[#allocation31_spill] sm:$0xff]  ;;  %v1635_v49 = vmul.f32 %v7243_v16, %v1555_v12  ;;  %7244 = vst [vmem:[#allocation9_spill] sm:$0xff] %v5697_v59  ;;  %7247 = vst [vmem:[#allocation19_spill] sm:$0xff] %v5707_v57 }
 0x25d   : > { %v1535_v10 = vmul.f32 %v7242_v51, %v1455_v48  ;;  %v638_v4 = vmul.f32 %v5707_v57, %v5360_v28  ;;  %v738_v48 = vmul.f32 %v5707_v57, %v5376_v32  ;;  %v7250_v51 = vld [vmem:[#allocation53_spill] sm:$0xff]  ;;  %v837_v16 = vmul.f32 %v5697_v59, %v5393_v50 }
 0x25e   : > { %v5669_v6 = vpop.permute.xlu1 %596  ;;  %4300 = vrot.lane.b32.xlu1 %v4299_v15, %s4829_s27  ;;  %v5672_v26 = vpop.permute.xlu0 %706  ;;  %v7241_v15 = vld [vmem:[#allocation34_spill] sm:$0xff]  ;;  %v4309_v2 = vpack.i.bf16 %v1436_v29, %v1435_v21  ;;  %v1636_v21 = vmul.f32 %v7246_v34, %v1556_v18  ;;  %v737_v18 = vmul.f32 %v5697_v59, %v5376_v32 }
 0x25f   : > { %7238 = vst [vmem:[#allocation54_spill] sm:$0xff] %v5669_v6  ;;  %v1536_v52 = vmul.f32 %v7241_v15, %v1456_v42 }
 0x260   : > { %4400 = vrot.lane.b32.xlu0 %v4399_v36, %s4828_s26  ;;  %v637_v36 = vmul.f32 %v5697_v59, %v5360_v28  ;;  %v4319_v29 = vpack.i.bf16 %v1636_v21, %v1635_v49  ;;  %v7251_v49 = vld [vmem:[#allocation48_spill] sm:$0xff] }
 0x261   : > { %v4314_v40 = vpack.i.bf16 %v1536_v52, %v1535_v10  ;;  %v818_v10 = vmul.f32 %v7250_v51, %v738_v48  ;;  %v7252_v48 = vld [vmem:[#allocation45_spill] sm:$0xff] }
 0x262   : > { %4305 = vrot.lane.b32.xlu1 %v4304_v54, %s4830_s30 }
 0x263   : > { %v5683_v44 = vpop.permute.xlu1 %798  ;;  %v5685_v31 = vpop.permute.xlu0 %906 }
 0x264   : > { %4405 = vrot.lane.b32.xlu0 %v4404_v33, %s4829_s27  ;;  %v717_v33 = vmul.f32 %v5454_v30, %v637_v36  ;;  %v838_v30 = vmul.f32 %v5707_v57, %v5393_v50  ;;  %v817_v36 = vmul.f32 %v7251_v49, %v737_v18 }
 0x266   : > { %4310 = vrot.lane.b32.xlu1 %v4309_v2, %s4828_s26  ;;  %v7249_v2 = vld [vmem:[#allocation44_spill] sm:$0xff] }
 0x267   : > { %v718_v12 = vmul.f32 %v7249_v2, %v638_v4  ;;  %v4359_v4 = vpack.i.bf16 %v818_v10, %v817_v36  ;;  %v917_v2 = vmul.f32 %v5468_v7, %v837_v16  ;;  %v7254_v16 = vld [vmem:[#allocation46_spill] sm:$0xff] }
 0x268   : > { %v5701_v42 = vpop.permute.xlu1 %1320  ;;  %v5703_v54 = vpop.permute.xlu0 %1428 }
 0x269   : > { %7245 = vst [vmem:[#allocation35_spill] sm:$0xff] %v5701_v42 }
 0x26a   : > { %4315 = vrot.lane.b32.xlu1 %v4314_v40, %s4829_s27  ;;  %v4354_v40 = vpack.i.bf16 %v718_v12, %v717_v33  ;;  %v918_v33 = vmul.f32 %v7252_v48, %v838_v30  ;;  %v1360_v12 = vmul.f32 %v5707_v57, %v5411_v14  ;;  %v1459_v30 = vmul.f32 %v5697_v59, %v5430_v41 }
 0x26c   : > { %v4364_v10 = vpack.i.bf16 %v918_v33, %v917_v2  ;;  %v1440_v49 = vmul.f32 %v7254_v16, %v1360_v12  ;;  %v1559_v2 = vmul.f32 %v5697_v59, %v5449_v35  ;;  %v5758_v33 = vld [vmem:[%s4892_s25 + $0x60] sm:$0xff] }
 0x26d   : > { %v5715_v15 = vpop.permute.xlu1 %1520  ;;  %v5717_v52 = vpop.permute.xlu0 %601  ;;  %7256 = vst [vmem:[#allocation36_spill] sm:$0xff] %v5758_v33  ;;  %v1563_v56 = vmul.f32 %v5758_v33, %v5449_v35 }
 0x26e   : > { %7248 = vst [vmem:[#allocation30_spill] sm:$0xff] %v5717_v52  ;;  %4320 = vrot.lane.b32.xlu1 %v4319_v29, %s4830_s30  ;;  %v1359_v29 = vmul.f32 %v5697_v59, %v5411_v14  ;;  %v7255_v52 = vld [vmem:[#allocation52_spill] sm:$0xff] }
 0x26f   : > { %v1539_v42 = vmul.f32 %v7255_v52, %v1459_v30  ;;  %v5766_v52 = vld [vmem:[%s4892_s25 + $0x68] sm:$0xff] }
 0x270   : > { %v1439_v7 = vmul.f32 %v5483_v47, %v1359_v29  ;;  %v1560_v47 = vmul.f32 %v5707_v57, %v5449_v35  ;;  %7258 = vst [vmem:[#allocation38_spill] sm:$0xff] %v5766_v52  ;;  %v1564_v39 = vmul.f32 %v5766_v52, %v5449_v35 }
 0x272   : > { %v695_v34 = vpop.permute.xlu1 %694  ;;  %4355 = vrot.lane.b32.xlu1 %v4354_v40, %s4828_s26  ;;  %v5730_v21 = vpop.permute.xlu0 %802  ;;  %v1460_v40 = vmul.f32 %v5707_v57, %v5430_v41 }
 0x274   : > { %v1540_v36 = vmul.f32 %v5422_v60, %v1460_v40  ;;  %v641_v60 = vmul.f32 %v5758_v33, %v5360_v28 }
 0x276   : > { %4360 = vrot.lane.b32.xlu1 %v4359_v4, %s4829_s27  ;;  %v4369_v4 = vpack.i.bf16 %v1440_v49, %v1439_v7  ;;  %v4374_v29 = vpack.i.bf16 %v1540_v36, %v1539_v42  ;;  %v642_v7 = vmul.f32 %v5766_v52, %v5360_v28  ;;  %v742_v42 = vmul.f32 %v5766_v52, %v5376_v32 }
 0x277   : > { %v895_v51 = vpop.permute.xlu1 %894  ;;  %v5739_v18 = vpop.permute.xlu0 %1324  ;;  %v721_v49 = vmul.f32 %v695_v34, %v641_v60  ;;  %v842_v34 = vmul.f32 %v5766_v52, %v5393_v50 }
 0x278   : > { %7253 = vst [vmem:[#allocation27_spill] sm:$0xff] %v5739_v18 }
 0x27a   : > { %4365 = vrot.lane.b32.xlu1 %v4364_v10, %s4830_s30  ;;  %v1639_v10 = vmul.f32 %v5499_v13, %v1559_v2  ;;  %v741_v13 = vmul.f32 %v5758_v33, %v5376_v32 }
 0x27c   : > { %v1417_v48 = vpop.permute.xlu1 %1416  ;;  %v5749_v18 = vpop.permute.xlu0 %1524 }
 0x27e   : > { %4370 = vrot.lane.b32.xlu1 %v4369_v4, %s4828_s26  ;;  %v722_v4 = vmul.f32 %v5531_v27, %v642_v7  ;;  %v821_v27 = vmul.f32 %v5613_v20, %v741_v13  ;;  %v1464_v20 = vmul.f32 %v5766_v52, %v5430_v41 }
 0x281   : > { %v5762_v12 = vpop.permute.xlu1 %606  ;;  %v1605_v40 = vpop.permute.xlu0 %1604 }
 0x282   : > { %7257 = vst [vmem:[#allocation21_spill] sm:$0xff] %v5762_v12  ;;  %v1640_v16 = vmul.f32 %v1605_v40, %v1560_v47  ;;  %4375 = vrot.lane.b32.xlu1 %v4374_v29, %s4829_s27  ;;  %v822_v47 = vmul.f32 %v5683_v44, %v742_v42  ;;  %v4414_v40 = vpack.i.bf16 %v722_v4, %v721_v49 }
 0x283   : > { %v841_v29 = vmul.f32 %v5758_v33, %v5393_v50  ;;  %v1363_v44 = vmul.f32 %v5758_v33, %v5411_v14  ;;  %v922_v42 = vmul.f32 %v5550_v19, %v842_v34  ;;  %v1364_v49 = vmul.f32 %v5766_v52, %v5411_v14 }
 0x284   : > { %v4379_v30 = vpack.i.bf16 %v1640_v16, %v1639_v10  ;;  %v4419_v10 = vpack.i.bf16 %v822_v47, %v821_v27  ;;  %v1463_v47 = vmul.f32 %v5758_v33, %v5430_v41  ;;  %v7134_v27 = vsub.s32 0, %v5345_v11 }
 0x285   : > { %v5773_v36 = vpop.permute.xlu0 %1612  ;;  %v921_v7 = vmul.f32 %v895_v51, %v841_v29  ;;  %v1443_v4 = vmul.f32 %v1417_v48, %v1363_v44  ;;  %v1444_v51 = vmul.f32 %v5569_v22, %v1364_v49 }
 0x286   : > { %v5778_v2 = vpop.permute.xlu1 %806  ;;  %4380 = vrot.lane.b32.xlu1 %v4379_v30, %s4830_s30  ;;  %v1543_v48 = vmul.f32 %v5655_v24, %v1463_v47  ;;  %v4774_v24 = vld [vmem:[%s4892_s25 + $0x10] sm:$0xff] }
 0x287   : > { %v4424_v30 = vpack.i.bf16 %v922_v42, %v921_v7  ;;  %v4429_v29 = vpack.i.bf16 %v1444_v51, %v1443_v4  ;;  %v5819_v7 = vrot.slane %v5444_v1, %v7134_v27  ;;  %v4773_v42 = vld [vmem:[%s4892_s25 + $0x18] sm:$0xff] }
 0x289   : > { %v5784_v12 = vpop.permute.xlu0 %1620  ;;  %v516_v49 = vmul.f32 %v4773_v42, %v5819_v7 }
 0x28a   : > { %4415 = vrot.lane.b32.xlu1 %v4414_v40, %s4828_s26  ;;  %v1544_v40 = vmul.f32 %v5715_v15, %v1464_v20  ;;  %v515_v20 = vmul.f32 %v4774_v24, %v5819_v7 }
 0x28b   : > { %v5790_v60 = vpop.permute.xlu1 %1328 }
 0x28c   : > { %7259 = vst [vmem:[#allocation23_spill] sm:$0xff] %v5790_v60  ;;  %v1561_v60 = vmul.f32 %v5598_v62, %v5449_v35 }
 0x28d   : > { %v5794_v16 = vpop.permute.xlu0 %1628 }
 0x28e   : > { %4420 = vrot.lane.b32.xlu1 %v4419_v10, %s4829_s27  ;;  %v4434_v10 = vpack.i.bf16 %v1544_v40, %v1543_v48  ;;  %v7262_v40 = vld [vmem:[#allocation14_spill] sm:$0xff] }
 0x290   : > { %v5802_v13 = vpop.permute.xlu1 %1528 }
 0x292   : > { %4425 = vrot.lane.b32.xlu1 %v4424_v30, %s4830_s30  ;;  %v5808_v19 = vpop.permute.xlu0 %1992 }
 0x293   : > { %7260 = vst [vmem:[#allocation34_spill] sm:$0xff] %v5808_v19  ;;  %v1562_v19 = vmul.f32 %v5593_v0, %v5449_v35 }
 0x295   : > { %v703_v34 = vpop.permute.xlu1 %702 }
 0x296   : > { %4430 = vrot.lane.b32.xlu1 %v4429_v29, %s4828_s26  ;;  %v5814_v22 = vpop.permute.xlu0 %2004  ;;  %v612_v29 = vmul.f32 %v7262_v40, %v516_v49  ;;  %v5844_v49 = vld [vmem:[%s4892_s25 + $0x70] sm:$0xff] }
 0x297   : > { %7261 = vst [vmem:[#allocation31_spill] sm:$0xff] %v5814_v22 }
 0x29a   : > { %v5821_v44 = vpop.permute.xlu1 %902  ;;  %4435 = vrot.lane.b32.xlu1 %v4434_v10, %s4829_s27  ;;  %v4266_v15 = vpop.permute.xlu0 %4265  ;;  %v7263_v10 = vld [vmem:[#allocation18_spill] sm:$0xff] }
 0x29b   : > { %v4268_v4 = vunpack.i.h.bf16 %v4266_v15  ;;  %v4267_v51 = vunpack.i.l.bf16 %v4266_v15  ;;  %v611_v22 = vmul.f32 %v7263_v10, %v515_v20  ;;  %v644_v15 = vmul.f32 %v5839_v3, %v5360_v28 }
 0x29d   : > { %v1120_v40 = vsel %vm261_vm0, %v612_v29, %v4268_v4  ;;  %v1119_v10 = vsel %vm261_vm0, %v611_v22, %v4267_v51  ;;  %v7264_v51 = vsub.s32 4, %v5345_v11 }
 0x29e   : > { %v4271_v30 = vpop.permute.xlu0 %4270 }
 0x29f   : > { %v5828_v47 = vpop.permute.xlu1 %1424  ;;  %v4273_v48 = vunpack.i.h.bf16 %v4271_v30  ;;  %v4272_v27 = vunpack.i.l.bf16 %v4271_v30  ;;  %v643_v30 = vmul.f32 %v5844_v49, %v5360_v28  ;;  %v1642_v28 = vmul.f32 %v5773_v36, %v1562_v19 }
 0x2a0   : > { %v5867_v29 = vrot.slane %v5444_v1, %v7264_v51  ;;  %v724_v1 = vmul.f32 %v5672_v26, %v644_v15  ;;  %v843_v19 = vmul.f32 %v5844_v49, %v5393_v50  ;;  %v7265_v15 = vld [vmem:[#allocation16_spill] sm:$0xff] }
 0x2a1   : > { %v1136_v23 = vsel %vm1133_vm1, %v1119_v10, %v4272_v27  ;;  %v1137_v57 = vsel %vm1133_vm1, %v1120_v40, %v4273_v48  ;;  %v744_v48 = vmul.f32 %v5839_v3, %v5376_v32  ;;  %v723_v52 = vmul.f32 %v703_v34, %v643_v30 }
 0x2a2   : > { %v4276_v20 = vpop.permute.xlu0 %4275  ;;  %v1254_v36 = vmul.f32 %v4773_v42, %v5867_v29 }
 0x2a3   : > { %v4278_v58 = vunpack.i.h.bf16 %v4276_v20  ;;  %v4277_v6 = vunpack.i.l.bf16 %v4276_v20  ;;  %v4444_v42 = vpack.i.bf16 %v724_v1, %v723_v52  ;;  %v7267_v1 = vld [vmem:[#allocation4_spill] sm:$0xff] }
 0x2a4   : > { %v1609_v59 = vpop.permute.xlu1 %1608 }
 0x2a5   : > { %v1153_v22 = vsel %vm1150_vm2, %v1136_v23, %v4277_v6  ;;  %v1154_v4 = vsel %vm1150_vm2, %v1137_v57, %v4278_v58  ;;  %v1641_v27 = vmul.f32 %v1609_v59, %v1561_v60  ;;  %v743_v23 = vmul.f32 %v5844_v49, %v5376_v32 }
 0x2a6   : > { %v3914_v20 = vpack.c.bf16 %v1153_v22, %v1153_v22  ;;  %v3915_v40 = vpack.c.bf16 %v1154_v4, %v1154_v4  ;;  %v4281_v10 = vpop.permute.xlu0 %4280  ;;  %v1253_v6 = vmul.f32 %v4774_v24, %v5867_v29  ;;  %v1644_v59 = vmul.f32 %v5784_v12, %v1564_v39 }
 0x2a7   : > { %v4409_v33 = vpack.i.bf16 %v1642_v28, %v1641_v27  ;;  %v824_v60 = vmul.f32 %v5778_v2, %v744_v48  ;;  %v4283_v32 = vunpack.i.h.bf16 %v4281_v10  ;;  %v4282_v30 = vunpack.i.l.bf16 %v4281_v10 }
 0x2a8   : > { %1233 = vst [vmem:[%s5859_s8 + $0x28] sm:$0xf] %v3914_v20  ;;  %1234 = vst [vmem:[%s5859_s8 + $0x3c] sm:$0xf] %v3915_v40  ;;  %v1617_v58 = vpop.permute.xlu1 %1616  ;;  %v823_v22 = vmul.f32 %v5730_v21, %v743_v23  ;;  %v1334_v39 = vmul.f32 %v7265_v15, %v1254_v36  ;;  %v923_v2 = vmul.f32 %v5821_v44, %v843_v19 }
 0x2a9   : > { %v1643_v57 = vmul.f32 %v1617_v58, %v1563_v56  ;;  %4410 = vrot.lane.b32.xlu0 %v4409_v33, %s4830_s30  ;;  %v7266_v56 = vld [vmem:[#allocation22_spill] sm:$0xff]  ;;  %v844_v33 = vmul.f32 %v5839_v3, %v5393_v50  ;;  %v1365_v21 = vmul.f32 %v5844_v49, %v5411_v14  ;;  %v1366_v50 = vmul.f32 %v5839_v3, %v5411_v14 }
 0x2aa   : > { %v4286_v34 = vpop.permute.xlu0 %4285  ;;  %v1333_v12 = vmul.f32 %v7266_v56, %v1253_v6  ;;  %v4449_v52 = vpack.i.bf16 %v824_v60, %v823_v22  ;;  %v1842_v51 = vsel %vm261_vm0, %v1334_v39, %v4283_v32  ;;  %v1466_v14 = vmul.f32 %v5839_v3, %v5430_v41  ;;  %v7268_v22 = vld [vmem:[#allocation5_spill] sm:$0xff] }
 0x2ab   : > { %v4439_v28 = vpack.i.bf16 %v1644_v59, %v1643_v57  ;;  %v4288_v24 = vunpack.i.h.bf16 %v4286_v34  ;;  %v4287_v4 = vunpack.i.l.bf16 %v4286_v34  ;;  %v924_v44 = vmul.f32 %v5685_v31, %v844_v33 }
 0x2ac   : > { %v1625_v26 = vpop.permute.xlu1 %1624  ;;  %v1841_v48 = vsel %vm261_vm0, %v1333_v12, %v4282_v30  ;;  %v1445_v34 = vmul.f32 %v5828_v47, %v1365_v21  ;;  %v1465_v31 = vmul.f32 %v5844_v49, %v5430_v41  ;;  %v520_v32 = vmul.f32 %v5503_v25, %v5819_v7 }
 0x2ad   : > { %4445 = vrot.lane.b32.xlu0 %v4444_v42, %s4828_s26  ;;  %4440 = vrot.lane.b32.xlu1 %v4439_v28, %s4830_s30  ;;  %v1857_v10 = vsel %vm1133_vm1, %v1841_v48, %v4287_v4  ;;  %v1858_v36 = vsel %vm1133_vm1, %v1842_v51, %v4288_v24  ;;  %v4454_v19 = vpack.i.bf16 %v924_v44, %v923_v2  ;;  %v7270_v2 = vld [vmem:[#allocation41_spill] sm:$0xff] }
 0x2ae   : > { %v4291_v27 = vpop.permute.xlu0 %4290  ;;  %v519_v42 = vmul.f32 %v5490_v8, %v5819_v7  ;;  %v1446_v30 = vmul.f32 %v5703_v54, %v1366_v50  ;;  %v1546_v47 = vmul.f32 %v5802_v13, %v1466_v14  ;;  %v1565_v41 = vmul.f32 %v5844_v49, %v5449_v35  ;;  %v7269_v54 = vld [vmem:[#allocation39_spill] sm:$0xff]  ;;  %v7271_v13 = vld [vmem:[#allocation10_spill] sm:$0xff] }
 0x2af   : > { %v4293_v20 = vunpack.i.h.bf16 %v4291_v27  ;;  %v4292_v40 = vunpack.i.l.bf16 %v4291_v27  ;;  %v1545_v56 = vmul.f32 %v5749_v18, %v1465_v31  ;;  %v616_v21 = vmul.f32 %v7270_v2, %v520_v32  ;;  %v7276_v2 = vld [vmem:[#allocation42_spill] sm:$0xff] }
 0x2b0   : > { %v4459_v4 = vpack.i.bf16 %v1446_v30, %v1445_v34  ;;  %v1566_v27 = vmul.f32 %v5839_v3, %v5449_v35  ;;  %v514_v34 = vmul.f32 %v5520_v9, %v5819_v7  ;;  %v513_v31 = vmul.f32 %v5512_v38, %v5819_v7 }
 0x2b1   : > { %v1873_v23 = vsel %vm1150_vm2, %v1857_v10, %v4292_v40  ;;  %v1874_v58 = vsel %vm1150_vm2, %v1858_v36, %v4293_v20  ;;  %v5902_v6 = vpop.permute.xlu1 %1988  ;;  %4450 = vrot.lane.b32.xlu0 %v4449_v52, %s4829_s27  ;;  %2008 = vperm.xlu1 %4232, %v7267_v1   ;;  %v615_v52 = vmul.f32 %v7269_v54, %v519_v42 }
 0x2b2   : > { %v3930_v59 = vpack.c.bf16 %v1873_v23, %v1873_v23  ;;  %v3931_v57 = vpack.c.bf16 %v1874_v58, %v1874_v58  ;;  %v4326_v60 = vpop.permute.xlu0 %4325  ;;  %v4464_v48 = vpack.i.bf16 %v1546_v47, %v1545_v56  ;;  %v1645_v20 = vmul.f32 %v1625_v26, %v1565_v41  ;;  %v7274_v56 = vld [vmem:[#allocation7_spill] sm:$0xff] }
 0x2b3   : > { %v4328_v15 = vunpack.i.h.bf16 %v4326_v60  ;;  %v4327_v39 = vunpack.i.l.bf16 %v4326_v60  ;;  %v1646_v23 = vmul.f32 %v5794_v16, %v1566_v27  ;;  %v1257_v16 = vmul.f32 %v5490_v8, %v5867_v29 }
 0x2b4   : > { %1953 = vst [vmem:[%s5859_s8 + $0x2c] sm:$0xf] %v3930_v59  ;;  %1954 = vst [vmem:[%s5859_s8 + $0x40] sm:$0xf] %v3931_v57  ;;  %v7272_v59 = vld [vmem:[#allocation17_spill] sm:$0xff]  ;;  %v1258_v32 = vmul.f32 %v5503_v25, %v5867_v29 }
 0x2b5   : > { %v5918_v28 = vpop.permute.xlu1 %1996  ;;  %4455 = vrot.lane.b32.xlu0 %v4454_v19, %s4830_s30  ;;  %2016 = vperm.xlu1 %4232, %v7268_v22   ;;  %v1124_v18 = vsel %vm261_vm0, %v616_v21, %v4328_v15  ;;  %v1123_v50 = vsel %vm261_vm0, %v615_v52, %v4327_v39  ;;  %v4469_v42 = vpack.i.bf16 %v1646_v23, %v1645_v20  ;;  %v7277_v21 = vld [vmem:[#allocation43_spill] sm:$0xff] }
 0x2b6   : > { %v4331_v24 = vpop.permute.xlu0 %4330  ;;  %v1337_v25 = vmul.f32 %v7276_v2, %v1257_v16  ;;  %v1338_v27 = vmul.f32 %v7277_v21, %v1258_v32  ;;  %v523_v2 = vmul.f32 %v5598_v62, %v5819_v7 }
 0x2b7   : > { %v4333_v12 = vunpack.i.h.bf16 %v4331_v24  ;;  %v4332_v33 = vunpack.i.l.bf16 %v4331_v24  ;;  %v7273_v24 = vld [vmem:[#allocation26_spill] sm:$0xff] }
 0x2b9   : > { %v5930_v51 = vpop.permute.xlu1 %2000  ;;  %4460 = vrot.lane.b32.xlu0 %v4459_v4, %s4828_s26  ;;  %2024 = vperm.xlu1 %4232, %v7271_v13   ;;  %v1140_v44 = vsel %vm1133_vm1, %v1123_v50, %v4332_v33  ;;  %v1141_v35 = vsel %vm1133_vm1, %v1124_v18, %v4333_v12  ;;  %v610_v12 = vmul.f32 %v7274_v56, %v514_v34  ;;  %v7275_v33 = vld [vmem:[#allocation11_spill] sm:$0xff] }
 0x2ba   : > { %v4336_v40 = vpop.permute.xlu0 %4335  ;;  %v609_v54 = vmul.f32 %v7275_v33, %v513_v31  ;;  %v7281_v33 = vld [vmem:[#allocation2_spill] sm:$0xff] }
 0x2bb   : > { %v4338_v10 = vunpack.i.h.bf16 %v4336_v40  ;;  %v4337_v36 = vunpack.i.l.bf16 %v4336_v40 }
 0x2bd   : > { %v1157_v58 = vsel %vm1150_vm2, %v1140_v44, %v4337_v36  ;;  %v1158_v14 = vsel %vm1150_vm2, %v1141_v35, %v4338_v10  ;;  %v4236_v26 = vpop.permute.xlu1 %4235  ;;  %4465 = vrot.lane.b32.xlu0 %v4464_v48, %s4829_s27  ;;  %2032 = vperm.xlu1 %4232, %v7272_v59   ;;  %v7278_v10 = vld [vmem:[#allocation37_spill] sm:$0xff]  ;;  %v7279_v36 = vld [vmem:[#allocation6_spill] sm:$0xff] }
 0x2be   : > { %v3918_v57 = vpack.c.bf16 %v1157_v58, %v1157_v58  ;;  %v3919_v60 = vpack.c.bf16 %v1158_v14, %v1158_v14  ;;  %v4341_v19 = vpop.permute.xlu0 %4340  ;;  %v4238_v30 = vunpack.i.h.bf16 %v4236_v26  ;;  %v4237_v47 = vunpack.i.l.bf16 %v4236_v26 }
 0x2bf   : > { %v4343_v4 = vunpack.i.h.bf16 %v4341_v19  ;;  %v4342_v15 = vunpack.i.l.bf16 %v4341_v19 }
 0x2c0   : > { %1237 = vst [vmem:[%s5859_s8 + $0x78] sm:$0xf] %v3918_v57  ;;  %1238 = vst [vmem:[%s5859_s8 + $0x8c] sm:$0xf] %v3919_v60  ;;  %v1118_v40 = vsel %vm261_vm0, %v610_v12, %v4238_v30  ;;  %v1117_v18 = vsel %vm261_vm0, %v609_v54, %v4237_v47  ;;  %v7280_v12 = vld [vmem:[#allocation13_spill] sm:$0xff] }
 0x2c1   : > { %v4241_v41 = vpop.permute.xlu1 %4240  ;;  %2040 = vperm.xlu1 %4232, %v7273_v24   ;;  %4470 = vrot.lane.b32.xlu0 %v4469_v42, %s4830_s30  ;;  %v1846_v44 = vsel %vm261_vm0, %v1338_v27, %v4343_v4  ;;  %v1845_v35 = vsel %vm261_vm0, %v1337_v25, %v4342_v15  ;;  %v4831_v15 = vmov 9   ;;  %v524_v25 = vmul.f32 %v5593_v0, %v5819_v7 }
 0x2c2   : > { %v4346_v39 = vpop.permute.xlu0 %4345  ;;  %v4243_v8 = vunpack.i.h.bf16 %v4241_v41  ;;  %v4242_v52 = vunpack.i.l.bf16 %v4241_v41  ;;  %v619_v0 = vmul.f32 %v5457_v55, %v523_v2 }
 0x2c3   : > { %v4348_v48 = vunpack.i.h.bf16 %v4346_v39  ;;  %v4347_v20 = vunpack.i.l.bf16 %v4346_v39 }
 0x2c4   : > { %v1134_v26 = vsel %vm1133_vm1, %v1117_v18, %v4242_v52  ;;  %v1135_v57 = vsel %vm1133_vm1, %v1118_v40, %v4243_v8  ;;  %v1252_v8 = vmul.f32 %v5520_v9, %v5867_v29  ;;  %v1251_v52 = vmul.f32 %v5512_v38, %v5867_v29  ;;  %v7282_v9 = vld [vmem:[#allocation8_spill] sm:$0xff] }
 0x2c5   : > { %v4246_v50 = vpop.permute.xlu1 %4245  ;;  %2048 = vperm.xlu1 %4232, %v7278_v10   ;;  %2012 = vperm.xlu0 %4233, %v7279_v36   ;;  %v1861_v34 = vsel %vm1133_vm1, %v1845_v35, %v4347_v20  ;;  %v1862_v31 = vsel %vm1133_vm1, %v1846_v44, %v4348_v48 }
 0x2c6   : > { %v4248_v23 = vunpack.i.h.bf16 %v4246_v50  ;;  %v4247_v58 = vunpack.i.l.bf16 %v4246_v50  ;;  %v4351_v14 = vpop.permute.xlu0 %4350  ;;  %v1332_v18 = vmul.f32 %v7282_v9, %v1252_v8  ;;  %v7283_v50 = vld [vmem:[#allocation12_spill] sm:$0xff] }
 0x2c7   : > { %v4353_v60 = vunpack.i.h.bf16 %v4351_v14  ;;  %v4352_v19 = vunpack.i.l.bf16 %v4351_v14  ;;  %v1331_v44 = vmul.f32 %v7283_v50, %v1251_v52  ;;  %v7284_v50 = vld [vmem:[#allocation25_spill] sm:$0xff] }
 0x2c8   : > { %v1151_v42 = vsel %vm1150_vm2, %v1134_v26, %v4247_v58  ;;  %v1152_v16 = vsel %vm1150_vm2, %v1135_v57, %v4248_v23  ;;  %v620_v23 = vmul.f32 %v5528_v46, %v524_v25 }
 0x2c9   : > { %v3912_v32 = vpack.c.bf16 %v1151_v42, %v1151_v42  ;;  %v3913_v30 = vpack.c.bf16 %v1152_v16, %v1152_v16  ;;  %v1877_v47 = vsel %vm1150_vm2, %v1861_v34, %v4352_v19  ;;  %v1878_v41 = vsel %vm1150_vm2, %v1862_v31, %v4353_v60  ;;  %v4251_v4 = vpop.permute.xlu1 %4250  ;;  %4475 = vset.pattern.permute.xlu1 %v4831_v15 }
 0x2ca   : > { %v3934_v39 = vpack.c.bf16 %v1877_v47, %v1877_v47  ;;  %v3935_v56 = vpack.c.bf16 %v1878_v41, %v1878_v41  ;;  %2020 = vperm.xlu0 %4233, %v7280_v12   ;;  %2092 = vperm.xlu1 %4475, %v7281_v33   ;;  %v4386_v54 = vpop.permute.xlu0 %4385  ;;  %v4253_v21 = vunpack.i.h.bf16 %v4251_v4  ;;  %v4252_v27 = vunpack.i.l.bf16 %v4251_v4 }
 0x2cb   : > { %1231 = vst [vmem:[%s5859_s8] sm:$0xf] %v3912_v32  ;;  %1232 = vst [vmem:[%s5859_s8 + $0x14] sm:$0xf] %v3913_v30  ;;  %v4388_v20 = vunpack.i.h.bf16 %v4386_v54  ;;  %v4387_v40 = vunpack.i.l.bf16 %v4386_v54 }
 0x2cc   : > { %1957 = vst [vmem:[%s5859_s8 + $0x7c] sm:$0xf] %v3934_v39  ;;  %1958 = vst [vmem:[%s5859_s8 + $0x90] sm:$0xf] %v3935_v56  ;;  %v1840_v26 = vsel %vm261_vm0, %v1332_v18, %v4253_v21  ;;  %v1839_v57 = vsel %vm261_vm0, %v1331_v44, %v4252_v27  ;;  %v517_v27 = vmul.f32 %v5609_v37, %v5819_v7 }
 0x2cd   : > { %v4256_v48 = vpop.permute.xlu1 %4255  ;;  %v1128_v19 = vsel %vm261_vm0, %v620_v23, %v4388_v20  ;;  %v1127_v34 = vsel %vm261_vm0, %v619_v0, %v4387_v40 }
 0x2ce   : > { %2028 = vperm.xlu0 %4233, %v5177_v17   ;;  %2096 = vperm.xlu1 %4475, %v4993_v61   ;;  %v4391_v38 = vpop.permute.xlu0 %4390  ;;  %v4258_v62 = vunpack.i.h.bf16 %v4256_v48  ;;  %v4257_v35 = vunpack.i.l.bf16 %v4256_v48  ;;  %v518_v48 = vmul.f32 %v5620_v63, %v5819_v7  ;;  %v613_v44 = vmul.f32 %v7284_v50, %v517_v27  ;;  %v7289_v50 = vld [vmem:[#allocation9_spill] sm:$0xff] }
 0x2cf   : > { %v4393_v58 = vunpack.i.h.bf16 %v4391_v38  ;;  %v4392_v14 = vunpack.i.l.bf16 %v4391_v38 }
 0x2d0   : > { %v1855_v46 = vsel %vm1133_vm1, %v1839_v57, %v4257_v35  ;;  %v1856_v16 = vsel %vm1133_vm1, %v1840_v26, %v4258_v62  ;;  %v7285_v62 = vld [vmem:[#allocation28_spill] sm:$0xff] }
 0x2d1   : > { %v4261_v60 = vpop.permute.xlu1 %4260  ;;  %v1144_v47 = vsel %vm1133_vm1, %v1127_v34, %v4392_v14  ;;  %v1145_v41 = vsel %vm1133_vm1, %v1128_v19, %v4393_v58  ;;  %v614_v35 = vmul.f32 %v7285_v62, %v518_v48  ;;  %v7290_v62 = vld [vmem:[#allocation19_spill] sm:$0xff] }
 0x2d2   : > { %v4263_v31 = vunpack.i.h.bf16 %v4261_v60  ;;  %v4262_v42 = vunpack.i.l.bf16 %v4261_v60  ;;  %2036 = vperm.xlu0 %4233, %v5237_v45   ;;  %2104 = vperm.xlu1 %4475, %v5021_v5   ;;  %v4396_v55 = vpop.permute.xlu0 %4395  ;;  %v7286_v60 = vld [vmem:[#allocation3_spill] sm:$0xff] }
 0x2d3   : > { %v4398_v32 = vunpack.i.h.bf16 %v4396_v55  ;;  %v4397_v30 = vunpack.i.l.bf16 %v4396_v55 }
 0x2d4   : > { %v1871_v4 = vsel %vm1150_vm2, %v1855_v46, %v4262_v42  ;;  %v1872_v39 = vsel %vm1150_vm2, %v1856_v16, %v4263_v31  ;;  %v1255_v46 = vmul.f32 %v5609_v37, %v5867_v29  ;;  %v1256_v16 = vmul.f32 %v5620_v63, %v5867_v29 }
 0x2d5   : > { %v3928_v56 = vpack.c.bf16 %v1871_v4, %v1871_v4  ;;  %v3929_v54 = vpack.c.bf16 %v1872_v39, %v1872_v39  ;;  %v1161_v8 = vsel %vm1150_vm2, %v1144_v47, %v4397_v30  ;;  %v1162_v52 = vsel %vm1150_vm2, %v1145_v41, %v4398_v32  ;;  %v4296_v2 = vpop.permute.xlu1 %4295  ;;  %v7287_v39 = vld [vmem:[#allocation29_spill] sm:$0xff] }
 0x2d6   : > { %v3922_v25 = vpack.c.bf16 %v1161_v8, %v1161_v8  ;;  %v3923_v21 = vpack.c.bf16 %v1162_v52, %v1162_v52  ;;  %2044 = vperm.xlu0 %4233, %v5297_v43   ;;  %2112 = vperm.xlu1 %4475, %v7279_v36   ;;  %v4298_v40 = vunpack.i.h.bf16 %v4296_v2  ;;  %v4297_v38 = vunpack.i.l.bf16 %v4296_v2 }
 0x2d7   : > { %1951 = vst [vmem:[%s5859_s8 + $0x4] sm:$0xf] %v3928_v56  ;;  %1952 = vst [vmem:[%s5859_s8 + $0x18] sm:$0xf] %v3929_v54  ;;  %v1335_v56 = vmul.f32 %v7287_v39, %v1255_v46  ;;  %v7288_v54 = vld [vmem:[#allocation33_spill] sm:$0xff] }
 0x2d8   : > { %1241 = vst [vmem:[%s5859_s8 + $0xc8] sm:$0xf] %v3922_v25  ;;  %1242 = vst [vmem:[%s5859_s8 + $0xdc] sm:$0xf] %v3923_v21  ;;  %v1122_v23 = vsel %vm261_vm0, %v614_v35, %v4298_v40  ;;  %v1121_v58 = vsel %vm261_vm0, %v613_v44, %v4297_v38  ;;  %v1336_v8 = vmul.f32 %v7288_v54, %v1256_v16  ;;  %v4832_v21 = vmov 10  }
 0x2d9   : > { %v4301_v20 = vpop.permute.xlu1 %4300  ;;  %v521_v44 = vmul.f32 %v7289_v50, %v5819_v7  ;;  %v522_v35 = vmul.f32 %v7290_v62, %v5819_v7  ;;  %v1259_v54 = vmul.f32 %v7289_v50, %v5867_v29 }
 0x2da   : > { %4474 = vset.pattern.permute.xlu0 %v4831_v15  ;;  %2120 = vperm.xlu1 %4475, %v7280_v12   ;;  %v4303_v9 = vunpack.i.h.bf16 %v4301_v20  ;;  %v4302_v18 = vunpack.i.l.bf16 %v4301_v20 }
 0x2db   : > { %2088 = vperm.xlu0 %4474, %v4961_v53  }
 0x2dc   : > { %v1138_v15 = vsel %vm1133_vm1, %v1121_v58, %v4302_v18  ;;  %v1139_v57 = vsel %vm1133_vm1, %v1122_v23, %v4303_v9 }
 0x2dd   : > { %v4306_v0 = vpop.permute.xlu1 %4305 }
 0x2de   : > { %v4308_v14 = vunpack.i.h.bf16 %v4306_v0  ;;  %v4307_v26 = vunpack.i.l.bf16 %v4306_v0  ;;  %2128 = vperm.xlu1 %4475, %v5177_v17  }
 0x2df   : > { %2100 = vperm.xlu0 %4474, %v7286_v60  }
 0x2e0   : > { %v1155_v19 = vsel %vm1150_vm2, %v1138_v15, %v4307_v26  ;;  %v1156_v34 = vsel %vm1150_vm2, %v1139_v57, %v4308_v14  ;;  %v7291_v15 = vld [vmem:[#allocation47_spill] sm:$0xff] }
 0x2e1   : > { %v3916_v31 = vpack.c.bf16 %v1155_v19, %v1155_v19  ;;  %v3917_v42 = vpack.c.bf16 %v1156_v34, %v1156_v34  ;;  %v4311_v55 = vpop.permute.xlu1 %4310  ;;  %v617_v57 = vmul.f32 %v7291_v15, %v521_v44  ;;  %v7292_v19 = vld [vmem:[#allocation51_spill] sm:$0xff] }
 0x2e2   : > { %2136 = vperm.xlu1 %4475, %v5237_v45   ;;  %v4313_v30 = vunpack.i.h.bf16 %v4311_v55  ;;  %v4312_v47 = vunpack.i.l.bf16 %v4311_v55  ;;  %v618_v34 = vmul.f32 %v7292_v19, %v522_v35 }
 0x2e3   : > { %1235 = vst [vmem:[%s5859_s8 + $0x50] sm:$0xf] %v3916_v31  ;;  %1236 = vst [vmem:[%s5859_s8 + $0x64] sm:$0xf] %v3917_v42  ;;  %2108 = vperm.xlu0 %4474, %v7267_v1  }
 0x2e4   : > { %v1844_v37 = vsel %vm261_vm0, %v1336_v8, %v4313_v30  ;;  %v1843_v63 = vsel %vm261_vm0, %v1335_v56, %v4312_v47  ;;  %v1260_v8 = vmul.f32 %v7290_v62, %v5867_v29 }
 0x2e5   : > { %v4316_v32 = vpop.permute.xlu1 %4315 }
 0x2e6   : > { %2144 = vperm.xlu1 %4475, %v5297_v43   ;;  %v4318_v41 = vunpack.i.h.bf16 %v4316_v32  ;;  %v4317_v4 = vunpack.i.l.bf16 %v4316_v32 }
 0x2e7   : > { %2116 = vperm.xlu0 %4474, %v7268_v22  }
 0x2e8   : > { %v1859_v27 = vsel %vm1133_vm1, %v1843_v63, %v4317_v4  ;;  %v1860_v48 = vsel %vm1133_vm1, %v1844_v37, %v4318_v41 }
 0x2e9   : > { %v4321_v52 = vpop.permute.xlu1 %4320 }
 0x2ea   : > { %v4323_v2 = vunpack.i.h.bf16 %v4321_v52  ;;  %v4322_v25 = vunpack.i.l.bf16 %v4321_v52  ;;  %4476 = vset.pattern.permute.xlu1 %v4832_v21 }
 0x2eb   : > { %2124 = vperm.xlu0 %4474, %v7271_v13   ;;  %2188 = vperm.xlu1 %4476, %v4961_v53  }
 0x2ec   : > { %v1875_v20 = vsel %vm1150_vm2, %v1859_v27, %v4322_v25  ;;  %v1876_v40 = vsel %vm1150_vm2, %v1860_v48, %v4323_v2  ;;  %v7293_v27 = vld [vmem:[#allocation50_spill] sm:$0xff] }
 0x2ed   : > { %v3932_v38 = vpack.c.bf16 %v1875_v20, %v1875_v20  ;;  %v3933_v9 = vpack.c.bf16 %v1876_v40, %v1876_v40  ;;  %v4356_v18 = vpop.permute.xlu1 %4355  ;;  %v1339_v48 = vmul.f32 %v7293_v27, %v1259_v54 }
 0x2ee   : > { %v4358_v23 = vunpack.i.h.bf16 %v4356_v18  ;;  %v4357_v58 = vunpack.i.l.bf16 %v4356_v18 }
 0x2ef   : > { %1955 = vst [vmem:[%s5859_s8 + $0x54] sm:$0xf] %v3932_v38  ;;  %1956 = vst [vmem:[%s5859_s8 + $0x68] sm:$0xf] %v3933_v9  ;;  %2132 = vperm.xlu0 %4474, %v7272_v59   ;;  %2196 = vperm.xlu1 %4476, %v4993_v61  }
 0x2f0   : > { %v1126_v42 = vsel %vm261_vm0, %v618_v34, %v4358_v23  ;;  %v1125_v55 = vsel %vm261_vm0, %v617_v57, %v4357_v58  ;;  %v7296_v57 = vld [vmem:[#allocation38_spill] sm:$0xff] }
 0x2f1   : > { %v4361_v0 = vpop.permute.xlu1 %4360  ;;  %v526_v19 = vmul.f32 %v7296_v57, %v5819_v7 }
 0x2f2   : > { %v4363_v14 = vunpack.i.h.bf16 %v4361_v0  ;;  %v4362_v26 = vunpack.i.l.bf16 %v4361_v0 }
 0x2f3   : > { %2140 = vperm.xlu0 %4474, %v7273_v24   ;;  %2200 = vperm.xlu1 %4476, %v7286_v60  }
 0x2f4   : > { %v1142_v32 = vsel %vm1133_vm1, %v1125_v55, %v4362_v26  ;;  %v1143_v30 = vsel %vm1133_vm1, %v1126_v42, %v4363_v14  ;;  %v7295_v26 = vld [vmem:[#allocation36_spill] sm:$0xff] }
 0x2f5   : > { %v4366_v31 = vpop.permute.xlu1 %4365  ;;  %v525_v15 = vmul.f32 %v7295_v26, %v5819_v7 }
 0x2f6   : > { %v4368_v46 = vunpack.i.h.bf16 %v4366_v31  ;;  %v4367_v16 = vunpack.i.l.bf16 %v4366_v31 }
 0x2f7   : > { %2148 = vperm.xlu0 %4474, %v7278_v10   ;;  %2208 = vperm.xlu1 %4476, %v7267_v1  }
 0x2f8   : > { %v1159_v47 = vsel %vm1150_vm2, %v1142_v32, %v4367_v16  ;;  %v1160_v41 = vsel %vm1150_vm2, %v1143_v30, %v4368_v46  ;;  %v7297_v16 = vld [vmem:[#allocation58_spill] sm:$0xff] }
 0x2f9   : > { %v3920_v4 = vpack.c.bf16 %v1159_v47, %v1159_v47  ;;  %v3921_v39 = vpack.c.bf16 %v1160_v41, %v1160_v41  ;;  %v4371_v56 = vpop.permute.xlu1 %4370  ;;  %v621_v32 = vmul.f32 %v7297_v16, %v525_v15  ;;  %v7298_v30 = vld [vmem:[#allocation54_spill] sm:$0xff]  ;;  %v1263_v15 = vmul.f32 %v7295_v26, %v5867_v29 }
 0x2fa   : > { %v4373_v37 = vunpack.i.h.bf16 %v4371_v56  ;;  %v4372_v63 = vunpack.i.l.bf16 %v4371_v56  ;;  %v622_v47 = vmul.f32 %v7298_v30, %v526_v19  ;;  %v1264_v19 = vmul.f32 %v7296_v57, %v5867_v29  ;;  %v7301_v57 = vld [vmem:[#allocation15_spill] sm:$0xff] }
 0x2fb   : > { %1239 = vst [vmem:[%s5859_s8 + $0xa0] sm:$0xf] %v3920_v4  ;;  %1240 = vst [vmem:[%s5859_s8 + $0xb4] sm:$0xf] %v3921_v39  ;;  %4477 = vset.pattern.permute.xlu0 %v4832_v21  ;;  %2216 = vperm.xlu1 %4476, %v7268_v22   ;;  %v7294_v21 = vld [vmem:[#allocation55_spill] sm:$0xff] }
 0x2fc   : > { %2192 = vperm.xlu0 %4477, %v7281_v33   ;;  %v1340_v20 = vmul.f32 %v7294_v21, %v1260_v8  ;;  %v1847_v9 = vsel %vm261_vm0, %v1339_v48, %v4372_v63  ;;  %v4401_v63 = vpop.permute.xlu0 %4400 }
 0x2fd   : > { %v4376_v52 = vpop.permute.xlu1 %4375 }
 0x2fe   : > { %v4378_v2 = vunpack.i.h.bf16 %v4376_v52  ;;  %v4377_v25 = vunpack.i.l.bf16 %v4376_v52  ;;  %v1848_v38 = vsel %vm261_vm0, %v1340_v20, %v4373_v37  ;;  %v4833_v37 = vmov 11   ;;  %v6116_v20 = vld [vmem:[%s4892_s25 + $0x50] sm:$0xff] }
 0x2ff   : > { %2224 = vperm.xlu1 %4476, %v7271_v13  }
 0x300   : > { %2204 = vperm.xlu0 %4477, %v5021_v5   ;;  %v1863_v44 = vsel %vm1133_vm1, %v1847_v9, %v4377_v25  ;;  %v1864_v62 = vsel %vm1133_vm1, %v1848_v38, %v4378_v2  ;;  %v6121_v38 = vld [vmem:[%s4892_s25 + $0x58] sm:$0xff] }
 0x301   : > { %v4381_v40 = vpop.permute.xlu1 %4380  ;;  %v1262_v9 = vmul.f32 %v6121_v38, %v5867_v29 }
 0x302   : > { %v4383_v18 = vunpack.i.h.bf16 %v4381_v40  ;;  %v4382_v50 = vunpack.i.l.bf16 %v4381_v40  ;;  %v1261_v40 = vmul.f32 %v6116_v20, %v5867_v29 }
 0x303   : > { %2232 = vperm.xlu1 %4476, %v7272_v59  }
 0x304   : > { %v1880_v35 = vsel %vm1150_vm2, %v1864_v62, %v4383_v18  ;;  %v1879_v0 = vsel %vm1150_vm2, %v1863_v44, %v4382_v50  ;;  %2212 = vperm.xlu0 %4477, %v7279_v36   ;;  %v4406_v18 = vpop.permute.xlu0 %4405  ;;  %v4403_v50 = vunpack.i.h.bf16 %v4401_v63  ;;  %v4402_v44 = vunpack.i.l.bf16 %v4401_v63  ;;  %v7299_v62 = vld [vmem:[#allocation56_spill] sm:$0xff] }
 0x305   : > { %v3937_v23 = vpack.c.bf16 %v1880_v35, %v1880_v35  ;;  %v3936_v58 = vpack.c.bf16 %v1879_v0, %v1879_v0  ;;  %v4416_v14 = vpop.permute.xlu1 %4415  ;;  %v1341_v35 = vmul.f32 %v7299_v62, %v1261_v40  ;;  %v7300_v0 = vld [vmem:[#allocation57_spill] sm:$0xff] }
 0x306   : > { %v4418_v31 = vunpack.i.h.bf16 %v4416_v14  ;;  %v4417_v42 = vunpack.i.l.bf16 %v4416_v14  ;;  %v4407_v14 = vunpack.i.l.bf16 %v4406_v18 }
 0x307   : > { %1960 = vst [vmem:[%s5859_s8 + $0xb8] sm:$0xf] %v3937_v23  ;;  %1959 = vst [vmem:[%s5859_s8 + $0xa4] sm:$0xf] %v3936_v58  ;;  %2240 = vperm.xlu1 %4476, %v7273_v24   ;;  %v1342_v23 = vmul.f32 %v7300_v0, %v1262_v9  ;;  %v4408_v58 = vunpack.i.h.bf16 %v4406_v18 }
 0x308   : > { %2220 = vperm.xlu0 %4477, %v7280_v12   ;;  %v1130_v4 = vsel %vm261_vm0, %v622_v47, %v4418_v31  ;;  %v1129_v39 = vsel %vm261_vm0, %v621_v32, %v4417_v42  ;;  %v1849_v42 = vsel %vm261_vm0, %v1341_v35, %v4402_v44  ;;  %v528_v44 = vmul.f32 %v5839_v3, %v5819_v7 }
 0x309   : > { %v4421_v34 = vpop.permute.xlu1 %4420  ;;  %v1850_v31 = vsel %vm261_vm0, %v1342_v23, %v4403_v50  ;;  %v1865_v47 = vsel %vm1133_vm1, %v1849_v42, %v4407_v14  ;;  %v527_v50 = vmul.f32 %v5844_v49, %v5819_v7  ;;  %v7304_v7 = vld [vmem:[#allocation21_spill] sm:$0xff] }
 0x30a   : > { %v4423_v55 = vunpack.i.h.bf16 %v4421_v34  ;;  %v4422_v46 = vunpack.i.l.bf16 %v4421_v34 }
 0x30b   : > { %2248 = vperm.xlu1 %4476, %v7278_v10  }
 0x30c   : > { %2228 = vperm.xlu0 %4477, %v5177_v17   ;;  %v1146_v8 = vsel %vm1133_vm1, %v1129_v39, %v4422_v46  ;;  %v1147_v52 = vsel %vm1133_vm1, %v1130_v4, %v4423_v55  ;;  %v1343_v39 = vmul.f32 %v7301_v57, %v1263_v15 }
 0x30d   : > { %v4426_v41 = vpop.permute.xlu1 %4425 }
 0x30e   : > { %v4428_v56 = vunpack.i.h.bf16 %v4426_v41  ;;  %v4427_v54 = vunpack.i.l.bf16 %v4426_v41  ;;  %v1866_v41 = vsel %vm1133_vm1, %v1850_v31, %v4408_v58  ;;  %v7303_v31 = vld [vmem:[#allocation30_spill] sm:$0xff] }
 0x30f   : > { %4479 = vset.pattern.permute.xlu1 %v4833_v37  ;;  %v623_v42 = vmul.f32 %v7303_v31, %v527_v50 }
 0x310   : > { %v1163_v2 = vsel %vm1150_vm2, %v1146_v8, %v4427_v54  ;;  %v1164_v25 = vsel %vm1150_vm2, %v1147_v52, %v4428_v56  ;;  %2236 = vperm.xlu0 %4477, %v5237_v45   ;;  %2292 = vperm.xlu1 %4479, %v7281_v33   ;;  %v7302_v56 = vld [vmem:[#allocation35_spill] sm:$0xff] }
 0x311   : > { %v3924_v27 = vpack.c.bf16 %v1163_v2, %v1163_v2  ;;  %v3925_v48 = vpack.c.bf16 %v1164_v25, %v1164_v25  ;;  %v4431_v21 = vpop.permute.xlu1 %4430  ;;  %v1344_v54 = vmul.f32 %v7302_v56, %v1264_v19 }
 0x312   : > { %v4433_v46 = vunpack.i.h.bf16 %v4431_v21  ;;  %v4432_v16 = vunpack.i.l.bf16 %v4431_v21 }
 0x313   : > { %1243 = vst [vmem:[%s5859_s8 + $0xf0] sm:$0xf] %v3924_v27  ;;  %1244 = vst [vmem:[%s5859_s8 + $0x104] sm:$0xf] %v3925_v48 }
 0x314   : > { %2244 = vperm.xlu0 %4477, %v5297_v43   ;;  %2296 = vperm.xlu1 %4479, %v4993_v61   ;;  %v1852_v27 = vsel %vm261_vm0, %v1344_v54, %v4433_v46  ;;  %v1851_v48 = vsel %vm261_vm0, %v1343_v39, %v4432_v16 }
 0x315   : > { %v4436_v34 = vpop.permute.xlu1 %4435 }
 0x316   : > { %v4438_v26 = vunpack.i.h.bf16 %v4436_v34  ;;  %v4437_v4 = vunpack.i.l.bf16 %v4436_v34 }
 0x318   : > { %4478 = vset.pattern.permute.xlu0 %v4833_v37  ;;  %2304 = vperm.xlu1 %4479, %v5021_v5   ;;  %v1867_v9 = vsel %vm1133_vm1, %v1851_v48, %v4437_v4  ;;  %v1868_v18 = vsel %vm1133_vm1, %v1852_v27, %v4438_v26 }
 0x319   : > { %2288 = vperm.xlu0 %4478, %v4961_v53  }
 0x31b   : > { %v4411_v55 = vpop.permute.xlu0 %4410 }
 0x31c   : > { %v4413_v32 = vunpack.i.h.bf16 %v4411_v55  ;;  %v4412_v30 = vunpack.i.l.bf16 %v4411_v55  ;;  %2312 = vperm.xlu1 %4479, %v7279_v36   ;;  %v624_v55 = vmul.f32 %v7304_v7, %v528_v44 }
 0x31d   : > { %2300 = vperm.xlu0 %4478, %v7286_v60  }
 0x31e   : > { %v1881_v8 = vsel %vm1150_vm2, %v1865_v47, %v4412_v30  ;;  %v1882_v52 = vsel %vm1150_vm2, %v1866_v41, %v4413_v32 }
 0x31f   : > { %v3938_v37 = vpack.c.bf16 %v1881_v8, %v1881_v8  ;;  %v3939_v63 = vpack.c.bf16 %v1882_v52, %v1882_v52  ;;  %v4441_v2 = vpop.permute.xlu1 %4440  ;;  %v4446_v25 = vpop.permute.xlu0 %4445  ;;  %v1265_v52 = vmul.f32 %v5844_v49, %v5867_v29 }
 0x320   : > { %v4443_v21 = vunpack.i.h.bf16 %v4441_v2  ;;  %v4442_v40 = vunpack.i.l.bf16 %v4441_v2  ;;  %2320 = vperm.xlu1 %4479, %v7280_v12   ;;  %v4448_v14 = vunpack.i.h.bf16 %v4446_v25  ;;  %v4447_v15 = vunpack.i.l.bf16 %v4446_v25 }
 0x321   : > { %1961 = vst [vmem:[%s5859_s8 + $0xcc] sm:$0xf] %v3938_v37  ;;  %1962 = vst [vmem:[%s5859_s8 + $0xe0] sm:$0xf] %v3939_v63  ;;  %2308 = vperm.xlu0 %4478, %v7267_v1   ;;  %v1266_v37 = vmul.f32 %v5839_v3, %v5867_v29 }
 0x322   : > { %v1884_v62 = vsel %vm1150_vm2, %v1868_v18, %v4443_v21  ;;  %v1883_v35 = vsel %vm1150_vm2, %v1867_v9, %v4442_v40  ;;  %v1132_v16 = vsel %vm261_vm0, %v624_v55, %v4448_v14  ;;  %v1131_v32 = vsel %vm261_vm0, %v623_v42, %v4447_v15  ;;  %v7305_v40 = vld [vmem:[#allocation27_spill] sm:$0xff] }
 0x323   : > { %v3941_v0 = vpack.c.bf16 %v1884_v62, %v1884_v62  ;;  %v3940_v23 = vpack.c.bf16 %v1883_v35, %v1883_v35  ;;  %v4451_v58 = vpop.permute.xlu0 %4450  ;;  %v1345_v9 = vmul.f32 %v7305_v40, %v1265_v52  ;;  %v7306_v18 = vld [vmem:[#allocation23_spill] sm:$0xff] }
 0x324   : > { %2328 = vperm.xlu1 %4479, %v5177_v17   ;;  %v4453_v19 = vunpack.i.h.bf16 %v4451_v58  ;;  %v4452_v34 = vunpack.i.l.bf16 %v4451_v58  ;;  %v1346_v50 = vmul.f32 %v7306_v18, %v1266_v37  ;;  %v6229_v37 = vld [vmem:[%s4892_s25] sm:$0xff]  ;;  %v6239_v18 = vld [vmem:[%s4892_s25 + $0x18] sm:$0xff] }
 0x325   : > { %1964 = vst [vmem:[%s5859_s8 + $0x108] sm:$0xf] %v3941_v0  ;;  %1963 = vst [vmem:[%s5859_s8 + $0xf4] sm:$0xf] %v3940_v23  ;;  %2316 = vperm.xlu0 %4478, %v7268_v22   ;;  %v4834_v0 = vmov 12  }
 0x326   : > { %v1148_v41 = vsel %vm1133_vm1, %v1131_v32, %v4452_v34  ;;  %v1149_v26 = vsel %vm1133_vm1, %v1132_v16, %v4453_v19  ;;  %7317 = vst [vmem:[#allocation18_spill] sm:$0xff] %v6229_v37  ;;  %7319 = vst [vmem:[#allocation22_spill] sm:$0xff] %v6239_v18 }
 0x327   : > { %v4456_v46 = vpop.permute.xlu0 %4455 }
 0x328   : > { %v4458_v30 = vunpack.i.h.bf16 %v4456_v46  ;;  %v4457_v47 = vunpack.i.l.bf16 %v4456_v46  ;;  %2336 = vperm.xlu1 %4479, %v5237_v45  }
 0x329   : > { %2324 = vperm.xlu0 %4478, %v7271_v13  }
 0x32a   : > { %v1165_v4 = vsel %vm1150_vm2, %v1148_v41, %v4457_v47  ;;  %v1166_v57 = vsel %vm1150_vm2, %v1149_v26, %v4458_v30  ;;  %v6214_v26 = vld [vmem:[%s7090_s2 + $0x8] sm:$0xff] }
 0x32b   : > { %v3926_v39 = vpack.c.bf16 %v1165_v4, %v1165_v4  ;;  %v3927_v56 = vpack.c.bf16 %v1166_v57, %v1166_v57  ;;  %v4461_v54 = vpop.permute.xlu0 %4460  ;;  %7313 = vst [vmem:[#allocation46_spill] sm:$0xff] %v6214_v26  ;;  %v7314_v4 = vsub.s32 1, %v5345_v11 }
 0x32c   : > { %2344 = vperm.xlu1 %4479, %v5297_v43   ;;  %v6172_v8 = vpop.permute.xlu1 %2008  ;;  %v4463_v2 = vunpack.i.h.bf16 %v4461_v54  ;;  %v4462_v25 = vunpack.i.l.bf16 %v4461_v54  ;;  %v6224_v54 = vld [vmem:[%s4892_s25 + $0x8] sm:$0xff] }
 0x32d   : > { %1245 = vst [vmem:[%s5859_s8 + $0x118] sm:$0xf] %v3926_v39  ;;  %1246 = vst [vmem:[%s5859_s8 + $0x12c] sm:$0xf] %v3927_v56  ;;  %2332 = vperm.xlu0 %4478, %v7272_v59   ;;  %v6219_v57 = vrot.slane %v6214_v26, %v7314_v4 }
 0x32e   : > { %v1854_v49 = vsel %vm261_vm0, %v1346_v50, %v4463_v2  ;;  %v1853_v3 = vsel %vm261_vm0, %v1345_v9, %v4462_v25  ;;  %7316 = vst [vmem:[#allocation14_spill] sm:$0xff] %v6224_v54 }
 0x32f   : > { %v4466_v63 = vpop.permute.xlu0 %4465  ;;  %v2072_v52 = vmul.f32 %v6224_v54, %v6219_v57  ;;  %v2074_v50 = vmul.f32 %v6239_v18, %v6219_v57 }
 0x330   : > { %v6181_v27 = vpop.permute.xlu1 %2016  ;;  %v4468_v48 = vunpack.i.h.bf16 %v4466_v63  ;;  %v4467_v21 = vunpack.i.l.bf16 %v4466_v63  ;;  %4600 = vset.pattern.permute.xlu1 %v4834_v0  ;;  %v2071_v63 = vmul.f32 %v6229_v37, %v6219_v57 }
 0x331   : > { %2340 = vperm.xlu0 %4478, %v7273_v24  }
 0x332   : > { %v1869_v23 = vsel %vm1133_vm1, %v1853_v3, %v4467_v21  ;;  %v1870_v58 = vsel %vm1133_vm1, %v1854_v49, %v4468_v48  ;;  %v6234_v21 = vld [vmem:[%s4892_s25 + $0x10] sm:$0xff] }
 0x333   : > { %v4471_v44 = vpop.permute.xlu0 %4470  ;;  %7318 = vst [vmem:[#allocation16_spill] sm:$0xff] %v6234_v21  ;;  %v2073_v40 = vmul.f32 %v6234_v21, %v6219_v57 }
 0x334   : > { %v4473_v29 = vunpack.i.h.bf16 %v4471_v44  ;;  %v4472_v62 = vunpack.i.l.bf16 %v4471_v44  ;;  %v6188_v35 = vpop.permute.xlu1 %2024 }
 0x335   : > { %2348 = vperm.xlu0 %4478, %v7278_v10  }
 0x336   : > { %v1885_v14 = vsel %vm1150_vm2, %v1869_v23, %v4472_v62  ;;  %v1886_v15 = vsel %vm1150_vm2, %v1870_v58, %v4473_v29  ;;  %v6244_v62 = vld [vmem:[%s4892_s25 + $0x20] sm:$0xff]  ;;  %v6250_v58 = vld [vmem:[%s4892_s25 + $0x28] sm:$0xff] }
 0x337   : > { %v3942_v19 = vpack.c.bf16 %v1885_v14, %v1885_v14  ;;  %v3943_v34 = vpack.c.bf16 %v1886_v15, %v1886_v15  ;;  %7320 = vst [vmem:[#allocation4_spill] sm:$0xff] %v6244_v62  ;;  %7321 = vst [vmem:[#allocation5_spill] sm:$0xff] %v6250_v58  ;;  %v2076_v14 = vmul.f32 %v6250_v58, %v6219_v57 }
 0x338   : > { %v6195_v31 = vpop.permute.xlu1 %2032 }
 0x339   : > { %7307 = vst [vmem:[#allocation40_spill] sm:$0xff] %v6195_v31  ;;  %1965 = vst [vmem:[%s5859_s8 + $0x11c] sm:$0xf] %v3942_v19  ;;  %4601 = vset.pattern.permute.xlu0 %v4834_v0  ;;  %v2075_v0 = vmul.f32 %v6244_v62, %v6219_v57 }
 0x33a   : > { %1966 = vst [vmem:[%s5859_s8 + $0x130] sm:$0xf] %v3943_v34 }
 0x33c   : > { %v6199_v42 = vpop.permute.xlu1 %2040 }
 0x33d   : > { %7308 = vst [vmem:[#allocation24_spill] sm:$0xff] %v6199_v42 }
 0x340   : > { %v6201_v7 = vpop.permute.xlu1 %2048  ;;  %v6203_v55 = vpop.permute.xlu0 %2012 }
 0x341   : > { %7309 = vst [vmem:[#allocation44_spill] sm:$0xff] %v6201_v7 }
 0x345   : > { %v6205_v46 = vpop.permute.xlu0 %2020  ;;  %v2093_v16 = vpop.permute.xlu1 %2092 }
 0x346   : > { %7310 = vst [vmem:[#allocation53_spill] sm:$0xff] %v6205_v46  ;;  %v2152_v48 = vmul.f32 %v2093_v16, %v2072_v52 }
 0x349   : > { %v6207_v32 = vpop.permute.xlu0 %2028  ;;  %v2097_v30 = vpop.permute.xlu1 %2096 }
 0x34a   : > { %7311 = vst [vmem:[#allocation48_spill] sm:$0xff] %v6207_v32  ;;  %v2153_v29 = vmul.f32 %v2097_v30, %v2073_v40  ;;  %v6255_v30 = vld [vmem:[%s4892_s25 + $0x30] sm:$0xff] }
 0x34b   : > { %7322 = vst [vmem:[#allocation39_spill] sm:$0xff] %v6255_v30  ;;  %v2077_v4 = vmul.f32 %v6255_v30, %v6219_v57 }
 0x34d   : > { %v6209_v47 = vpop.permute.xlu0 %2036  ;;  %v2105_v41 = vpop.permute.xlu1 %2104 }
 0x34e   : > { %7312 = vst [vmem:[#allocation45_spill] sm:$0xff] %v6209_v47  ;;  %v2155_v16 = vmul.f32 %v2105_v41, %v2075_v0 }
 0x351   : > { %v6221_v39 = vpop.permute.xlu0 %2044  ;;  %v2113_v56 = vpop.permute.xlu1 %2112 }
 0x352   : > { %7315 = vst [vmem:[#allocation52_spill] sm:$0xff] %v6221_v39  ;;  %v7328_v39 = vsub.s32 2, %v5345_v11 }
 0x355   : > { %v2121_v2 = vpop.permute.xlu1 %2120 }
 0x356   : > { %v2089_v25 = vpop.permute.xlu0 %2088 }
 0x357   : > { %v2151_v9 = vmul.f32 %v2089_v25, %v2071_v63  ;;  %v6261_v63 = vld [vmem:[%s4892_s25 + $0x38] sm:$0xff] }
 0x358   : > { %7323 = vst [vmem:[#allocation41_spill] sm:$0xff] %v6261_v63  ;;  %v2078_v25 = vmul.f32 %v6261_v63, %v6219_v57 }
 0x359   : > { %v4480_v44 = vpack.i.bf16 %v2152_v48, %v2151_v9  ;;  %v2129_v49 = vpop.permute.xlu1 %2128 }
 0x35a   : > { %v2101_v3 = vpop.permute.xlu0 %2100 }
 0x35b   : > { %v2154_v23 = vmul.f32 %v2101_v3, %v2074_v50  ;;  %4481 = vrot.lane.b32.xlu1 %v4480_v44, %s4828_s26  ;;  %v2157_v50 = vmul.f32 %v2113_v56, %v2077_v4  ;;  %v6266_v44 = vld [vmem:[%s4892_s25 + $0x40] sm:$0xff]  ;;  %v2081_v56 = vmul.f32 %v6116_v20, %v6219_v57  ;;  %v2082_v4 = vmul.f32 %v6121_v38, %v6219_v57 }
 0x35c   : > { %7324 = vst [vmem:[#allocation10_spill] sm:$0xff] %v6266_v44  ;;  %v2079_v41 = vmul.f32 %v6266_v44, %v6219_v57 }
 0x35d   : > { %v4485_v15 = vpack.i.bf16 %v2154_v23, %v2153_v29  ;;  %v2137_v19 = vpop.permute.xlu1 %2136  ;;  %v6272_v29 = vld [vmem:[%s4892_s25 + $0x48] sm:$0xff] }
 0x35e   : > { %v2109_v34 = vpop.permute.xlu0 %2108  ;;  %7325 = vst [vmem:[#allocation17_spill] sm:$0xff] %v6272_v29  ;;  %v2080_v0 = vmul.f32 %v6272_v29, %v6219_v57 }
 0x35f   : > { %v2156_v52 = vmul.f32 %v2109_v34, %v2076_v14  ;;  %4486 = vrot.lane.b32.xlu0 %v4485_v15, %s4828_s26  ;;  %v2159_v34 = vmul.f32 %v2121_v2, %v2079_v41 }
 0x361   : > { %v4490_v48 = vpack.i.bf16 %v2156_v52, %v2155_v16  ;;  %v2145_v40 = vpop.permute.xlu1 %2144 }
 0x362   : > { %v2117_v9 = vpop.permute.xlu0 %2116 }
 0x363   : > { %v2158_v3 = vmul.f32 %v2117_v9, %v2078_v25  ;;  %4491 = vrot.lane.b32.xlu1 %v4490_v48, %s4828_s26  ;;  %v2161_v9 = vmul.f32 %v2129_v49, %v2081_v56 }
 0x365   : > { %v4495_v23 = vpack.i.bf16 %v2158_v3, %v2157_v50  ;;  %v6282_v50 = vld [vmem:[%s4892_s25 + $0x60] sm:$0xff]  ;;  %v6288_v3 = vld [vmem:[%s4892_s25 + $0x68] sm:$0xff] }
 0x366   : > { %v2125_v14 = vpop.permute.xlu0 %2124  ;;  %v2189_v15 = vpop.permute.xlu1 %2188  ;;  %7326 = vst [vmem:[#allocation26_spill] sm:$0xff] %v6282_v50  ;;  %v2083_v2 = vmul.f32 %v6282_v50, %v6219_v57  ;;  %7327 = vst [vmem:[#allocation7_spill] sm:$0xff] %v6288_v3 }
 0x367   : > { %v2160_v16 = vmul.f32 %v2125_v14, %v2080_v0  ;;  %4496 = vrot.lane.b32.xlu0 %v4495_v23, %s4828_s26  ;;  %v2084_v0 = vmul.f32 %v6288_v3, %v6219_v57  ;;  %v6293_v14 = vld [vmem:[%s4892_s25 + $0x70] sm:$0xff] }
 0x368   : > { %v2085_v49 = vmul.f32 %v6293_v14, %v6219_v57 }
 0x369   : > { %v4500_v52 = vpack.i.bf16 %v2160_v16, %v2159_v34  ;;  %v2163_v16 = vmul.f32 %v2137_v19, %v2083_v2 }
 0x36a   : > { %v2133_v25 = vpop.permute.xlu0 %2132  ;;  %v2197_v48 = vpop.permute.xlu1 %2196  ;;  %v2165_v19 = vmul.f32 %v2145_v40, %v2085_v49 }
 0x36b   : > { %v2162_v41 = vmul.f32 %v2133_v25, %v2082_v4  ;;  %4501 = vrot.lane.b32.xlu1 %v4500_v52, %s4828_s26  ;;  %v6300_v4 = vrot.slane %v6214_v26, %v7328_v39  ;;  %v6304_v25 = vld [vmem:[%s4892_s25 + $0x78] sm:$0xff] }
 0x36d   : > { %v4505_v23 = vpack.i.bf16 %v2162_v41, %v2161_v9  ;;  %v2086_v9 = vmul.f32 %v6304_v25, %v6219_v57  ;;  %v2174_v7 = vmul.f32 %v6239_v18, %v6300_v4  ;;  %v2173_v2 = vmul.f32 %v6234_v21, %v6300_v4 }
 0x36e   : > { %v2141_v34 = vpop.permute.xlu0 %2140  ;;  %v2201_v56 = vpop.permute.xlu1 %2200  ;;  %v2176_v49 = vmul.f32 %v6250_v58, %v6300_v4 }
 0x36f   : > { %v2164_v52 = vmul.f32 %v2141_v34, %v2084_v0  ;;  %4506 = vrot.lane.b32.xlu0 %v4505_v23, %s4828_s26  ;;  %v2171_v0 = vmul.f32 %v6229_v37, %v6300_v4  ;;  %v2172_v23 = vmul.f32 %v6224_v54, %v6300_v4  ;;  %v2254_v57 = vmul.f32 %v2201_v56, %v2174_v7 }
 0x371   : > { %v4510_v41 = vpack.i.bf16 %v2164_v52, %v2163_v16  ;;  %v2253_v52 = vmul.f32 %v2197_v48, %v2173_v2  ;;  %v2251_v40 = vmul.f32 %v2189_v15, %v2171_v0  ;;  %v2178_v48 = vmul.f32 %v6261_v63, %v6300_v4 }
 0x372   : > { %v2149_v47 = vpop.permute.xlu0 %2148  ;;  %v2209_v32 = vpop.permute.xlu1 %2208  ;;  %v2177_v15 = vmul.f32 %v6255_v30, %v6300_v4 }
 0x373   : > { %v2166_v39 = vmul.f32 %v2149_v47, %v2086_v9  ;;  %4511 = vrot.lane.b32.xlu1 %v4510_v41, %s4828_s26  ;;  %v2175_v9 = vmul.f32 %v6244_v62, %v6300_v4  ;;  %v4525_v41 = vpack.i.bf16 %v2254_v57, %v2253_v52  ;;  %v2256_v56 = vmul.f32 %v2209_v32, %v2176_v49 }
 0x374   : > { %v2179_v32 = vmul.f32 %v6266_v44, %v6300_v4  ;;  %v2182_v49 = vmul.f32 %v6121_v38, %v6300_v4 }
 0x375   : > { %v4515_v34 = vpack.i.bf16 %v2166_v39, %v2165_v19 }
 0x376   : > { %v2217_v16 = vpop.permute.xlu1 %2216 }
 0x377   : > { %4516 = vrot.lane.b32.xlu0 %v4515_v34, %s4828_s26  ;;  %v2193_v42 = vpop.permute.xlu0 %2192  ;;  %v2258_v0 = vmul.f32 %v2217_v16, %v2178_v48  ;;  %v2181_v16 = vmul.f32 %v6116_v20, %v6300_v4  ;;  %v2184_v48 = vmul.f32 %v6288_v3, %v6300_v4 }
 0x378   : > { %v2252_v47 = vmul.f32 %v2193_v42, %v2172_v23  ;;  %v2180_v23 = vmul.f32 %v6272_v29, %v6300_v4 }
 0x37a   : > { %v4520_v31 = vpack.i.bf16 %v2252_v47, %v2251_v40  ;;  %v2225_v46 = vpop.permute.xlu1 %2224 }
 0x37b   : > { %4526 = vrot.lane.b32.xlu0 %v4525_v41, %s4829_s27  ;;  %v2205_v7 = vpop.permute.xlu0 %2204 }
 0x37c   : > { %v2255_v19 = vmul.f32 %v2205_v7, %v2175_v9  ;;  %4521 = vrot.lane.b32.xlu1 %v4520_v31, %s4829_s27  ;;  %v2260_v31 = vmul.f32 %v2225_v46, %v2180_v23  ;;  %v2183_v46 = vmul.f32 %v6282_v50, %v6300_v4  ;;  %v2186_v23 = vmul.f32 %v6304_v25, %v6300_v4 }
 0x37e   : > { %v4530_v42 = vpack.i.bf16 %v2256_v56, %v2255_v19  ;;  %v2233_v2 = vpop.permute.xlu1 %2232 }
 0x37f   : > { %v2213_v39 = vpop.permute.xlu0 %2212  ;;  %v2262_v56 = vmul.f32 %v2233_v2, %v2182_v49  ;;  %v2185_v2 = vmul.f32 %v6293_v14, %v6300_v4 }
 0x380   : > { %v2257_v57 = vmul.f32 %v2213_v39, %v2177_v15  ;;  %4531 = vrot.lane.b32.xlu1 %v4530_v42, %s4829_s27 }
 0x382   : > { %v4535_v34 = vpack.i.bf16 %v2258_v0, %v2257_v57  ;;  %v2241_v52 = vpop.permute.xlu1 %2240 }
 0x383   : > { %v2221_v40 = vpop.permute.xlu0 %2220  ;;  %v2264_v0 = vmul.f32 %v2241_v52, %v2184_v48 }
 0x384   : > { %v2259_v47 = vmul.f32 %v2221_v40, %v2179_v32  ;;  %4536 = vrot.lane.b32.xlu0 %v4535_v34, %s4829_s27  ;;  %v7329_v32 = vsub.s32 3, %v5345_v11 }
 0x386   : > { %v4540_v9 = vpack.i.bf16 %v2260_v31, %v2259_v47  ;;  %v2249_v41 = vpop.permute.xlu1 %2248  ;;  %v2270_v34 = vrot.slane %v6214_v26, %v7329_v32 }
 0x387   : > { %v2229_v7 = vpop.permute.xlu0 %2228  ;;  %v2266_v47 = vmul.f32 %v2249_v41, %v2186_v23 }
 0x388   : > { %v2261_v19 = vmul.f32 %v2229_v7, %v2181_v16  ;;  %4541 = vrot.lane.b32.xlu1 %v4540_v9, %s4829_s27  ;;  %v2272_v52 = vmul.f32 %v6224_v54, %v2270_v34  ;;  %v2271_v9 = vmul.f32 %v6229_v37, %v2270_v34  ;;  %v2276_v32 = vmul.f32 %v6250_v58, %v2270_v34 }
 0x38a   : > { %v4545_v15 = vpack.i.bf16 %v2262_v56, %v2261_v19  ;;  %v2273_v19 = vmul.f32 %v6234_v21, %v2270_v34 }
 0x38b   : > { %v2237_v42 = vpop.permute.xlu0 %2236  ;;  %v2293_v39 = vpop.permute.xlu1 %2292 }
 0x38c   : > { %v2263_v57 = vmul.f32 %v2237_v42, %v2183_v46  ;;  %4546 = vrot.lane.b32.xlu0 %v4545_v15, %s4829_s27  ;;  %v2352_v48 = vmul.f32 %v2293_v39, %v2272_v52  ;;  %v2274_v15 = vmul.f32 %v6239_v18, %v2270_v34 }
 0x38e   : > { %v4550_v40 = vpack.i.bf16 %v2264_v0, %v2263_v57  ;;  %v2275_v57 = vmul.f32 %v6244_v62, %v2270_v34 }
 0x38f   : > { %v2245_v31 = vpop.permute.xlu0 %2244  ;;  %v2297_v49 = vpop.permute.xlu1 %2296 }
 0x390   : > { %v2265_v16 = vmul.f32 %v2245_v31, %v2185_v2  ;;  %4551 = vrot.lane.b32.xlu1 %v4550_v40, %s4829_s27  ;;  %v2353_v23 = vmul.f32 %v2297_v49, %v2273_v19 }
 0x392   : > { %v4555_v7 = vpack.i.bf16 %v2266_v47, %v2265_v16  ;;  %v2277_v16 = vmul.f32 %v6255_v30, %v2270_v34 }
 0x393   : > { %v2305_v56 = vpop.permute.xlu1 %2304 }
 0x394   : > { %4556 = vrot.lane.b32.xlu0 %v4555_v7, %s4829_s27  ;;  %v2289_v4 = vpop.permute.xlu0 %2288  ;;  %v2355_v39 = vmul.f32 %v2305_v56, %v2275_v57 }
 0x395   : > { %v2351_v46 = vmul.f32 %v2289_v4, %v2271_v9  ;;  %v2278_v9 = vmul.f32 %v6261_v63, %v2270_v34 }
 0x397   : > { %v4560_v42 = vpack.i.bf16 %v2352_v48, %v2351_v46  ;;  %v2313_v41 = vpop.permute.xlu1 %2312  ;;  %v2279_v48 = vmul.f32 %v6266_v44, %v2270_v34  ;;  %v2280_v46 = vmul.f32 %v6272_v29, %v2270_v34 }
 0x398   : > { %v2301_v0 = vpop.permute.xlu0 %2300  ;;  %v2357_v4 = vmul.f32 %v2313_v41, %v2277_v16 }
 0x399   : > { %v2354_v2 = vmul.f32 %v2301_v0, %v2274_v15  ;;  %4561 = vrot.lane.b32.xlu1 %v4560_v42, %s4830_s30 }
 0x39b   : > { %v4565_v40 = vpack.i.bf16 %v2354_v2, %v2353_v23  ;;  %v2321_v31 = vpop.permute.xlu1 %2320  ;;  %v2281_v23 = vmul.f32 %v6116_v20, %v2270_v34  ;;  %v2282_v2 = vmul.f32 %v6121_v38, %v2270_v34 }
 0x39c   : > { %v2309_v47 = vpop.permute.xlu0 %2308  ;;  %v2359_v0 = vmul.f32 %v2321_v31, %v2279_v48  ;;  %v2286_v48 = vmul.f32 %v6304_v25, %v2270_v34 }
 0x39d   : > { %v2356_v52 = vmul.f32 %v2309_v47, %v2276_v32  ;;  %4566 = vrot.lane.b32.xlu0 %v4565_v40, %s4830_s30 }
 0x39f   : > { %v4570_v7 = vpack.i.bf16 %v2356_v52, %v2355_v39  ;;  %v2329_v15 = vpop.permute.xlu1 %2328  ;;  %v2283_v39 = vmul.f32 %v6282_v50, %v2270_v34  ;;  %v2284_v52 = vmul.f32 %v6288_v3, %v2270_v34 }
 0x3a0   : > { %v2317_v49 = vpop.permute.xlu0 %2316  ;;  %v2361_v47 = vmul.f32 %v2329_v15, %v2281_v23  ;;  %v3407_v23 = vld [vmem:[%s6396_s16] sm:$0xff] }
 0x3a1   : > { %v2358_v19 = vmul.f32 %v2317_v49, %v2278_v9  ;;  %4571 = vrot.lane.b32.xlu1 %v4570_v7, %s4830_s30  ;;  %v2285_v49 = vmul.f32 %v6293_v14, %v2270_v34  ;;  %v3423_v34 = vld [vmem:[%s7091_s3] sm:$0xff]  ;;  %4057 = vmatprep.mubr.msk.f32.mxu1 %vm3424_vm3, %v3407_v23 }
 0x3a2   : > { %4055 = vmatprep.subr.mxu1 %v3423_v34 }
 0x3a3   : > { %v4575_v42 = vpack.i.bf16 %v2358_v19, %v2357_v4  ;;  %v2337_v41 = vpop.permute.xlu1 %2336  ;;  %4056 = vmatpush3.msra.mxu1 %v3423_v34 }
 0x3a4   : > { %v2325_v56 = vpop.permute.xlu0 %2324  ;;  %v2363_v7 = vmul.f32 %v2337_v41, %v2283_v39  ;;  %v4835_v41 = vmov 13   ;;  %v3413_v39 = vld [vmem:[%s6396_s16 + $0x30] sm:$0xff] }
 0x3a5   : > { %v2360_v57 = vmul.f32 %v2325_v56, %v2280_v46  ;;  %4576 = vrot.lane.b32.xlu0 %v4575_v42, %s4830_s30 }
 0x3a7   : > { %v4580_v32 = vpack.i.bf16 %v2360_v57, %v2359_v0  ;;  %v2345_v19 = vpop.permute.xlu1 %2344  ;;  %v3408_v57 = vld [vmem:[%s6396_s16 + $0x8] sm:$0xff] }
 0x3a8   : > { %v2333_v40 = vpop.permute.xlu0 %2332  ;;  %v2365_v42 = vmul.f32 %v2345_v19, %v2285_v49  ;;  %4058 = vmatmul.mubr.msk.f32.vlgmr.msra.gmra.mxu1 %vm3424_vm3, %v3408_v57  ;;  %v3419_v49 = vld [vmem:[%s6396_s16 + $0x60] sm:$0xff]  ;;  %v3421_v19 = vld [vmem:[%s6396_s16 + $0x70] sm:$0xff]  ;;  %v4836_v57 = vmov 14  }
 0x3a9   : > { %v2362_v16 = vmul.f32 %v2333_v40, %v2282_v2  ;;  %4581 = vrot.lane.b32.xlu1 %v4580_v32, %s4830_s30  ;;  %v3409_v2 = vld [vmem:[%s6396_s16 + $0x10] sm:$0xff]  ;;  %v3410_v32 = vld [vmem:[%s6396_s16 + $0x18] sm:$0xff]  ;;  %v3411_v40 = vld [vmem:[%s6396_s16 + $0x20] sm:$0xff] }
 0x3aa   : > { %4060 = vmatprep.mubr.msk.f32.mxu1 %vm3424_vm3, %v3409_v2 }
 0x3ab   : > { %v4585_v9 = vpack.i.bf16 %v2362_v16, %v2361_v47  ;;  %v3412_v47 = vld [vmem:[%s6396_s16 + $0x28] sm:$0xff]  ;;  %v3414_v16 = vld [vmem:[%s6396_s16 + $0x38] sm:$0xff] }
 0x3ac   : > { %v2341_v31 = vpop.permute.xlu0 %2340  ;;  %4061 = vmatmul.mubr.msk.f32.gmra.mxu1 %vm3424_vm3, %v3410_v32 }
 0x3ad   : > { %v2364_v4 = vmul.f32 %v2341_v31, %v2284_v52  ;;  %4586 = vrot.lane.b32.xlu0 %v4585_v9, %s4830_s30  ;;  %4063 = vmatprep.mubr.msk.f32.mxu1 %vm3424_vm3, %v3411_v40  ;;  %v3415_v52 = vld [vmem:[%s6396_s16 + $0x40] sm:$0xff]  ;;  %v3416_v9 = vld [vmem:[%s6396_s16 + $0x48] sm:$0xff]  ;;  %v3417_v31 = vld [vmem:[%s6396_s16 + $0x50] sm:$0xff] }
 0x3af   : > { %v4590_v46 = vpack.i.bf16 %v2364_v4, %v2363_v7  ;;  %v3418_v7 = vld [vmem:[%s6396_s16 + $0x58] sm:$0xff]  ;;  %v3420_v4 = vld [vmem:[%s6396_s16 + $0x68] sm:$0xff] }
 0x3b0   : > { %v2349_v15 = vpop.permute.xlu0 %2348  ;;  %4064 = vmatmul.mubr.msk.f32.gmra.mxu1 %vm3424_vm3, %v3412_v47 }
 0x3b1   : > { %v2366_v56 = vmul.f32 %v2349_v15, %v2286_v48  ;;  %4591 = vrot.lane.b32.xlu1 %v4590_v46, %s4830_s30  ;;  %4066 = vmatprep.mubr.msk.f32.mxu1 %vm3424_vm3, %v3413_v39  ;;  %v3422_v46 = vld [vmem:[%s6396_s16 + $0x78] sm:$0xff] }
 0x3b3   : > { %v4595_v0 = vpack.i.bf16 %v2366_v56, %v2365_v42 }
 0x3b4   : > { %4067 = vmatmul.mubr.msk.f32.gmra.mxu1 %vm3424_vm3, %v3414_v16 }
 0x3b5   : > { %2708 = vperm.xlu1 %4600, %v4961_v53   ;;  %4596 = vrot.lane.b32.xlu0 %v4595_v0, %s4830_s30 }
 0x3b6   : > { %4069 = vmatprep.mubr.msk.f32.mxu1 %vm3424_vm3, %v3415_v52 }
 0x3b8   : > { %4070 = vmatmul.mubr.msk.f32.gmra.mxu1 %vm3424_vm3, %v3416_v9 }
 0x3b9   : > { %2716 = vperm.xlu1 %4600, %v4993_v61   ;;  %2712 = vperm.xlu0 %4601, %v7281_v33  }
 0x3ba   : > { %4072 = vmatprep.mubr.msk.f32.mxu1 %vm3424_vm3, %v3417_v31 }
 0x3bc   : > { %4073 = vmatmul.mubr.msk.f32.gmra.mxu1 %vm3424_vm3, %v3418_v7 }
 0x3bd   : > { %2720 = vperm.xlu1 %4600, %v7286_v60   ;;  %2724 = vperm.xlu0 %4601, %v5021_v5  }
 0x3be   : > { %4075 = vmatprep.mubr.msk.f32.mxu1 %vm3424_vm3, %v3419_v49 }
 0x3c0   : > { %4076 = vmatmul.mubr.msk.f32.gmra.mxu1 %vm3424_vm3, %v3420_v4 }
 0x3c1   : > { %2728 = vperm.xlu1 %4600, %v7267_v1   ;;  %2732 = vperm.xlu0 %4601, %v7279_v36  }
 0x3c2   : > { %4078 = vmatprep.mubr.msk.f32.mxu1 %vm3424_vm3, %v3421_v19  ;;  %v7331_v19 = vld [vmem:[#allocation34_spill] sm:$0xff] }
 0x3c4   : > { %4079 = vmatmul.mubr.msk.f32.gmra.mxu1 %vm3424_vm3, %v3422_v46 }
 0x3c5   : > { %2736 = vperm.xlu1 %4600, %v7268_v22   ;;  %2740 = vperm.xlu0 %4601, %v7280_v12  }
 0x3c9   : > { %2744 = vperm.xlu1 %4600, %v7271_v13   ;;  %2748 = vperm.xlu0 %4601, %v5177_v17  }
 0x3cd   : > { %2752 = vperm.xlu1 %4600, %v7272_v59   ;;  %2756 = vperm.xlu0 %4601, %v5237_v45   ;;  %v6440_v48 = vpop.permute.xlu1 %4481 }
 0x3d1   : > { %2760 = vperm.xlu1 %4600, %v7273_v24   ;;  %2764 = vperm.xlu0 %4601, %v5297_v43   ;;  %v6448_v15 = vpop.permute.xlu0 %4486 }
 0x3d5   : > { %2768 = vperm.xlu1 %4600, %v7278_v10   ;;  %4602 = vset.pattern.permute.xlu0 %v4835_v41  ;;  %v6450_v42 = vpop.permute.xlu1 %4491 }
 0x3d6   : > { %2808 = vperm.xlu0 %4602, %v4961_v53  }
 0x3d9   : > { %4603 = vset.pattern.permute.xlu1 %v4835_v41  ;;  %v6454_v56 = vpop.permute.xlu0 %4496  ;;  %v7330_v41 = vsub.s32 0, %v5345_v11 }
 0x3da   : > { %2812 = vperm.xlu1 %4603, %v7281_v33   ;;  %2820 = vperm.xlu0 %4602, %v7286_v60  }
 0x3db   : > { %v6473_v40 = vrot.slane %v6214_v26, %v7330_v41  ;;  %v4484_v26 = vunpack.i.h.bf16 %v6440_v48 }
 0x3dd   : > { %v6456_v0 = vpop.permute.xlu1 %4501  ;;  %v1972_v16 = vmul.f32 %v6224_v54, %v6473_v40  ;;  %v1975_v52 = vmul.f32 %v6244_v62, %v6473_v40  ;;  %v1971_v7 = vmul.f32 %v6229_v37, %v6473_v40  ;;  %v1973_v49 = vmul.f32 %v6234_v21, %v6473_v40 }
 0x3de   : > { %2816 = vperm.xlu1 %4603, %v4993_v61   ;;  %2828 = vperm.xlu0 %4602, %v7267_v1   ;;  %v1974_v4 = vmul.f32 %v6239_v18, %v6473_v40  ;;  %v1976_v62 = vmul.f32 %v6250_v58, %v6473_v40  ;;  %v1978_v54 = vmul.f32 %v6261_v63, %v6473_v40  ;;  %v4483_v37 = vunpack.i.l.bf16 %v6440_v48 }
 0x3df   : > { %v2052_v46 = vmul.f32 %v7331_v19, %v1972_v16  ;;  %v2051_v16 = vmul.f32 %v5902_v6, %v1971_v7  ;;  %v1980_v19 = vmul.f32 %v6272_v29, %v6473_v40  ;;  %v6522_v63 = vmul.f32 %v6288_v3, %v6473_v40 }
 0x3e0   : > { %v2054_v48 = vmul.f32 %v5930_v51, %v1974_v4  ;;  %v1977_v6 = vmul.f32 %v6255_v30, %v6473_v40  ;;  %v6530_v7 = vmul.f32 %v6116_v20, %v6473_v40  ;;  %v2056_v51 = vmul.f32 %v6172_v8, %v1976_v62 }
 0x3e1   : > { %v6460_v34 = vpop.permute.xlu0 %4506  ;;  %v4489_v20 = vunpack.i.h.bf16 %v6448_v15  ;;  %v2058_v62 = vmul.f32 %v6181_v27, %v1978_v54 }
 0x3e2   : > { %2824 = vperm.xlu1 %4603, %v5021_v5   ;;  %2836 = vperm.xlu0 %4602, %v7268_v22  }
 0x3e5   : > { %v6462_v23 = vpop.permute.xlu1 %4511 }
 0x3e6   : > { %2832 = vperm.xlu1 %4603, %v7279_v36   ;;  %2844 = vperm.xlu0 %4602, %v7271_v13  }
 0x3e9   : > { %v6466_v2 = vpop.permute.xlu0 %4516 }
 0x3ea   : > { %2840 = vperm.xlu1 %4603, %v7280_v12   ;;  %2852 = vperm.xlu0 %4602, %v7272_v59  }
 0x3ed   : > { %v6475_v47 = vpop.permute.xlu0 %4526 }
 0x3ee   : > { %2848 = vperm.xlu1 %4603, %v5177_v17   ;;  %2860 = vperm.xlu0 %4602, %v7273_v24   ;;  %v4522_v32 = vpop.permute.xlu1 %4521  ;;  %v4529_v30 = vunpack.i.h.bf16 %v6475_v47  ;;  %v4528_v8 = vunpack.i.l.bf16 %v6475_v47 }
 0x3ef   : > { %v4524_v58 = vunpack.i.h.bf16 %v4522_v32  ;;  %v4523_v18 = vunpack.i.l.bf16 %v4522_v32  ;;  %v2559_v32 = vsel %vm261_vm0, %v2051_v16, %v4483_v37 }
 0x3f1   : > { %v2575_v37 = vsel %vm1133_vm1, %v2559_v32, %v4523_v18  ;;  %v2562_v18 = vsel %vm261_vm0, %v2054_v48, %v4489_v20 }
 0x3f2   : > { %2856 = vperm.xlu1 %4603, %v5237_v45   ;;  %2868 = vperm.xlu0 %4602, %v7278_v10   ;;  %v6477_v39 = vpop.permute.xlu1 %4531 }
 0x3f6   : > { %2864 = vperm.xlu1 %4603, %v5297_v43   ;;  %4605 = vset.pattern.permute.xlu0 %v4836_v57  ;;  %v6485_v9 = vpop.permute.xlu0 %4536 }
 0x3f7   : > { %2912 = vperm.xlu0 %4605, %v7281_v33  }
 0x3fa   : > { %4604 = vset.pattern.permute.xlu1 %v4836_v57  ;;  %v6487_v31 = vpop.permute.xlu1 %4541  ;;  %v7332_v57 = vld [vmem:[#allocation31_spill] sm:$0xff] }
 0x3fb   : > { %2908 = vperm.xlu1 %4604, %v4961_v53   ;;  %2924 = vperm.xlu0 %4605, %v5021_v5   ;;  %v2055_v41 = vmul.f32 %v7332_v57, %v1975_v52  ;;  %v2053_v52 = vmul.f32 %v5918_v28, %v1973_v49  ;;  %v6517_v57 = vmul.f32 %v6121_v38, %v6473_v40 }
 0x3fc   : > { %v1979_v28 = vmul.f32 %v6266_v44, %v6473_v40  ;;  %v6534_v38 = vmul.f32 %v6282_v50, %v6473_v40  ;;  %v2560_v49 = vsel %vm261_vm0, %v2052_v46, %v4484_v26  ;;  %v4488_v44 = vunpack.i.l.bf16 %v6448_v15 }
 0x3fd   : > { %v2576_v26 = vsel %vm1133_vm1, %v2560_v49, %v4524_v58  ;;  %v4494_v46 = vunpack.i.h.bf16 %v6450_v42  ;;  %v4534_v49 = vunpack.i.h.bf16 %v6477_v39 }
 0x3fe   : > { %v6505_v11 = vpop.permute.xlu0 %4546  ;;  %v2561_v27 = vsel %vm261_vm0, %v2053_v52, %v4488_v44 }
 0x3ff   : > { %2916 = vperm.xlu1 %4604, %v4993_v61   ;;  %2932 = vperm.xlu0 %4605, %v7279_v36   ;;  %v2564_v32 = vsel %vm261_vm0, %v2056_v51, %v4494_v46  ;;  %v4538_v46 = vunpack.i.l.bf16 %v6485_v9 }
 0x402   : > { %v6507_v21 = vpop.permute.xlu1 %4551 }
 0x403   : > { %2920 = vperm.xlu1 %4604, %v7286_v60   ;;  %2940 = vperm.xlu0 %4605, %v7280_v12  }
 0x406   : > { %v6539_v4 = vpop.permute.xlu0 %4556 }
 0x407   : > { %2928 = vperm.xlu1 %4604, %v7267_v1   ;;  %2948 = vperm.xlu0 %4605, %v5177_v17  }
 0x40b   : > { %v4562_v3 = vpop.permute.xlu1 %4561  ;;  %2936 = vperm.xlu1 %4604, %v7268_v22   ;;  %2956 = vperm.xlu0 %4605, %v5237_v45  }
 0x40c   : > { %v4564_v29 = vunpack.i.h.bf16 %v4562_v3  ;;  %v4563_v50 = vunpack.i.l.bf16 %v4562_v3  ;;  %v4493_v3 = vunpack.i.l.bf16 %v6450_v42  ;;  %v4533_v42 = vunpack.i.l.bf16 %v6477_v39 }
 0x40d   : > { %v4837_v39 = vmov 15  }
 0x40e   : > { %v2592_v16 = vsel %vm1150_vm2, %v2576_v26, %v4564_v29  ;;  %v2591_v45 = vsel %vm1150_vm2, %v2575_v37, %v4563_v50  ;;  %v2577_v29 = vsel %vm1133_vm1, %v2561_v27, %v4528_v8  ;;  %v2578_v50 = vsel %vm1133_vm1, %v2562_v18, %v4529_v30 }
 0x40f   : > { %v3945_v15 = vpack.c.bf16 %v2592_v16, %v2592_v16  ;;  %v3944_v17 = vpack.c.bf16 %v2591_v45, %v2591_v45  ;;  %2944 = vperm.xlu1 %4604, %v7271_v13   ;;  %2964 = vperm.xlu0 %4605, %v5297_v43   ;;  %v4567_v58 = vpop.permute.xlu0 %4566  ;;  %v2060_v45 = vmul.f32 %v6188_v35, %v1980_v19  ;;  %v4498_v35 = vunpack.i.l.bf16 %v6454_v56 }
 0x410   : > { %v4569_v54 = vunpack.i.h.bf16 %v4567_v58  ;;  %v4568_v47 = vunpack.i.l.bf16 %v4567_v58  ;;  %v2563_v52 = vsel %vm261_vm0, %v2055_v41, %v4493_v3  ;;  %v2580_v41 = vsel %vm1133_vm1, %v2564_v32, %v4534_v49  ;;  %v7333_v3 = vld [vmem:[#allocation53_spill] sm:$0xff] }
 0x411   : > { %2672 = vst [vmem:[%s5859_s8 + $0x1c] sm:$0xf] %v3945_v15  ;;  %2671 = vst [vmem:[%s5859_s8 + $0x8] sm:$0xf] %v3944_v17  ;;  %v4499_v17 = vunpack.i.h.bf16 %v6454_v56  ;;  %v2579_v26 = vsel %vm1133_vm1, %v2563_v52, %v4533_v42  ;;  %v4539_v37 = vunpack.i.h.bf16 %v6485_v9  ;;  %v2057_v16 = vmul.f32 %v6203_v55, %v1977_v6  ;;  %v7334_v42 = vld [vmem:[#allocation40_spill] sm:$0xff] }
 0x412   : > { %v2593_v48 = vsel %vm1150_vm2, %v2577_v29, %v4568_v47  ;;  %v2594_v44 = vsel %vm1150_vm2, %v2578_v50, %v4569_v54  ;;  %v2059_v15 = vmul.f32 %v7333_v3, %v1979_v28  ;;  %v4503_v18 = vunpack.i.l.bf16 %v6456_v0 }
 0x413   : > { %v3946_v20 = vpack.c.bf16 %v2593_v48, %v2593_v48  ;;  %v3947_v30 = vpack.c.bf16 %v2594_v44, %v2594_v44  ;;  %v4572_v8 = vpop.permute.xlu1 %4571  ;;  %2952 = vperm.xlu1 %4604, %v7272_v59   ;;  %4606 = vset.pattern.permute.xlu0 %v4837_v39  ;;  %v2566_v47 = vsel %vm261_vm0, %v2058_v62, %v4499_v17  ;;  %v4544_v49 = vunpack.i.h.bf16 %v6487_v31  ;;  %v7335_v62 = vld [vmem:[#allocation24_spill] sm:$0xff] }
 0x414   : > { %v4574_v19 = vunpack.i.h.bf16 %v4572_v8  ;;  %v4573_v51 = vunpack.i.l.bf16 %v4572_v8  ;;  %3008 = vperm.xlu0 %4606, %v4961_v53   ;;  %v4504_v53 = vunpack.i.h.bf16 %v6456_v0  ;;  %v2565_v55 = vsel %vm261_vm0, %v2057_v16, %v4498_v35 }
 0x415   : > { %2673 = vst [vmem:[%s5859_s8 + $0x30] sm:$0xf] %v3946_v20  ;;  %2674 = vst [vmem:[%s5859_s8 + $0x44] sm:$0xf] %v3947_v30  ;;  %v2581_v29 = vsel %vm1133_vm1, %v2565_v55, %v4538_v46  ;;  %v2582_v50 = vsel %vm1133_vm1, %v2566_v47, %v4539_v37  ;;  %v4543_v0 = vunpack.i.l.bf16 %v6487_v31  ;;  %v2062_v32 = vmul.f32 %v7334_v42, %v6517_v57  ;;  %v7337_v46 = vld [vmem:[#allocation45_spill] sm:$0xff] }
 0x416   : > { %v2596_v56 = vsel %vm1150_vm2, %v2580_v41, %v4574_v19  ;;  %v2595_v58 = vsel %vm1150_vm2, %v2579_v26, %v4573_v51  ;;  %v2064_v48 = vmul.f32 %v7335_v62, %v6522_v63  ;;  %v2568_v52 = vsel %vm261_vm0, %v2060_v45, %v4504_v53  ;;  %v7336_v26 = vld [vmem:[#allocation48_spill] sm:$0xff] }
 0x417   : > { %v3949_v27 = vpack.c.bf16 %v2596_v56, %v2596_v56  ;;  %v3948_v54 = vpack.c.bf16 %v2595_v58, %v2595_v58  ;;  %2960 = vperm.xlu1 %4604, %v7273_v24   ;;  %v4577_v9 = vpop.permute.xlu0 %4576  ;;  %v2567_v20 = vsel %vm261_vm0, %v2059_v15, %v4503_v18  ;;  %v4509_v57 = vunpack.i.h.bf16 %v6460_v34 }
 0x418   : > { %v4579_v6 = vunpack.i.h.bf16 %v4577_v9  ;;  %v4578_v28 = vunpack.i.l.bf16 %v4577_v9  ;;  %3020 = vperm.xlu0 %4606, %v7286_v60   ;;  %v4508_v17 = vunpack.i.l.bf16 %v6460_v34  ;;  %v2584_v19 = vsel %vm1133_vm1, %v2568_v52, %v4544_v49 }
 0x419   : > { %2676 = vst [vmem:[%s5859_s8 + $0x6c] sm:$0xf] %v3949_v27  ;;  %2675 = vst [vmem:[%s5859_s8 + $0x58] sm:$0xf] %v3948_v54  ;;  %v2583_v45 = vsel %vm1133_vm1, %v2567_v20, %v4543_v0  ;;  %v4549_v51 = vunpack.i.h.bf16 %v6505_v11  ;;  %v4548_v41 = vunpack.i.l.bf16 %v6505_v11  ;;  %v2061_v37 = vmul.f32 %v7336_v26, %v6530_v7 }
 0x41a   : > { %v2597_v44 = vsel %vm1150_vm2, %v2581_v29, %v4578_v28  ;;  %v2598_v60 = vsel %vm1150_vm2, %v2582_v50, %v4579_v6  ;;  %v2063_v34 = vmul.f32 %v7337_v46, %v6534_v38  ;;  %v4514_v3 = vunpack.i.h.bf16 %v6462_v23  ;;  %v7341_v46 = vld [vmem:[#allocation32_spill] sm:$0xff] }
 0x41b   : > { %v3950_v30 = vpack.c.bf16 %v2597_v44, %v2597_v44  ;;  %v3951_v31 = vpack.c.bf16 %v2598_v60, %v2598_v60  ;;  %v4582_v8 = vpop.permute.xlu1 %4581  ;;  %2968 = vperm.xlu1 %4604, %v7278_v10   ;;  %v4513_v15 = vunpack.i.l.bf16 %v6462_v23  ;;  %v2570_v7 = vsel %vm261_vm0, %v2062_v32, %v4509_v57  ;;  %v7338_v44 = vld [vmem:[#allocation44_spill] sm:$0xff] }
 0x41c   : > { %v4584_v63 = vunpack.i.h.bf16 %v4582_v8  ;;  %v4583_v35 = vunpack.i.l.bf16 %v4582_v8  ;;  %3028 = vperm.xlu0 %4606, %v7267_v1   ;;  %v2569_v53 = vsel %vm261_vm0, %v2061_v37, %v4508_v17  ;;  %v2586_v23 = vsel %vm1133_vm1, %v2570_v7, %v4549_v51 }
 0x41d   : > { %2677 = vst [vmem:[%s5859_s8 + $0x80] sm:$0xf] %v3950_v30  ;;  %2678 = vst [vmem:[%s5859_s8 + $0x94] sm:$0xf] %v3951_v31  ;;  %v2585_v27 = vsel %vm1133_vm1, %v2569_v53, %v4548_v41  ;;  %v4554_v54 = vunpack.i.h.bf16 %v6507_v21  ;;  %v4553_v9 = vunpack.i.l.bf16 %v6507_v21  ;;  %v1985_v47 = vmul.f32 %v6293_v14, %v6473_v40  ;;  %v7344_v53 = vld [vmem:[#allocation46_spill] sm:$0xff] }
 0x41e   : > { %v2600_v16 = vsel %vm1150_vm2, %v2584_v19, %v4584_v63  ;;  %v2599_v1 = vsel %vm1150_vm2, %v2583_v45, %v4583_v35  ;;  %v2572_v55 = vsel %vm261_vm0, %v2064_v48, %v4514_v3  ;;  %v2571_v6 = vsel %vm261_vm0, %v2063_v34, %v4513_v15 }
 0x41f   : > { %v3953_v56 = vpack.c.bf16 %v2600_v16, %v2600_v16  ;;  %v3952_v11 = vpack.c.bf16 %v2599_v1, %v2599_v1  ;;  %4607 = vset.pattern.permute.xlu1 %v4837_v39  ;;  %v4587_v58 = vpop.permute.xlu0 %4586  ;;  %v1986_v39 = vmul.f32 %v6304_v25, %v6473_v40  ;;  %v4519_v50 = vunpack.i.h.bf16 %v6466_v2 }
 0x420   : > { %v4589_v38 = vunpack.i.h.bf16 %v4587_v58  ;;  %v4588_v18 = vunpack.i.l.bf16 %v4587_v58  ;;  %3012 = vperm.xlu1 %4607, %v7281_v33   ;;  %3036 = vperm.xlu0 %4606, %v7268_v22   ;;  %v4518_v49 = vunpack.i.l.bf16 %v6466_v2  ;;  %v2588_v40 = vsel %vm1133_vm1, %v2572_v55, %v4554_v54  ;;  %v7339_v2 = vld [vmem:[#allocation52_spill] sm:$0xff] }
 0x421   : > { %2680 = vst [vmem:[%s5859_s8 + $0xbc] sm:$0xf] %v3953_v56  ;;  %2679 = vst [vmem:[%s5859_s8 + $0xa8] sm:$0xf] %v3952_v11  ;;  %v2587_v32 = vsel %vm1133_vm1, %v2571_v6, %v4553_v9  ;;  %v4559_v62 = vunpack.i.h.bf16 %v6539_v4  ;;  %v4558_v48 = vunpack.i.l.bf16 %v6539_v4  ;;  %v2066_v60 = vmul.f32 %v7338_v44, %v1986_v39  ;;  %v7346_v9 = vld [vmem:[#allocation14_spill] sm:$0xff] }
 0x422   : > { %v2601_v33 = vsel %vm1150_vm2, %v2585_v27, %v4588_v18  ;;  %v2602_v22 = vsel %vm1150_vm2, %v2586_v23, %v4589_v38  ;;  %v2065_v52 = vmul.f32 %v7339_v2, %v1985_v47  ;;  %v7345_v23 = vld [vmem:[#allocation18_spill] sm:$0xff] }
 0x423   : > { %v3954_v28 = vpack.c.bf16 %v2601_v33, %v2601_v33  ;;  %v3955_v21 = vpack.c.bf16 %v2602_v22, %v2602_v22  ;;  %v4592_v29 = vpop.permute.xlu1 %4591  ;;  %v2574_v8 = vsel %vm261_vm0, %v2066_v60, %v4519_v50  ;;  %v7347_v6 = vld [vmem:[#allocation22_spill] sm:$0xff] }
 0x424   : > { %v4594_v0 = vunpack.i.h.bf16 %v4592_v29  ;;  %v4593_v42 = vunpack.i.l.bf16 %v4592_v29  ;;  %3016 = vperm.xlu1 %4607, %v4993_v61   ;;  %3044 = vperm.xlu0 %4606, %v7271_v13   ;;  %v2573_v4 = vsel %vm261_vm0, %v2065_v52, %v4518_v49  ;;  %v2590_v35 = vsel %vm1133_vm1, %v2574_v8, %v4559_v62 }
 0x425   : > { %2681 = vst [vmem:[%s5859_s8 + $0xd0] sm:$0xf] %v3954_v28  ;;  %2682 = vst [vmem:[%s5859_s8 + $0xe4] sm:$0xf] %v3955_v21  ;;  %v2589_v63 = vsel %vm1133_vm1, %v2573_v4, %v4558_v48  ;;  %v7348_v21 = vld [vmem:[#allocation16_spill] sm:$0xff] }
 0x426   : > { %v2604_v61 = vsel %vm1150_vm2, %v2588_v40, %v4594_v0  ;;  %v2603_v13 = vsel %vm1150_vm2, %v2587_v32, %v4593_v42  ;;  %v7349_v32 = vld [vmem:[#allocation5_spill] sm:$0xff]  ;;  %v7350_v48 = vld [vmem:[#allocation4_spill] sm:$0xff] }
 0x427   : > { %v3957_v20 = vpack.c.bf16 %v2604_v61, %v2604_v61  ;;  %v3956_v30 = vpack.c.bf16 %v2603_v13, %v2603_v13  ;;  %v4597_v31 = vpop.permute.xlu0 %4596 }
 0x428   : > { %v4599_v57 = vunpack.i.h.bf16 %v4597_v31  ;;  %v4598_v17 = vunpack.i.l.bf16 %v4597_v31  ;;  %3024 = vperm.xlu1 %4607, %v5021_v5   ;;  %3052 = vperm.xlu0 %4606, %v7272_v59   ;;  %v7340_v59 = vld [vmem:[#allocation20_spill] sm:$0xff]  ;;  %v7352_v31 = vld [vmem:[#allocation39_spill] sm:$0xff] }
 0x429   : > { %2684 = vst [vmem:[%s5859_s8 + $0x10c] sm:$0xf] %v3957_v20  ;;  %2683 = vst [vmem:[%s5859_s8 + $0xf8] sm:$0xf] %v3956_v30  ;;  %v7351_v20 = vld [vmem:[#allocation41_spill] sm:$0xff] }
 0x42a   : > { %v2605_v19 = vsel %vm1150_vm2, %v2589_v63, %v4598_v17  ;;  %v2606_v45 = vsel %vm1150_vm2, %v2590_v35, %v4599_v57 }
 0x42b   : > { %v3958_v51 = vpack.c.bf16 %v2605_v19, %v2605_v19  ;;  %v3959_v41 = vpack.c.bf16 %v2606_v45, %v2606_v45  ;;  %v7353_v19 = vld [vmem:[#allocation17_spill] sm:$0xff] }
 0x42c   : > { %3032 = vperm.xlu1 %4607, %v7279_v36   ;;  %3060 = vperm.xlu0 %4606, %v7273_v24  }
 0x42d   : > { %2685 = vst [vmem:[%s5859_s8 + $0x120] sm:$0xf] %v3958_v51  ;;  %2686 = vst [vmem:[%s5859_s8 + $0x134] sm:$0xf] %v3959_v41  ;;  %v7354_v51 = vld [vmem:[#allocation10_spill] sm:$0xff] }
 0x430   : > { %3040 = vperm.xlu1 %4607, %v7280_v12   ;;  %v6670_v5 = vpop.permute.xlu1 %2708  ;;  %3068 = vperm.xlu0 %4606, %v7278_v10  }
 0x434   : > { %3048 = vperm.xlu1 %4607, %v7340_v59   ;;  %v6674_v26 = vpop.permute.xlu1 %2716  ;;  %v6676_v37 = vpop.permute.xlu0 %2712 }
 0x438   : > { %3056 = vperm.xlu1 %4607, %v7341_v46   ;;  %v6679_v34 = vpop.permute.xlu1 %2720  ;;  %v6681_v36 = vpop.permute.xlu0 %2724 }
 0x43c   : > { %3064 = vperm.xlu1 %4607, %v5297_v43   ;;  %v6684_v24 = vpop.permute.xlu1 %2728  ;;  %v6686_v12 = vpop.permute.xlu0 %2732  ;;  %v7342_v43 = vld [vmem:[#allocation49_spill] sm:$0xff] }
 0x43d   : > { %v7343_v7 = vsub.s32 5, %v7342_v43 }
 0x43f   : > { %v2790_v38 = vrot.slane %v7344_v53, %v7343_v7 }
 0x440   : > { %v6688_v16 = vpop.permute.xlu1 %2736  ;;  %v6690_v10 = vpop.permute.xlu0 %2740 }
 0x441   : > { %v2791_v54 = vmul.f32 %v7345_v23, %v2790_v38  ;;  %v2792_v39 = vmul.f32 %v7346_v9, %v2790_v38  ;;  %v2794_v28 = vmul.f32 %v7347_v6, %v2790_v38  ;;  %v2793_v29 = vmul.f32 %v7348_v21, %v2790_v38  ;;  %v6723_v23 = vld [vmem:[%s4892_s25 + $0x58] sm:$0xff]  ;;  %v6728_v9 = vld [vmem:[%s4892_s25 + $0x50] sm:$0xff] }
 0x442   : > { %v2796_v62 = vmul.f32 %v7349_v32, %v2790_v38  ;;  %v2795_v44 = vmul.f32 %v7350_v48, %v2790_v38  ;;  %v2798_v30 = vmul.f32 %v7351_v20, %v2790_v38  ;;  %v2797_v8 = vmul.f32 %v7352_v31, %v2790_v38 }
 0x443   : > { %v2800_v45 = vmul.f32 %v7353_v19, %v2790_v38  ;;  %v2799_v41 = vmul.f32 %v7354_v51, %v2790_v38  ;;  %v2805_v48 = vmul.f32 %v6293_v14, %v2790_v38  ;;  %v6760_v51 = vld [vmem:[%s4892_s25 + $0x10] sm:$0xff] }
 0x444   : > { %v6692_v1 = vpop.permute.xlu1 %2744  ;;  %v6694_v3 = vpop.permute.xlu0 %2748 }
 0x448   : > { %v6696_v15 = vpop.permute.xlu1 %2752  ;;  %v6698_v56 = vpop.permute.xlu0 %2756 }
 0x44c   : > { %v6700_v11 = vpop.permute.xlu1 %2760  ;;  %v6702_v58 = vpop.permute.xlu0 %2764 }
 0x450   : > { %v6707_v18 = vpop.permute.xlu1 %2768 }
 0x451   : > { %v2809_v27 = vpop.permute.xlu0 %2808 }
 0x452   : > { %v2871_v22 = vmul.f32 %v2809_v27, %v2791_v54  ;;  %v2802_v54 = vmul.f32 %v6723_v23, %v2790_v38 }
 0x455   : > { %v2813_v47 = vpop.permute.xlu1 %2812  ;;  %v2821_v33 = vpop.permute.xlu0 %2820 }
 0x456   : > { %v2872_v55 = vmul.f32 %v2813_v47, %v2792_v39  ;;  %v2874_v42 = vmul.f32 %v2821_v33, %v2794_v28  ;;  %v2801_v39 = vmul.f32 %v6728_v9, %v2790_v38  ;;  %v7355_v28 = vld [vmem:[#allocation7_spill] sm:$0xff] }
 0x457   : > { %v2804_v21 = vmul.f32 %v7355_v28, %v2790_v38 }
 0x458   : > { %v4608_v50 = vpack.i.bf16 %v2872_v55, %v2871_v22 }
 0x459   : > { %v2817_v49 = vpop.permute.xlu1 %2816  ;;  %v2829_v0 = vpop.permute.xlu0 %2828 }
 0x45a   : > { %v2873_v40 = vmul.f32 %v2817_v49, %v2793_v29  ;;  %4609 = vrot.lane.b32.xlu1 %v4608_v50, %s4828_s26  ;;  %v2876_v61 = vmul.f32 %v2829_v0, %v2796_v62  ;;  %v7356_v29 = vld [vmem:[#allocation26_spill] sm:$0xff]  ;;  %v2806_v62 = vmul.f32 %v6304_v25, %v2790_v38 }
 0x45b   : > { %v2803_v50 = vmul.f32 %v7356_v29, %v2790_v38  ;;  %v6754_v38 = vld [vmem:[%s4892_s25] sm:$0xff]  ;;  %v6781_v29 = vld [vmem:[%s4892_s25 + $0x30] sm:$0xff] }
 0x45c   : > { %v4613_v60 = vpack.i.bf16 %v2874_v42, %v2873_v40 }
 0x45d   : > { %v2825_v2 = vpop.permute.xlu1 %2824  ;;  %v2837_v52 = vpop.permute.xlu0 %2836 }
 0x45e   : > { %v2875_v13 = vmul.f32 %v2825_v2, %v2795_v44  ;;  %4614 = vrot.lane.b32.xlu0 %v4613_v60, %s4828_s26  ;;  %v2878_v63 = vmul.f32 %v2837_v52, %v2798_v30  ;;  %v6740_v44 = vld [vmem:[%s7090_s2 + $0x8] sm:$0xff]  ;;  %v7357_v60 = vsub.s32 6, %v7342_v43 }
 0x45f   : > { %v6749_v30 = vld [vmem:[%s4892_s25 + $0x8] sm:$0xff] }
 0x460   : > { %v4618_v4 = vpack.i.bf16 %v2876_v61, %v2875_v13  ;;  %v6745_v2 = vrot.slane %v6740_v44, %v7357_v60  ;;  %v6792_v60 = vld [vmem:[%s4892_s25 + $0x40] sm:$0xff] }
 0x461   : > { %v2833_v57 = vpop.permute.xlu1 %2832  ;;  %v2845_v17 = vpop.permute.xlu0 %2844 }
 0x462   : > { %v2877_v35 = vmul.f32 %v2833_v57, %v2797_v8  ;;  %4619 = vrot.lane.b32.xlu1 %v4618_v4, %s4828_s26  ;;  %v2880_v53 = vmul.f32 %v2845_v17, %v2800_v45  ;;  %v2892_v14 = vmul.f32 %v6749_v30, %v6745_v2  ;;  %v2891_v31 = vmul.f32 %v6754_v38, %v6745_v2 }
 0x464   : > { %v4623_v59 = vpack.i.bf16 %v2878_v63, %v2877_v35 }
 0x465   : > { %v2841_v46 = vpop.permute.xlu1 %2840  ;;  %v2853_v7 = vpop.permute.xlu0 %2852 }
 0x466   : > { %v2879_v27 = vmul.f32 %v2841_v46, %v2799_v41  ;;  %4624 = vrot.lane.b32.xlu0 %v4623_v59, %s4828_s26  ;;  %v2882_v55 = vmul.f32 %v2853_v7, %v2802_v54  ;;  %v2893_v41 = vmul.f32 %v6760_v51, %v6745_v2  ;;  %v6766_v59 = vld [vmem:[%s4892_s25 + $0x18] sm:$0xff] }
 0x467   : > { %v2894_v46 = vmul.f32 %v6766_v59, %v6745_v2 }
 0x468   : > { %v4628_v47 = vpack.i.bf16 %v2880_v53, %v2879_v27  ;;  %v6771_v27 = vld [vmem:[%s4892_s25 + $0x20] sm:$0xff] }
 0x469   : > { %v2849_v33 = vpop.permute.xlu1 %2848  ;;  %v2861_v22 = vpop.permute.xlu0 %2860  ;;  %v2895_v54 = vmul.f32 %v6771_v27, %v6745_v2 }
 0x46a   : > { %v2881_v6 = vmul.f32 %v2849_v33, %v2801_v39  ;;  %4629 = vrot.lane.b32.xlu1 %v4628_v47, %s4828_s26  ;;  %v2884_v40 = vmul.f32 %v2861_v22, %v2804_v21  ;;  %v6776_v33 = vld [vmem:[%s4892_s25 + $0x28] sm:$0xff] }
 0x46b   : > { %v2896_v22 = vmul.f32 %v6776_v33, %v6745_v2 }
 0x46c   : > { %v4633_v49 = vpack.i.bf16 %v2882_v55, %v2881_v6 }
 0x46d   : > { %v2857_v0 = vpop.permute.xlu1 %2856  ;;  %v2869_v42 = vpop.permute.xlu0 %2868 }
 0x46e   : > { %v2883_v32 = vmul.f32 %v2857_v0, %v2803_v50  ;;  %4634 = vrot.lane.b32.xlu0 %v4633_v49, %s4828_s26  ;;  %v2886_v13 = vmul.f32 %v2869_v42, %v2806_v62  ;;  %v2897_v50 = vmul.f32 %v6781_v29, %v6745_v2  ;;  %v6787_v0 = vld [vmem:[%s4892_s25 + $0x38] sm:$0xff] }
 0x46f   : > { %v2898_v42 = vmul.f32 %v6787_v0, %v6745_v2 }
 0x470   : > { %v4638_v52 = vpack.i.bf16 %v2884_v40, %v2883_v32 }
 0x471   : > { %v2865_v61 = vpop.permute.xlu1 %2864 }
 0x472   : > { %v2885_v20 = vmul.f32 %v2865_v61, %v2805_v48  ;;  %4639 = vrot.lane.b32.xlu1 %v4638_v52, %s4828_s26  ;;  %v2913_v25 = vpop.permute.xlu0 %2912  ;;  %v2899_v52 = vmul.f32 %v6792_v60, %v6745_v2 }
 0x473   : > { %v2972_v17 = vmul.f32 %v2913_v25, %v2892_v14 }
 0x474   : > { %v4643_v8 = vpack.i.bf16 %v2886_v13, %v2885_v20  ;;  %v6798_v13 = vld [vmem:[%s4892_s25 + $0x48] sm:$0xff] }
 0x475   : > { %v2900_v20 = vmul.f32 %v6798_v13, %v6745_v2 }
 0x476   : > { %v2909_v4 = vpop.permute.xlu1 %2908  ;;  %4644 = vrot.lane.b32.xlu0 %v4643_v8, %s4828_s26  ;;  %v2925_v57 = vpop.permute.xlu0 %2924 }
 0x477   : > { %v2971_v63 = vmul.f32 %v2909_v4, %v2891_v31  ;;  %v2975_v21 = vmul.f32 %v2925_v57, %v2895_v54  ;;  %v2901_v4 = vmul.f32 %v6728_v9, %v6745_v2 }
 0x479   : > { %v4648_v35 = vpack.i.bf16 %v2972_v17, %v2971_v63  ;;  %v2902_v17 = vmul.f32 %v6723_v23, %v6745_v2 }
 0x47a   : > { %v2917_v19 = vpop.permute.xlu1 %2916  ;;  %v2933_v45 = vpop.permute.xlu0 %2932 }
 0x47b   : > { %4649 = vrot.lane.b32.xlu1 %v4648_v35, %s4829_s27  ;;  %v2973_v39 = vmul.f32 %v2917_v19, %v2893_v41  ;;  %v2977_v48 = vmul.f32 %v2933_v45, %v2897_v50  ;;  %v6808_v45 = vld [vmem:[%s4892_s25 + $0x60] sm:$0xff] }
 0x47c   : > { %v2903_v41 = vmul.f32 %v6808_v45, %v6745_v2 }
 0x47e   : > { %v2921_v7 = vpop.permute.xlu1 %2920  ;;  %v2941_v53 = vpop.permute.xlu0 %2940 }
 0x47f   : > { %v2974_v47 = vmul.f32 %v2921_v7, %v2894_v46  ;;  %v2979_v8 = vmul.f32 %v2941_v53, %v2899_v52  ;;  %v6814_v53 = vld [vmem:[%s4892_s25 + $0x68] sm:$0xff] }
 0x480   : > { %v2904_v54 = vmul.f32 %v6814_v53, %v6745_v2 }
 0x481   : > { %v4653_v55 = vpack.i.bf16 %v2974_v47, %v2973_v39  ;;  %v4059_v39 = vpop.f32.mrf.mxu1 }
 0x482   : > { %v2929_v6 = vpop.permute.xlu1 %2928  ;;  %v2949_v28 = vpop.permute.xlu0 %2948 }
 0x483   : > { %v2976_v49 = vmul.f32 %v2929_v6, %v2896_v22  ;;  %4654 = vrot.lane.b32.xlu0 %v4653_v55, %s4829_s27  ;;  %v2981_v19 = vmul.f32 %v2949_v28, %v2901_v4  ;;  %v3619_v22 = vmul.f32 0.70710677, %v4059_v39  ;;  %v6819_v55 = vld [vmem:[%s4892_s25 + $0x70] sm:$0xff] }
 0x484   : > { %v2905_v6 = vmul.f32 %v6819_v55, %v6745_v2 }
 0x485   : > { %v4658_v40 = vpack.i.bf16 %v2976_v49, %v2975_v21  ;;  %v6824_v21 = vld [vmem:[%s4892_s25 + $0x78] sm:$0xff]  ;;  %v3539_v49 = vpop.f32.mrf.mxu1 }
 0x486   : > { %v2937_v32 = vpop.permute.xlu1 %2936  ;;  %v2957_v62 = vpop.permute.xlu0 %2956  ;;  %v2906_v50 = vmul.f32 %v6824_v21, %v6745_v2  ;;  %v3618_v52 = vmul.f32 0.70710677, %v3539_v49 }
 0x487   : > { %v2978_v61 = vmul.f32 %v2937_v32, %v2898_v42  ;;  %4659 = vrot.lane.b32.xlu1 %v4658_v40, %s4829_s27  ;;  %v2983_v42 = vmul.f32 %v2957_v62, %v2903_v41 }
 0x488   : > { %v3976_v2 = vpack.c.bf16 %v3618_v52, %v3618_v52 }
 0x489   : > { %v4663_v25 = vpack.i.bf16 %v2978_v61, %v2977_v48  ;;  %v3977_v48 = vpack.c.bf16 %v3619_v22, %v3619_v22  ;;  %v7358_v61 = vsub.s32 7, %v7342_v43 }
 0x48a   : > { %v2945_v14 = vpop.permute.xlu1 %2944  ;;  %v2965_v31 = vpop.permute.xlu0 %2964  ;;  %3699 = vst.msk [vmem:[%s5859_s8 + $0x10] sm:$0xf] %vm3698_vm4, %v3976_v2 }
 0x48b   : > { %v2980_v57 = vmul.f32 %v2945_v14, %v2900_v20  ;;  %4664 = vrot.lane.b32.xlu0 %v4663_v25, %s4829_s27  ;;  %v6832_v20 = vrot.slane %v6740_v44, %v7358_v61  ;;  %v4062_v25 = vpop.f32.mrf.mxu1  ;;  %3700 = vst.msk [vmem:[%s5859_s8 + $0x24] sm:$0xf] %vm3698_vm4, %v3977_v48 }
 0x48c   : > { %v3621_v62 = vmul.f32 0.70710677, %v4062_v25 }
 0x48d   : > { %v4668_v63 = vpack.i.bf16 %v2980_v57, %v2979_v8  ;;  %v3549_v4 = vpop.f32.mrf.mxu1  ;;  %v2985_v57 = vmul.f32 %v2965_v31, %v2905_v6  ;;  %v2992_v41 = vmul.f32 %v6749_v30, %v6832_v20  ;;  %v2994_v6 = vmul.f32 %v6766_v59, %v6832_v20 }
 0x48e   : > { %v2953_v35 = vpop.permute.xlu1 %2952 }
 0x48f   : > { %v2982_v46 = vmul.f32 %v2953_v35, %v2902_v17  ;;  %4669 = vrot.lane.b32.xlu1 %v4668_v63, %s4829_s27  ;;  %v3009_v7 = vpop.permute.xlu0 %3008  ;;  %v3620_v35 = vmul.f32 0.70710677, %v3549_v4 }
 0x491   : > { %v4673_v47 = vpack.i.bf16 %v2982_v46, %v2981_v19  ;;  %v2991_v19 = vmul.f32 %v6754_v38, %v6832_v20  ;;  %v3979_v46 = vpack.c.bf16 %v3621_v62, %v3621_v62  ;;  %v2996_v62 = vmul.f32 %v6776_v33, %v6832_v20 }
 0x492   : > { %v2961_v28 = vpop.permute.xlu1 %2960 }
 0x493   : > { %v2984_v40 = vmul.f32 %v2961_v28, %v2904_v54  ;;  %4674 = vrot.lane.b32.xlu0 %v4673_v47, %s4829_s27  ;;  %v3021_v32 = vpop.permute.xlu0 %3020  ;;  %v4065_v54 = vpop.f32.mrf.mxu1  ;;  %v3978_v47 = vpack.c.bf16 %v3620_v35, %v3620_v35  ;;  %3702 = vst.msk [vmem:[%s5859_s8 + $0x4c] sm:$0xf] %vm3698_vm4, %v3979_v46  ;;  %v3071_v49 = vmul.f32 %v3009_v7, %v2991_v19 }
 0x494   : > { %v3623_v31 = vmul.f32 0.70710677, %v4065_v54  ;;  %v2995_v35 = vmul.f32 %v6771_v27, %v6832_v20 }
 0x495   : > { %v4678_v14 = vpack.i.bf16 %v2984_v40, %v2983_v42  ;;  %v3559_v22 = vpop.f32.mrf.mxu1  ;;  %3701 = vst.msk [vmem:[%s5859_s8 + $0x38] sm:$0xf] %vm3698_vm4, %v3978_v47  ;;  %v2993_v40 = vmul.f32 %v6760_v51, %v6832_v20 }
 0x496   : > { %v2969_v8 = vpop.permute.xlu1 %2968  ;;  %v3981_v48 = vpack.c.bf16 %v3623_v31, %v3623_v31  ;;  %v2998_v31 = vmul.f32 %v6787_v0, %v6832_v20 }
 0x497   : > { %v2986_v17 = vmul.f32 %v2969_v8, %v2906_v50  ;;  %4679 = vrot.lane.b32.xlu1 %v4678_v14, %s4829_s27  ;;  %v3029_v63 = vpop.permute.xlu0 %3028  ;;  %v3622_v50 = vmul.f32 0.70710677, %v3559_v22  ;;  %v4068_v52 = vpop.f32.mrf.mxu1 }
 0x498   : > { %3704 = vst.msk [vmem:[%s5859_s8 + $0x74] sm:$0xf] %vm3698_vm4, %v3981_v48  ;;  %v3625_v2 = vmul.f32 0.70710677, %v4068_v52 }
 0x499   : > { %v4683_v39 = vpack.i.bf16 %v2986_v17, %v2985_v57  ;;  %v3980_v25 = vpack.c.bf16 %v3622_v50, %v3622_v50  ;;  %v3569_v8 = vpop.f32.mrf.mxu1  ;;  %v3074_v57 = vmul.f32 %v3021_v32, %v2994_v6 }
 0x49a   : > { %v3624_v7 = vmul.f32 0.70710677, %v3569_v8  ;;  %v3983_v19 = vpack.c.bf16 %v3625_v2, %v3625_v2  ;;  %v3000_v2 = vmul.f32 %v6798_v13, %v6832_v20 }
 0x49b   : > { %v3013_v28 = vpop.permute.xlu1 %3012  ;;  %4684 = vrot.lane.b32.xlu0 %v4683_v39, %s4829_s27  ;;  %v3037_v61 = vpop.permute.xlu0 %3036  ;;  %3703 = vst.msk [vmem:[%s5859_s8 + $0x60] sm:$0xf] %vm3698_vm4, %v3980_v25 }
 0x49c   : > { %v3072_v42 = vmul.f32 %v3013_v28, %v2992_v41  ;;  %v4071_v41 = vpop.f32.mrf.mxu1  ;;  %v3982_v46 = vpack.c.bf16 %v3624_v7, %v3624_v7  ;;  %3706 = vst.msk [vmem:[%s5859_s8 + $0x9c] sm:$0xf] %vm3698_vm4, %v3983_v19  ;;  %v3076_v28 = vmul.f32 %v3029_v63, %v2996_v62  ;;  %v3078_v62 = vmul.f32 %v3037_v61, %v2998_v31 }
 0x49d   : > { %v3627_v39 = vmul.f32 0.70710677, %v4071_v41  ;;  %v2999_v7 = vmul.f32 %v6792_v60, %v6832_v20 }
 0x49e   : > { %v4688_v14 = vpack.i.bf16 %v3072_v42, %v3071_v49  ;;  %v3579_v47 = vpop.f32.mrf.mxu1  ;;  %3705 = vst.msk [vmem:[%s5859_s8 + $0x88] sm:$0xf] %vm3698_vm4, %v3982_v46  ;;  %v2997_v49 = vmul.f32 %v6781_v29, %v6832_v20 }
 0x49f   : > { %v3017_v4 = vpop.permute.xlu1 %3016  ;;  %v3045_v22 = vpop.permute.xlu0 %3044  ;;  %v3626_v6 = vmul.f32 0.70710677, %v3579_v47  ;;  %v3985_v42 = vpack.c.bf16 %v3627_v39, %v3627_v39  ;;  %v3002_v39 = vmul.f32 %v6723_v23, %v6832_v20 }
 0x4a0   : > { %v3073_v17 = vmul.f32 %v3017_v4, %v2993_v40  ;;  %4689 = vrot.lane.b32.xlu1 %v4688_v14, %s4830_s30  ;;  %v4074_v40 = vpop.f32.mrf.mxu1  ;;  %v3080_v31 = vmul.f32 %v3045_v22, %v3000_v2 }
 0x4a1   : > { %v3984_v48 = vpack.c.bf16 %v3626_v6, %v3626_v6  ;;  %3708 = vst.msk [vmem:[%s5859_s8 + $0xc4] sm:$0xf] %vm3698_vm4, %v3985_v42  ;;  %v3629_v25 = vmul.f32 0.70710677, %v4074_v40  ;;  %v3001_v6 = vmul.f32 %v6728_v9, %v6832_v20 }
 0x4a2   : > { %v4693_v54 = vpack.i.bf16 %v3074_v57, %v3073_v17  ;;  %v3589_v14 = vpop.f32.mrf.mxu1 }
 0x4a3   : > { %v3025_v32 = vpop.permute.xlu1 %3024  ;;  %3707 = vst.msk [vmem:[%s5859_s8 + $0xb0] sm:$0xf] %vm3698_vm4, %v3984_v48  ;;  %v3628_v63 = vmul.f32 0.70710677, %v3589_v14  ;;  %v3987_v57 = vpack.c.bf16 %v3629_v25, %v3629_v25 }
 0x4a4   : > { %v3075_v50 = vmul.f32 %v3025_v32, %v2995_v35  ;;  %4694 = vrot.lane.b32.xlu0 %v4693_v54, %s4830_s30  ;;  %v4077_v17 = vpop.f32.mrf.mxu1  ;;  %v3053_v35 = vpop.permute.xlu0 %3052 }
 0x4a5   : > { %v3986_v19 = vpack.c.bf16 %v3628_v63, %v3628_v63  ;;  %3710 = vst.msk [vmem:[%s5859_s8 + $0xec] sm:$0xf] %vm3698_vm4, %v3987_v57  ;;  %v3631_v46 = vmul.f32 0.70710677, %v4077_v17  ;;  %v3082_v2 = vmul.f32 %v3053_v35, %v3002_v39  ;;  %v3003_v63 = vmul.f32 %v6808_v45, %v6832_v20 }
 0x4a6   : > { %v4698_v52 = vpack.i.bf16 %v3076_v28, %v3075_v50  ;;  %v3599_v54 = vpop.f32.mrf.mxu1  ;;  %v3005_v35 = vmul.f32 %v6819_v55, %v6832_v20 }
 0x4a7   : > { %v3033_v8 = vpop.permute.xlu1 %3032  ;;  %3709 = vst.msk [vmem:[%s5859_s8 + $0xd8] sm:$0xf] %vm3698_vm4, %v3986_v19  ;;  %v3630_v47 = vmul.f32 0.70710677, %v3599_v54  ;;  %v3989_v28 = vpack.c.bf16 %v3631_v46, %v3631_v46  ;;  %v3006_v19 = vmul.f32 %v6824_v21, %v6832_v20 }
 0x4a8   : > { %v3077_v4 = vmul.f32 %v3033_v8, %v2997_v49  ;;  %4699 = vrot.lane.b32.xlu1 %v4698_v52, %s4830_s30  ;;  %v4080_v50 = vpop.f32.mrf.mxu1  ;;  %v3004_v52 = vmul.f32 %v6814_v53, %v6832_v20  ;;  %v3061_v22 = vpop.permute.xlu0 %3060 }
 0x4a9   : > { %v3988_v49 = vpack.c.bf16 %v3630_v47, %v3630_v47  ;;  %3712 = vst.msk [vmem:[%s5859_s8 + $0x114] sm:$0xf] %vm3698_vm4, %v3989_v28  ;;  %v3633_v40 = vmul.f32 0.70710677, %v4080_v50 }
 0x4aa   : > { %v4703_v41 = vpack.i.bf16 %v3078_v62, %v3077_v4  ;;  %v3609_v48 = vpop.f32.mrf.mxu1  ;;  %v3084_v17 = vmul.f32 %v3061_v22, %v3004_v52 }
 0x4ab   : > { %v3041_v61 = vpop.permute.xlu1 %3040  ;;  %3711 = vst.msk [vmem:[%s5859_s8 + $0x100] sm:$0xf] %vm3698_vm4, %v3988_v49  ;;  %v3632_v14 = vmul.f32 0.70710677, %v3609_v48  ;;  %v3991_v62 = vpack.c.bf16 %v3633_v40, %v3633_v40 }
 0x4ac   : > { %v3079_v32 = vmul.f32 %v3041_v61, %v2999_v7  ;;  %4704 = vrot.lane.b32.xlu0 %v4703_v41, %s4830_s30  ;;  %v3069_v46 = vpop.permute.xlu0 %3068 }
 0x4ad   : > { %v3990_v4 = vpack.c.bf16 %v3632_v14, %v3632_v14  ;;  %3714 = vst.msk [vmem:[%s5859_s8 + $0x13c] sm:$0xf] %vm3698_vm4, %v3991_v62  ;;  %v3086_v61 = vmul.f32 %v3069_v46, %v3006_v19 }
 0x4ae   : > { %v4708_v42 = vpack.i.bf16 %v3080_v31, %v3079_v32 }
 0x4af   : > { %v3049_v25 = vpop.permute.xlu1 %3048  ;;  %3713 = vst.msk [vmem:[%s5859_s8 + $0x128] sm:$0xf] %vm3698_vm4, %v3990_v4 }
 0x4b0   : > { %v3081_v8 = vmul.f32 %v3049_v25, %v3001_v6  ;;  %4709 = vrot.lane.b32.xlu1 %v4708_v42, %s4830_s30  ;;  %v7359_v25 = vsub.s32 4, %v7342_v43 }
 0x4b2   : > { %v4713_v7 = vpack.i.bf16 %v3082_v2, %v3081_v8  ;;  %v6925_v14 = vrot.slane %v6740_v44, %v7359_v25 }
 0x4b3   : > { %v3057_v57 = vpop.permute.xlu1 %3056 }
 0x4b4   : > { %v3083_v41 = vmul.f32 %v3057_v57, %v3003_v63  ;;  %4714 = vrot.lane.b32.xlu0 %v4713_v7, %s4830_s30  ;;  %v2691_v63 = vmul.f32 %v6754_v38, %v6925_v14  ;;  %v2692_v62 = vmul.f32 %v6749_v30, %v6925_v14  ;;  %v2693_v4 = vmul.f32 %v6760_v51, %v6925_v14 }
 0x4b5   : > { %v2694_v7 = vmul.f32 %v6766_v59, %v6925_v14  ;;  %v2695_v43 = vmul.f32 %v6771_v27, %v6925_v14  ;;  %v2696_v44 = vmul.f32 %v6776_v33, %v6925_v14  ;;  %v2697_v30 = vmul.f32 %v6781_v29, %v6925_v14 }
 0x4b6   : > { %v4718_v54 = vpack.i.bf16 %v3084_v17, %v3083_v41  ;;  %v2698_v51 = vmul.f32 %v6787_v0, %v6925_v14  ;;  %v2699_v59 = vmul.f32 %v6792_v60, %v6925_v14  ;;  %v2700_v27 = vmul.f32 %v6798_v13, %v6925_v14 }
 0x4b7   : > { %v3065_v39 = vpop.permute.xlu1 %3064  ;;  %v2771_v33 = vmul.f32 %v6670_v5, %v2691_v63  ;;  %v2772_v41 = vmul.f32 %v6676_v37, %v2692_v62  ;;  %v6963_v29 = vmul.f32 %v6723_v23, %v6925_v14  ;;  %v6967_v0 = vmul.f32 %v6808_v45, %v6925_v14 }
 0x4b8   : > { %v3085_v47 = vmul.f32 %v3065_v39, %v3005_v35  ;;  %4719 = vrot.lane.b32.xlu1 %v4718_v54, %s4830_s30  ;;  %v6959_v54 = vmul.f32 %v6728_v9, %v6925_v14  ;;  %v6971_v60 = vmul.f32 %v6814_v53, %v6925_v14  ;;  %v2773_v5 = vmul.f32 %v6674_v26, %v2693_v4 }
 0x4b9   : > { %v2774_v37 = vmul.f32 %v6679_v34, %v2694_v7  ;;  %v2775_v26 = vmul.f32 %v6681_v36, %v2695_v43  ;;  %v2776_v34 = vmul.f32 %v6684_v24, %v2696_v44 }
 0x4ba   : > { %v4723_v31 = vpack.i.bf16 %v3086_v61, %v3085_v47 }
 0x4bc   : > { %4724 = vrot.lane.b32.xlu0 %v4723_v31, %s4830_s30 }
 0x4cc   : > { %v4610_v32 = vpop.permute.xlu1 %4609 }
 0x4cd   : > { %v4612_v57 = vunpack.i.h.bf16 %v4610_v32  ;;  %v4611_v17 = vunpack.i.l.bf16 %v4610_v32 }
 0x4cf   : > { %v3280_v13 = vsel %vm261_vm0, %v2772_v41, %v4612_v57  ;;  %v3279_v9 = vsel %vm261_vm0, %v2771_v33, %v4611_v17 }
 0x4d0   : > { %v4615_v6 = vpop.permute.xlu0 %4614 }
 0x4d1   : > { %v4617_v61 = vunpack.i.h.bf16 %v4615_v6  ;;  %v4616_v47 = vunpack.i.l.bf16 %v4615_v6 }
 0x4d3   : > { %v3282_v33 = vsel %vm261_vm0, %v2774_v37, %v4617_v61 }
 0x4d4   : > { %v6908_v28 = vpop.permute.xlu1 %4619 }
 0x4d5   : > { %v4622_v6 = vunpack.i.h.bf16 %v6908_v28  ;;  %v4621_v4 = vunpack.i.l.bf16 %v6908_v28  ;;  %v2777_v28 = vmul.f32 %v6686_v12, %v2697_v30 }
 0x4d8   : > { %v6910_v50 = vpop.permute.xlu0 %4624 }
 0x4dc   : > { %v6912_v49 = vpop.permute.xlu1 %4629 }
 0x4e0   : > { %v6914_v42 = vpop.permute.xlu0 %4634 }
 0x4e4   : > { %v6916_v20 = vpop.permute.xlu1 %4639 }
 0x4e8   : > { %v6918_v40 = vpop.permute.xlu0 %4644 }
 0x4ed   : > { %v4650_v48 = vpop.permute.xlu1 %4649 }
 0x4ee   : > { %v4652_v35 = vunpack.i.h.bf16 %v4650_v48  ;;  %v4651_v46 = vunpack.i.l.bf16 %v4650_v48 }
 0x4f0   : > { %v3296_v32 = vsel %vm1133_vm1, %v3280_v13, %v4652_v35  ;;  %v3295_v53 = vsel %vm1133_vm1, %v3279_v9, %v4651_v46  ;;  %v2778_v46 = vmul.f32 %v6688_v16, %v2698_v51  ;;  %v3284_v13 = vsel %vm261_vm0, %v2776_v34, %v4622_v6 }
 0x4f1   : > { %v3283_v9 = vsel %vm261_vm0, %v2775_v26, %v4621_v4  ;;  %v4632_v26 = vunpack.i.h.bf16 %v6912_v49  ;;  %v4631_v34 = vunpack.i.l.bf16 %v6912_v49  ;;  %v2781_v49 = vmul.f32 %v6694_v3, %v6959_v54 }
 0x4f2   : > { %v4636_v3 = vunpack.i.l.bf16 %v6914_v42 }
 0x4f5   : > { %v4655_v52 = vpop.permute.xlu0 %4654 }
 0x4f6   : > { %v4657_v48 = vunpack.i.h.bf16 %v4655_v52  ;;  %v4656_v25 = vunpack.i.l.bf16 %v4655_v52  ;;  %v3281_v52 = vsel %vm261_vm0, %v2773_v5, %v4616_v47 }
 0x4f8   : > { %v3297_v24 = vsel %vm1133_vm1, %v3281_v52, %v4656_v25  ;;  %v3298_v44 = vsel %vm1133_vm1, %v3282_v33, %v4657_v48  ;;  %v2780_v48 = vmul.f32 %v6692_v1, %v2700_v27 }
 0x4f9   : > { %v6920_v22 = vpop.permute.xlu1 %4659 }
 0x4fa   : > { %v4662_v41 = vunpack.i.h.bf16 %v6920_v22  ;;  %v4661_v35 = vunpack.i.l.bf16 %v6920_v22  ;;  %v4627_v22 = vunpack.i.h.bf16 %v6910_v50 }
 0x4fc   : > { %v3300_v16 = vsel %vm1133_vm1, %v3284_v13, %v4662_v41  ;;  %v3299_v51 = vsel %vm1133_vm1, %v3283_v9, %v4661_v35  ;;  %v4637_v41 = vunpack.i.h.bf16 %v6914_v42  ;;  %v4642_v9 = vunpack.i.h.bf16 %v6916_v20 }
 0x4fd   : > { %v6927_v2 = vpop.permute.xlu0 %4664 }
 0x501   : > { %v6929_v8 = vpop.permute.xlu1 %4669 }
 0x505   : > { %v6943_v19 = vpop.permute.xlu0 %4674 }
 0x509   : > { %v6945_v38 = vpop.permute.xlu1 %4679 }
 0x50d   : > { %v6977_v39 = vpop.permute.xlu0 %4684 }
 0x512   : > { %v4690_v23 = vpop.permute.xlu1 %4689 }
 0x513   : > { %v4692_v31 = vunpack.i.h.bf16 %v4690_v23  ;;  %v4691_v45 = vunpack.i.l.bf16 %v4690_v23 }
 0x515   : > { %v3312_v63 = vsel %vm1150_vm2, %v3296_v32, %v4692_v31  ;;  %v3311_v62 = vsel %vm1150_vm2, %v3295_v53, %v4691_v45  ;;  %v4626_v31 = vunpack.i.l.bf16 %v6910_v50  ;;  %v4667_v45 = vunpack.i.h.bf16 %v6927_v2 }
 0x516   : > { %v3961_v7 = vpack.c.bf16 %v3312_v63, %v3312_v63  ;;  %v3960_v57 = vpack.c.bf16 %v3311_v62, %v3311_v62  ;;  %v4695_v17 = vpop.permute.xlu0 %4694  ;;  %v4666_v32 = vunpack.i.l.bf16 %v6927_v2  ;;  %v2779_v53 = vmul.f32 %v6690_v10, %v2699_v59 }
 0x517   : > { %v4697_v36 = vunpack.i.h.bf16 %v4695_v17  ;;  %v4696_v43 = vunpack.i.l.bf16 %v4695_v17  ;;  %v3286_v2 = vsel %vm261_vm0, %v2778_v46, %v4627_v22  ;;  %v3285_v4 = vsel %vm261_vm0, %v2777_v28, %v4626_v31 }
 0x518   : > { %3392 = vst [vmem:[%s5859_s8 + $0x20] sm:$0xf] %v3961_v7  ;;  %3391 = vst [vmem:[%s5859_s8 + $0xc] sm:$0xf] %v3960_v57  ;;  %v3301_v1 = vsel %vm1133_vm1, %v3285_v4, %v4666_v32  ;;  %v3302_v27 = vsel %vm1133_vm1, %v3286_v2, %v4667_v45  ;;  %v4672_v7 = vunpack.i.h.bf16 %v6929_v8  ;;  %v4671_v57 = vunpack.i.l.bf16 %v6929_v8 }
 0x519   : > { %v3313_v37 = vsel %vm1150_vm2, %v3297_v24, %v4696_v43  ;;  %v3314_v5 = vsel %vm1150_vm2, %v3298_v44, %v4697_v36  ;;  %v2782_v17 = vmul.f32 %v6696_v15, %v6963_v29  ;;  %v3288_v36 = vsel %vm261_vm0, %v2780_v48, %v4632_v26 }
 0x51a   : > { %v3962_v23 = vpack.c.bf16 %v3313_v37, %v3313_v37  ;;  %v3963_v61 = vpack.c.bf16 %v3314_v5, %v3314_v5  ;;  %v4700_v47 = vpop.permute.xlu1 %4699  ;;  %v3287_v43 = vsel %vm261_vm0, %v2779_v53, %v4631_v34  ;;  %v3304_v15 = vsel %vm1133_vm1, %v3288_v36, %v4672_v7 }
 0x51b   : > { %v4702_v12 = vunpack.i.h.bf16 %v4700_v47  ;;  %v4701_v30 = vunpack.i.l.bf16 %v4700_v47  ;;  %v3303_v29 = vsel %vm1133_vm1, %v3287_v43, %v4671_v57  ;;  %v4677_v28 = vunpack.i.h.bf16 %v6943_v19 }
 0x51c   : > { %3393 = vst [vmem:[%s5859_s8 + $0x34] sm:$0xf] %v3962_v23  ;;  %3394 = vst [vmem:[%s5859_s8 + $0x48] sm:$0xf] %v3963_v61  ;;  %v4676_v46 = vunpack.i.l.bf16 %v6943_v19  ;;  %v2783_v37 = vmul.f32 %v6698_v56, %v6967_v0  ;;  %v2784_v5 = vmul.f32 %v6700_v11, %v6971_v60  ;;  %v4641_v23 = vunpack.i.l.bf16 %v6916_v20 }
 0x51d   : > { %v3316_v25 = vsel %vm1150_vm2, %v3300_v16, %v4702_v12  ;;  %v3315_v50 = vsel %vm1150_vm2, %v3299_v51, %v4701_v30  ;;  %v3290_v22 = vsel %vm261_vm0, %v2782_v17, %v4637_v41  ;;  %v3289_v56 = vsel %vm261_vm0, %v2781_v49, %v4636_v3 }
 0x51e   : > { %v3965_v63 = vpack.c.bf16 %v3316_v25, %v3316_v25  ;;  %v3964_v62 = vpack.c.bf16 %v3315_v50, %v3315_v50  ;;  %v4705_v6 = vpop.permute.xlu0 %4704  ;;  %v3305_v11 = vsel %vm1133_vm1, %v3289_v56, %v4676_v46  ;;  %v3306_v60 = vsel %vm1133_vm1, %v3290_v22, %v4677_v28 }
 0x51f   : > { %v4707_v10 = vunpack.i.h.bf16 %v4705_v6  ;;  %v4706_v59 = vunpack.i.l.bf16 %v4705_v6  ;;  %v4682_v12 = vunpack.i.h.bf16 %v6945_v38  ;;  %v4681_v30 = vunpack.i.l.bf16 %v6945_v38 }
 0x520   : > { %3396 = vst [vmem:[%s5859_s8 + $0x70] sm:$0xf] %v3965_v63  ;;  %3395 = vst [vmem:[%s5859_s8 + $0x5c] sm:$0xf] %v3964_v62  ;;  %v2705_v20 = vmul.f32 %v6819_v55, %v6925_v14  ;;  %v2706_v16 = vmul.f32 %v6824_v21, %v6925_v14  ;;  %v3292_v32 = vsel %vm261_vm0, %v2784_v5, %v4642_v9  ;;  %v4647_v50 = vunpack.i.h.bf16 %v6918_v40 }
 0x521   : > { %v3317_v33 = vsel %vm1150_vm2, %v3301_v1, %v4706_v59  ;;  %v3318_v52 = vsel %vm1150_vm2, %v3302_v27, %v4707_v10  ;;  %v3291_v53 = vsel %vm261_vm0, %v2783_v37, %v4641_v23  ;;  %v4646_v55 = vunpack.i.l.bf16 %v6918_v40 }
 0x522   : > { %v3966_v24 = vpack.c.bf16 %v3317_v33, %v3317_v33  ;;  %v3967_v8 = vpack.c.bf16 %v3318_v52, %v3318_v52  ;;  %v4710_v44 = vpop.permute.xlu1 %4709  ;;  %v3308_v21 = vsel %vm1133_vm1, %v3292_v32, %v4682_v12  ;;  %v3307_v14 = vsel %vm1133_vm1, %v3291_v53, %v4681_v30 }
 0x523   : > { %v4712_v54 = vunpack.i.h.bf16 %v4710_v44  ;;  %v4711_v35 = vunpack.i.l.bf16 %v4710_v44  ;;  %v4687_v63 = vunpack.i.h.bf16 %v6977_v39  ;;  %v4686_v62 = vunpack.i.l.bf16 %v6977_v39 }
 0x524   : > { %3397 = vst [vmem:[%s5859_s8 + $0x84] sm:$0xf] %v3966_v24  ;;  %3398 = vst [vmem:[%s5859_s8 + $0x98] sm:$0xf] %v3967_v8  ;;  %v2785_v6 = vmul.f32 %v6702_v58, %v2705_v20  ;;  %v2786_v2 = vmul.f32 %v6707_v18, %v2706_v16 }
 0x525   : > { %v3320_v42 = vsel %vm1150_vm2, %v3304_v15, %v4712_v54  ;;  %v3319_v13 = vsel %vm1150_vm2, %v3303_v29, %v4711_v35 }
 0x526   : > { %v3969_v61 = vpack.c.bf16 %v3320_v42, %v3320_v42  ;;  %v3968_v19 = vpack.c.bf16 %v3319_v13, %v3319_v13  ;;  %v4715_v47 = vpop.permute.xlu0 %4714  ;;  %v3294_v27 = vsel %vm261_vm0, %v2786_v2, %v4647_v50  ;;  %v3293_v39 = vsel %vm261_vm0, %v2785_v6, %v4646_v55 }
 0x527   : > { %v4717_v0 = vunpack.i.h.bf16 %v4715_v47  ;;  %v4716_v31 = vunpack.i.l.bf16 %v4715_v47  ;;  %v3309_v49 = vsel %vm1133_vm1, %v3293_v39, %v4686_v62  ;;  %v3310_v58 = vsel %vm1133_vm1, %v3294_v27, %v4687_v63 }
 0x528   : > { %3400 = vst [vmem:[%s5859_s8 + $0xc0] sm:$0xf] %v3969_v61  ;;  %3399 = vst [vmem:[%s5859_s8 + $0xac] sm:$0xf] %v3968_v19 }
 0x529   : > { %v3321_v51 = vsel %vm1150_vm2, %v3305_v11, %v4716_v31  ;;  %v3322_v45 = vsel %vm1150_vm2, %v3306_v60, %v4717_v0 }
 0x52a   : > { %v3970_v48 = vpack.c.bf16 %v3321_v51, %v3321_v51  ;;  %v3971_v38 = vpack.c.bf16 %v3322_v45, %v3322_v45  ;;  %v4720_v25 = vpop.permute.xlu1 %4719 }
 0x52b   : > { %v4722_v26 = vunpack.i.h.bf16 %v4720_v25  ;;  %v4721_v34 = vunpack.i.l.bf16 %v4720_v25 }
 0x52c   : > { %3401 = vst [vmem:[%s5859_s8 + $0xd4] sm:$0xf] %v3970_v48  ;;  %3402 = vst [vmem:[%s5859_s8 + $0xe8] sm:$0xf] %v3971_v38 }
 0x52d   : > { %v3324_v40 = vsel %vm1150_vm2, %v3308_v21, %v4722_v26  ;;  %v3323_v4 = vsel %vm1150_vm2, %v3307_v14, %v4721_v34 }
 0x52e   : > { %v3973_v10 = vpack.c.bf16 %v3324_v40, %v3324_v40  ;;  %v3972_v59 = vpack.c.bf16 %v3323_v4, %v3323_v4  ;;  %v4725_v1 = vpop.permute.xlu0 %4724 }
 0x52f   : > { %v4727_v7 = vunpack.i.h.bf16 %v4725_v1  ;;  %v4726_v57 = vunpack.i.l.bf16 %v4725_v1 }
 0x530   : > { %3404 = vst [vmem:[%s5859_s8 + $0x110] sm:$0xf] %v3973_v10  ;;  %3403 = vst [vmem:[%s5859_s8 + $0xfc] sm:$0xf] %v3972_v59 }
 0x531   : > { %v3325_v18 = vsel %vm1150_vm2, %v3309_v49, %v4726_v57  ;;  %v3326_v17 = vsel %vm1150_vm2, %v3310_v58, %v4727_v7 }
 0x532   : > { %v3974_v33 = vpack.c.bf16 %v3325_v18, %v3325_v18  ;;  %v3975_v52 = vpack.c.bf16 %v3326_v17, %v3326_v17 }
 0x534   : > { %3405 = vst [vmem:[%s5859_s8 + $0x124] sm:$0xf] %v3974_v33  ;;  %3406 = vst [vmem:[%s5859_s8 + $0x138] sm:$0xf] %v3975_v52 }
 0x535 PF: > { %s14_s15 = sadd.s32 1, %s4817_s15  }
 0x536   : > { %p11_p4 = scmp.ge.s32.totalorder %s14_s15, 4  }
 0x538   :  { %13 = sbr.rel (!%p11_p4) target bundleno = 1 (0x1), region = 69 }

</bundles_post_ra>
